<compile_context>
chip_gen: v7x
topology: tpu7x:2x2x1
jax: 0.10.0
libtpu: 0.0.40
codegen_flags: <defaults>
</compile_context>

<pallas_src>
import functools

import jax
import jax.numpy as jnp
from jax.experimental import pallas as pl
from jax.experimental.pallas import tpu as pltpu


def _round_up(x, m):
    return (x + m - 1) // m * m


# ----------------------------------------------------------------------------
# Fused matmul + per-column bias + activation Pallas kernel
#   out = act(x @ w + bias)   (BN scale already folded into w by the caller)
# ----------------------------------------------------------------------------
def _make_matmul_kernel(act):
    def kernel(x_ref, w_ref, b_ref, o_ref):
        y = jnp.dot(x_ref[...], w_ref[...], preferred_element_type=jnp.float32)
        y = y + b_ref[...]
        if act == "elu":
            # ELU(alpha=1): x if x > 0 else exp(x) - 1
            y = jnp.where(y > 0, y, jnp.exp(jnp.minimum(y, 0.0)) - 1.0)
        elif act == "sigmoid":
            y = 1.0 / (1.0 + jnp.exp(-y))
        o_ref[...] = y.astype(o_ref.dtype)

    return kernel


def matmul_fused(x, w, bias, act="none", out_dtype=jnp.float32):
    """out = act(x @ w + bias). Full-K / full-N blocks, grid over M only."""
    M, K = x.shape
    K2, N = w.shape
    assert K == K2
    Kp = _round_up(K, 8)        # K only padded to sublane multiple (no MXU waste)
    Np = _round_up(N, 128)      # lane-dense output stores
    if M > 256:
        tm = 256                # >=2 parallel M tiles for conv1 (v7x megacore)
        Mp = _round_up(M, 256)
    else:
        Mp = _round_up(M, 8)    # full-M block for the small layers
        tm = Mp

    xp = jnp.pad(x, ((0, Mp - M), (0, Kp - K))).astype(jnp.bfloat16)
    wp = jnp.pad(w.astype(jnp.float32), ((0, Kp - K), (0, Np - N))).astype(jnp.bfloat16)
    bp = jnp.pad(bias.astype(jnp.float32), (0, Np - N)).reshape(1, Np)

    out = pl.pallas_call(
        _make_matmul_kernel(act),
        out_shape=jax.ShapeDtypeStruct((Mp, Np), out_dtype),
        grid_spec=pltpu.PrefetchScalarGridSpec(
            num_scalar_prefetch=0,
            grid=(Mp // tm,),
            in_specs=[
                pl.BlockSpec((tm, Kp), lambda i: (i, 0)),
                pl.BlockSpec((Kp, Np), lambda i: (0, 0)),
                pl.BlockSpec((1, Np), lambda i: (0, 0)),
            ],
            out_specs=pl.BlockSpec((tm, Np), lambda i: (i, 0)),
        ),
        compiler_params=pltpu.CompilerParams(
            dimension_semantics=("parallel",)
        ),
    )(xp, wp, bp)
    return out[:M, :N]


# ----------------------------------------------------------------------------
# Reparameterization fused into the fc_dec matmul:
#   out = (mu + eps * exp(0.5 * logvar)) @ w + bias
# ----------------------------------------------------------------------------
def _reparam_fc_kernel(mu_ref, lv_ref, eps_ref, w_ref, b_ref, o_ref):
    z = mu_ref[...] + eps_ref[...] * jnp.exp(0.5 * lv_ref[...])
    y = jnp.dot(z, w_ref[...], preferred_element_type=jnp.float32) + b_ref[...]
    o_ref[...] = y.astype(o_ref.dtype)


def reparam_fc_dec(mu, logvar, eps, w, bias):
    B, L = mu.shape
    L2, N = w.shape
    assert L == L2
    Bp = _round_up(B, 8)
    Lp = _round_up(L, 128)
    Np = _round_up(N, 128)

    def padl(a):
        # zero padding is inert: mu=0, eps=0 -> z=0; padded w rows are 0 anyway
        return jnp.pad(a.astype(jnp.float32), ((0, Bp - B), (0, Lp - L)))

    w_p = jnp.pad(w.astype(jnp.float32), ((0, Lp - L), (0, Np - N)))
    b_p = jnp.pad(bias.astype(jnp.float32), (0, Np - N)).reshape(1, Np)
    out = pl.pallas_call(
        _reparam_fc_kernel,
        out_shape=jax.ShapeDtypeStruct((Bp, Np), jnp.float32),
    )(padl(mu), padl(logvar), padl(eps), w_p, b_p)
    return out[:B, :N]


# ----------------------------------------------------------------------------
# Conv / ConvTranspose glue in NHWC (transpose-free im2col, matmul in Pallas)
# ----------------------------------------------------------------------------
def _im2col_nhwc(xpad, kh, kw, stride, Ho, Wo):
    N, _, _, C = xpad.shape
    taps = []
    for i in range(kh):
        for j in range(kw):
            taps.append(
                xpad[:, i: i + (Ho - 1) * stride + 1: stride,
                        j: j + (Wo - 1) * stride + 1: stride, :])
    col = jnp.concatenate(taps, axis=-1)          # (N, Ho, Wo, kh*kw*C)
    return col.reshape(N * Ho * Wo, kh * kw * C)  # pure reshape, no transpose


def conv2d_nhwc(x, w_oihw, stride, padding, scale, bias, act,
                out_dtype=jnp.float32):
    N, H, W, C = x.shape
    O, _, kh, kw = w_oihw.shape
    xpad = jnp.pad(x, ((0, 0), (padding, padding), (padding, padding), (0, 0)))
    Ho = (H + 2 * padding - kh) // stride + 1
    Wo = (W + 2 * padding - kw) // stride + 1
    col = _im2col_nhwc(xpad, kh, kw, stride, Ho, Wo)
    # K ordering (i, j, c) to match im2col column layout
    wmat = w_oihw.transpose(2, 3, 1, 0).reshape(kh * kw * C, O).astype(jnp.float32)
    if scale is not None:
        wmat = wmat * scale[None, :]              # fold BN scale into weights
    out = matmul_fused(col, wmat, bias, act, out_dtype)
    return out.reshape(N, Ho, Wo, O)


def conv_transpose2d_nhwc(x, w_iohw, stride, padding, output_padding, scale,
                          bias, act, out_dtype=jnp.float32):
    """w: PyTorch ConvTranspose2d layout (Cin, Cout, kh, kw)."""
    N, H, W, C = x.shape
    Cin, O, kh, kw = w_iohw.shape
    assert C == Cin
    # zero-dilate the input by the stride
    Hd = (H - 1) * stride + 1
    Wd = (W - 1) * stride + 1
    xd = jnp.zeros((N, Hd, Wd, C), x.dtype).at[:, ::stride, ::stride, :].set(x)
    plo_h, phi_h = kh - 1 - padding, kh - 1 - padding + output_padding
    plo_w, phi_w = kw - 1 - padding, kw - 1 - padding + output_padding
    xpad = jnp.pad(xd, ((0, 0), (plo_h, phi_h), (plo_w, phi_w), (0, 0)))
    Ho = (H - 1) * stride - 2 * padding + kh + output_padding
    Wo = (W - 1) * stride - 2 * padding + kw + output_padding
    col = _im2col_nhwc(xpad, kh, kw, 1, Ho, Wo)
    # equivalent dense conv: flipped kernel, channels swapped -> (i, j, cin, cout)
    wmat = (w_iohw[:, :, ::-1, ::-1].transpose(2, 3, 0, 1)
            .reshape(kh * kw * Cin, O).astype(jnp.float32))
    if scale is not None:
        wmat = wmat * scale[None, :]
    out = matmul_fused(col, wmat, bias, act, out_dtype)
    return out.reshape(N, Ho, Wo, O)


# ----------------------------------------------------------------------------
# Deterministic parameter initialization (synthetic, mirrors nn.Module shapes)
# ----------------------------------------------------------------------------
def init_params(key, input_dim=1, output_dim=1, latent_size=8, img_size=16):
    keys = iter(jax.random.split(key, 64))

    def nrm(shape, scale=0.05):
        return scale * jax.random.normal(next(keys), shape, jnp.float32)

    p = {}
    p["enc_conv1_w"] = nrm((32, input_dim, 5, 5))
    p["enc_conv2_w"] = nrm((32, 32, 4, 4))
    p["enc_conv3_w"] = nrm((64, 32, 3, 3))
    p["enc_conv4_w"] = nrm((16, 64, 5, 5))
    p["enc_conv4_b"] = nrm((16,))
    for name, c in [
        ("enc_bn1", 32), ("enc_bn2", 32), ("enc_bn3", 64),
        ("dec_bn1", 32), ("dec_bn2", 16), ("dec_bn3", 16),
    ]:
        p[name + "_gamma"] = 1.0 + nrm((c,), 0.1)
        p[name + "_beta"] = nrm((c,), 0.1)
        p[name + "_mean"] = nrm((c,), 0.1)
        p[name + "_var"] = 1.0 + 0.1 * jnp.abs(jax.random.normal(next(keys), (c,)))
    # ConvTranspose2d weight layout: (in_channels, out_channels, kh, kw)
    p["dec_conv1_w"] = nrm((16, 32, 4, 4))
    p["dec_conv2_w"] = nrm((32, 16, 5, 5))
    p["dec_conv3_w"] = nrm((16, 16, 5, 5))
    p["dec_conv4_w"] = nrm((16, output_dim, 3, 3))
    p["dec_conv4_b"] = nrm((output_dim,))
    linear_size = int(16 * (img_size / 4) ** 2)
    p["fc_mu_w"] = nrm((latent_size, linear_size))
    p["fc_mu_b"] = nrm((latent_size,))
    p["fc_logvar_w"] = nrm((latent_size, linear_size))
    p["fc_logvar_b"] = nrm((latent_size,))
    p["fc_dec_w"] = nrm((linear_size, latent_size))
    p["fc_dec_b"] = nrm((linear_size,))
    return p


# ----------------------------------------------------------------------------
# VAE2d forward (glue in JAX, compute in Pallas)
# ----------------------------------------------------------------------------
def _perm_linear_cols_chw_to_hwc(w, C, H, W):
    """Permute last (linear) axis from torch (c,h,w) flatten order to (h,w,c)."""
    rows = w.shape[0]
    return w.reshape(rows, C, H, W).transpose(0, 2, 3, 1).reshape(rows, -1)


def vae2d_forward(params, x, eps_latent, input_dim, output_dim, img_size,
                  latent_size, deterministic=False):
    BN_EPS = 1e-5
    bf16 = jnp.bfloat16

    def bn_sb(prefix):
        s = params[prefix + "_gamma"] / jnp.sqrt(params[prefix + "_var"] + BN_EPS)
        b = params[prefix + "_beta"] - params[prefix + "_mean"] * s
        return s, b

    B = x.shape[0]
    hs = img_size // 4

    # single NCHW -> NHWC layout change, on the tiny network input
    h = x.transpose(0, 2, 3, 1)

    # ---------------- encoder ----------------
    s, b = bn_sb("enc_bn1")
    h = conv2d_nhwc(h, params["enc_conv1_w"], 1, 2, s, b, "elu", bf16)
    s, b = bn_sb("enc_bn2")
    h = conv2d_nhwc(h, params["enc_conv2_w"], 2, 1, s, b, "elu", bf16)
    s, b = bn_sb("enc_bn3")
    h = conv2d_nhwc(h, params["enc_conv3_w"], 2, 1, s, b, "elu", bf16)
    h = conv2d_nhwc(h, params["enc_conv4_w"], 1, 2, None, params["enc_conv4_b"],
                    "none", bf16)
    flat = h.reshape(B, -1)  # NHWC flatten; fc weights permuted to match below

    w_mu = _perm_linear_cols_chw_to_hwc(params["fc_mu_w"], 16, hs, hs)
    w_lv = _perm_linear_cols_chw_to_hwc(params["fc_logvar_w"], 16, hs, hs)
    w_cat = jnp.concatenate([w_mu.T, w_lv.T], axis=1)       # (linear, 2L)
    b_cat = jnp.concatenate([params["fc_mu_b"], params["fc_logvar_b"]])
    mu_logvar = matmul_fused(flat, w_cat, b_cat, "none", jnp.float32)

    # ---------------- reparameterize + fc_dec (fused in one kernel) ----------
    L = latent_size
    mu = mu_logvar[:, :L]
    logvar = mu_logvar[:, L:]
    eps = jnp.zeros_like(mu) if deterministic else eps_latent
    # fc_dec output columns permuted to (h, w, c) so reshape yields NHWC directly
    w_dec = _perm_linear_cols_chw_to_hwc(params["fc_dec_w"].T, 16, hs, hs)
    b_dec = params["fc_dec_b"].reshape(16, hs, hs).transpose(1, 2, 0).reshape(-1)
    hdec = reparam_fc_dec(mu, logvar, eps, w_dec, b_dec)
    d = hdec.reshape(B, hs, hs, 16)

    # ---------------- decoder ----------------
    s, b = bn_sb("dec_bn1")
    d = conv_transpose2d_nhwc(d, params["dec_conv1_w"], 1, 2, 0, s, b, "elu", bf16)
    s, b = bn_sb("dec_bn2")
    d = conv_transpose2d_nhwc(d, params["dec_conv2_w"], 2, 1, 1, s, b, "elu", bf16)
    s, b = bn_sb("dec_bn3")
    d = conv_transpose2d_nhwc(d, params["dec_conv3_w"], 2, 2, 1, s, b, "elu", bf16)
    final_act = "sigmoid" if input_dim == 1 else "none"
    recon = conv_transpose2d_nhwc(
        d, params["dec_conv4_w"], 1, 1, 0, None, params["dec_conv4_b"],
        final_act, jnp.float32)
    return recon.transpose(0, 3, 1, 2), mu_logvar  # back to NCHW


if __name__ == "__main__":
    input_dim, output_dim, latent_size, img_size = 1, 1, 8, 16
    batch = 2

    key = jax.random.PRNGKey(0)
    k_param, k_x, k_eps = jax.random.split(key, 3)

    params = init_params(k_param, input_dim, output_dim, latent_size, img_size)
    x = jax.random.uniform(k_x, (batch, input_dim, img_size, img_size), jnp.float32)
    # torch.randn_like equivalent noise, generated deterministically up front
    eps = jax.random.normal(k_eps, (batch, latent_size), jnp.float32)

    fwd = jax.jit(functools.partial(
        vae2d_forward, input_dim=input_dim, output_dim=output_dim,
        img_size=img_size, latent_size=latent_size, deterministic=False))

    recon_x, mu_logvar = fwd(params, x, eps)
    jax.block_until_ready((recon_x, mu_logvar))

    assert recon_x.shape == (batch, output_dim, img_size, img_size), recon_x.shape
    assert mu_logvar.shape == (batch, 2 * latent_size), mu_logvar.shape
    assert bool(jnp.all(jnp.isfinite(recon_x))) and bool(jnp.all(jnp.isfinite(mu_logvar)))
    assert bool(jnp.all(recon_x >= 0.0)) and bool(jnp.all(recon_x <= 1.0))  # sigmoid output

    print("KERNEL_OK")
</pallas_src>

<mosaic_0001>
module attributes {stable_mosaic.version = 11 : i64} {
  func.func @kernel(%arg0: i32, %arg1: memref<256x32xbf16, #tpu.memory_space<vmem>>, %arg2: memref<32x128xbf16, #tpu.memory_space<vmem>>, %arg3: memref<1x128xf32, #tpu.memory_space<vmem>>, %arg4: memref<256x128xbf16, #tpu.memory_space<vmem>>) attributes {dimension_semantics = [#tpu.dimension_semantics<parallel>], iteration_bounds = array<i64: 2>, scalar_prefetch = 0 : i64, scratch_operands = 0 : i64, tpu.core_type = #tpu.core_type<tc>, window_params = [{transform_indices = @transform_0, window_bounds = array<i64: 256, 32>}, {pipeline_mode = #tpu.pipeline_mode<synchronous>, transform_indices = @transform_1, window_bounds = array<i64: 32, 128>}, {pipeline_mode = #tpu.pipeline_mode<synchronous>, transform_indices = @transform_2, window_bounds = array<i64: 1, 128>}, {transform_indices = @transform_3, window_bounds = array<i64: 256, 128>}]} {
    %c0 = arith.constant 0 : index
    %c0_0 = arith.constant 0 : index
    %0 = vector.load %arg1[%c0, %c0_0] : memref<256x32xbf16, #tpu.memory_space<vmem>>, vector<256x32xbf16>
    %c0_1 = arith.constant 0 : index
    %c0_2 = arith.constant 0 : index
    %1 = vector.load %arg2[%c0_1, %c0_2] : memref<32x128xbf16, #tpu.memory_space<vmem>>, vector<32x128xbf16>
    %cst = arith.constant dense<0.000000e+00> : vector<256x128xf32>
    %2 = tpu.matmul %0, %1, %cst {dimension_numbers = #tpu.dot_dimension_numbers<[1], [0], [0], [1], [0, 0, 1, 1], [], []>} : vector<256x32xbf16>, vector<32x128xbf16>, vector<256x128xf32> -> vector<256x128xf32>
    %c0_3 = arith.constant 0 : index
    %c0_4 = arith.constant 0 : index
    %3 = vector.load %arg3[%c0_3, %c0_4] : memref<1x128xf32, #tpu.memory_space<vmem>>, vector<1x128xf32>
    %4 = vector.broadcast %3 : vector<1x128xf32> to vector<256x128xf32>
    %5 = arith.addf %2, %4 : vector<256x128xf32>
    %cst_5 = arith.constant 0.000000e+00 : f32
    %6 = vector.broadcast %cst_5 : f32 to vector<256x128xf32>
    %7 = arith.cmpf ogt, %5, %6 : vector<256x128xf32>
    %cst_6 = arith.constant 0.000000e+00 : f32
    %8 = vector.broadcast %cst_6 : f32 to vector<256x128xf32>
    %9 = arith.minimumf %5, %8 : vector<256x128xf32>
    %10 = math.exp %9 : vector<256x128xf32>
    %cst_7 = arith.constant 1.000000e+00 : f32
    %11 = vector.broadcast %cst_7 : f32 to vector<256x128xf32>
    %12 = arith.subf %10, %11 : vector<256x128xf32>
    %13 = arith.select %7, %5, %12 : vector<256x128xi1>, vector<256x128xf32>
    %14 = arith.truncf %13 : vector<256x128xf32> to vector<256x128xbf16>
    %c0_8 = arith.constant 0 : index
    %c0_9 = arith.constant 0 : index
    %15 = vector.load %arg4[%c0_8, %c0_9] : memref<256x128xbf16, #tpu.memory_space<vmem>>, vector<256x128xbf16>
    tpu.vector_store %arg4[%c0_8, %c0_9], %14 {strides = array<i32>} : memref<256x128xbf16, #tpu.memory_space<vmem>>, vector<256x128xbf16>,
    return
  }
  func.func @transform_0(%arg0: i32) -> (i32, i32) {
    %c0_i32 = arith.constant 0 : i32
    %c0_i32_0 = arith.constant 0 : i32
    return %arg0, %c0_i32 : i32, i32
  }
  func.func @transform_1(%arg0: i32) -> (i32, i32) {
    %c0_i32 = arith.constant 0 : i32
    %c0_i32_0 = arith.constant 0 : i32
    %c0_i32_1 = arith.constant 0 : i32
    return %c0_i32, %c0_i32_0 : i32, i32
  }
  func.func @transform_2(%arg0: i32) -> (i32, i32) {
    %c0_i32 = arith.constant 0 : i32
    %c0_i32_0 = arith.constant 0 : i32
    %c0_i32_1 = arith.constant 0 : i32
    return %c0_i32, %c0_i32_0 : i32, i32
  }
  func.func @transform_3(%arg0: i32) -> (i32, i32) {
    %c0_i32 = arith.constant 0 : i32
    %c0_i32_0 = arith.constant 0 : i32
    return %arg0, %c0_i32 : i32, i32
  }
}

module attributes {stable_mosaic.version = 11 : i64} {
  func.func @kernel(%arg0: i32, %arg1: memref<128x512xbf16, #tpu.memory_space<vmem>>, %arg2: memref<512x128xbf16, #tpu.memory_space<vmem>>, %arg3: memref<1x128xf32, #tpu.memory_space<vmem>>, %arg4: memref<128x128xbf16, #tpu.memory_space<vmem>>) attributes {dimension_semantics = [#tpu.dimension_semantics<parallel>], iteration_bounds = array<i64: 1>, scalar_prefetch = 0 : i64, scratch_operands = 0 : i64, tpu.core_type = #tpu.core_type<tc>, window_params = [{transform_indices = @transform_0, window_bounds = array<i64: 128, 512>}, {pipeline_mode = #tpu.pipeline_mode<synchronous>, transform_indices = @transform_1, window_bounds = array<i64: 512, 128>}, {pipeline_mode = #tpu.pipeline_mode<synchronous>, transform_indices = @transform_2, window_bounds = array<i64: 1, 128>}, {transform_indices = @transform_3, window_bounds = array<i64: 128, 128>}]} {
    %c0 = arith.constant 0 : index
    %c0_0 = arith.constant 0 : index
    %0 = vector.load %arg1[%c0, %c0_0] : memref<128x512xbf16, #tpu.memory_space<vmem>>, vector<128x512xbf16>
    %c0_1 = arith.constant 0 : index
    %c0_2 = arith.constant 0 : index
    %1 = vector.load %arg2[%c0_1, %c0_2] : memref<512x128xbf16, #tpu.memory_space<vmem>>, vector<512x128xbf16>
    %cst = arith.constant dense<0.000000e+00> : vector<128x128xf32>
    %2 = tpu.matmul %0, %1, %cst {dimension_numbers = #tpu.dot_dimension_numbers<[1], [0], [0], [1], [0, 0, 1, 1], [], []>} : vector<128x512xbf16>, vector<512x128xbf16>, vector<128x128xf32> -> vector<128x128xf32>
    %c0_3 = arith.constant 0 : index
    %c0_4 = arith.constant 0 : index
    %3 = vector.load %arg3[%c0_3, %c0_4] : memref<1x128xf32, #tpu.memory_space<vmem>>, vector<1x128xf32>
    %4 = vector.broadcast %3 : vector<1x128xf32> to vector<128x128xf32>
    %5 = arith.addf %2, %4 : vector<128x128xf32>
    %cst_5 = arith.constant 0.000000e+00 : f32
    %6 = vector.broadcast %cst_5 : f32 to vector<128x128xf32>
    %7 = arith.cmpf ogt, %5, %6 : vector<128x128xf32>
    %cst_6 = arith.constant 0.000000e+00 : f32
    %8 = vector.broadcast %cst_6 : f32 to vector<128x128xf32>
    %9 = arith.minimumf %5, %8 : vector<128x128xf32>
    %10 = math.exp %9 : vector<128x128xf32>
    %cst_7 = arith.constant 1.000000e+00 : f32
    %11 = vector.broadcast %cst_7 : f32 to vector<128x128xf32>
    %12 = arith.subf %10, %11 : vector<128x128xf32>
    %13 = arith.select %7, %5, %12 : vector<128x128xi1>, vector<128x128xf32>
    %14 = arith.truncf %13 : vector<128x128xf32> to vector<128x128xbf16>
    %c0_8 = arith.constant 0 : index
    %c0_9 = arith.constant 0 : index
    %15 = vector.load %arg4[%c0_8, %c0_9] : memref<128x128xbf16, #tpu.memory_space<vmem>>, vector<128x128xbf16>
    tpu.vector_store %arg4[%c0_8, %c0_9], %14 {strides = array<i32>} : memref<128x128xbf16, #tpu.memory_space<vmem>>, vector<128x128xbf16>,
    return
  }
  func.func @transform_0(%arg0: i32) -> (i32, i32) {
    %c0_i32 = arith.constant 0 : i32
    %c0_i32_0 = arith.constant 0 : i32
    return %arg0, %c0_i32 : i32, i32
  }
  func.func @transform_1(%arg0: i32) -> (i32, i32) {
    %c0_i32 = arith.constant 0 : i32
    %c0_i32_0 = arith.constant 0 : i32
    %c0_i32_1 = arith.constant 0 : i32
    return %c0_i32, %c0_i32_0 : i32, i32
  }
  func.func @transform_2(%arg0: i32) -> (i32, i32) {
    %c0_i32 = arith.constant 0 : i32
    %c0_i32_0 = arith.constant 0 : i32
    %c0_i32_1 = arith.constant 0 : i32
    return %c0_i32, %c0_i32_0 : i32, i32
  }
  func.func @transform_3(%arg0: i32) -> (i32, i32) {
    %c0_i32 = arith.constant 0 : i32
    %c0_i32_0 = arith.constant 0 : i32
    return %arg0, %c0_i32 : i32, i32
  }
}

module attributes {stable_mosaic.version = 11 : i64} {
  func.func @kernel(%arg0: i32, %arg1: memref<32x288xbf16, #tpu.memory_space<vmem>>, %arg2: memref<288x128xbf16, #tpu.memory_space<vmem>>, %arg3: memref<1x128xf32, #tpu.memory_space<vmem>>, %arg4: memref<32x128xbf16, #tpu.memory_space<vmem>>) attributes {dimension_semantics = [#tpu.dimension_semantics<parallel>], iteration_bounds = array<i64: 1>, scalar_prefetch = 0 : i64, scratch_operands = 0 : i64, tpu.core_type = #tpu.core_type<tc>, window_params = [{transform_indices = @transform_0, window_bounds = array<i64: 32, 288>}, {pipeline_mode = #tpu.pipeline_mode<synchronous>, transform_indices = @transform_1, window_bounds = array<i64: 288, 128>}, {pipeline_mode = #tpu.pipeline_mode<synchronous>, transform_indices = @transform_2, window_bounds = array<i64: 1, 128>}, {transform_indices = @transform_3, window_bounds = array<i64: 32, 128>}]} {
    %c0 = arith.constant 0 : index
    %c0_0 = arith.constant 0 : index
    %0 = vector.load %arg1[%c0, %c0_0] : memref<32x288xbf16, #tpu.memory_space<vmem>>, vector<32x288xbf16>
    %c0_1 = arith.constant 0 : index
    %c0_2 = arith.constant 0 : index
    %1 = vector.load %arg2[%c0_1, %c0_2] : memref<288x128xbf16, #tpu.memory_space<vmem>>, vector<288x128xbf16>
    %cst = arith.constant dense<0.000000e+00> : vector<32x128xf32>
    %2 = tpu.matmul %0, %1, %cst {dimension_numbers = #tpu.dot_dimension_numbers<[1], [0], [0], [1], [0, 0, 1, 1], [], []>} : vector<32x288xbf16>, vector<288x128xbf16>, vector<32x128xf32> -> vector<32x128xf32>
    %c0_3 = arith.constant 0 : index
    %c0_4 = arith.constant 0 : index
    %3 = vector.load %arg3[%c0_3, %c0_4] : memref<1x128xf32, #tpu.memory_space<vmem>>, vector<1x128xf32>
    %4 = vector.broadcast %3 : vector<1x128xf32> to vector<32x128xf32>
    %5 = arith.addf %2, %4 : vector<32x128xf32>
    %cst_5 = arith.constant 0.000000e+00 : f32
    %6 = vector.broadcast %cst_5 : f32 to vector<32x128xf32>
    %7 = arith.cmpf ogt, %5, %6 : vector<32x128xf32>
    %cst_6 = arith.constant 0.000000e+00 : f32
    %8 = vector.broadcast %cst_6 : f32 to vector<32x128xf32>
    %9 = arith.minimumf %5, %8 : vector<32x128xf32>
    %10 = math.exp %9 : vector<32x128xf32>
    %cst_7 = arith.constant 1.000000e+00 : f32
    %11 = vector.broadcast %cst_7 : f32 to vector<32x128xf32>
    %12 = arith.subf %10, %11 : vector<32x128xf32>
    %13 = arith.select %7, %5, %12 : vector<32x128xi1>, vector<32x128xf32>
    %14 = arith.truncf %13 : vector<32x128xf32> to vector<32x128xbf16>
    %c0_8 = arith.constant 0 : index
    %c0_9 = arith.constant 0 : index
    %15 = vector.load %arg4[%c0_8, %c0_9] : memref<32x128xbf16, #tpu.memory_space<vmem>>, vector<32x128xbf16>
    tpu.vector_store %arg4[%c0_8, %c0_9], %14 {strides = array<i32>} : memref<32x128xbf16, #tpu.memory_space<vmem>>, vector<32x128xbf16>,
    return
  }
  func.func @transform_0(%arg0: i32) -> (i32, i32) {
    %c0_i32 = arith.constant 0 : i32
    %c0_i32_0 = arith.constant 0 : i32
    return %arg0, %c0_i32 : i32, i32
  }
  func.func @transform_1(%arg0: i32) -> (i32, i32) {
    %c0_i32 = arith.constant 0 : i32
    %c0_i32_0 = arith.constant 0 : i32
    %c0_i32_1 = arith.constant 0 : i32
    return %c0_i32, %c0_i32_0 : i32, i32
  }
  func.func @transform_2(%arg0: i32) -> (i32, i32) {
    %c0_i32 = arith.constant 0 : i32
    %c0_i32_0 = arith.constant 0 : i32
    %c0_i32_1 = arith.constant 0 : i32
    return %c0_i32, %c0_i32_0 : i32, i32
  }
  func.func @transform_3(%arg0: i32) -> (i32, i32) {
    %c0_i32 = arith.constant 0 : i32
    %c0_i32_0 = arith.constant 0 : i32
    return %arg0, %c0_i32 : i32, i32
  }
}

module attributes {stable_mosaic.version = 11 : i64} {
  func.func @kernel(%arg0: i32, %arg1: memref<32x1600xbf16, #tpu.memory_space<vmem>>, %arg2: memref<1600x128xbf16, #tpu.memory_space<vmem>>, %arg3: memref<1x128xf32, #tpu.memory_space<vmem>>, %arg4: memref<32x128xbf16, #tpu.memory_space<vmem>>) attributes {dimension_semantics = [#tpu.dimension_semantics<parallel>], iteration_bounds = array<i64: 1>, scalar_prefetch = 0 : i64, scratch_operands = 0 : i64, tpu.core_type = #tpu.core_type<tc>, window_params = [{transform_indices = @transform_0, window_bounds = array<i64: 32, 1600>}, {pipeline_mode = #tpu.pipeline_mode<synchronous>, transform_indices = @transform_1, window_bounds = array<i64: 1600, 128>}, {pipeline_mode = #tpu.pipeline_mode<synchronous>, transform_indices = @transform_2, window_bounds = array<i64: 1, 128>}, {transform_indices = @transform_3, window_bounds = array<i64: 32, 128>}]} {
    %c0 = arith.constant 0 : index
    %c0_0 = arith.constant 0 : index
    %0 = vector.load %arg1[%c0, %c0_0] : memref<32x1600xbf16, #tpu.memory_space<vmem>>, vector<32x1600xbf16>
    %c0_1 = arith.constant 0 : index
    %c0_2 = arith.constant 0 : index
    %1 = vector.load %arg2[%c0_1, %c0_2] : memref<1600x128xbf16, #tpu.memory_space<vmem>>, vector<1600x128xbf16>
    %cst = arith.constant dense<0.000000e+00> : vector<32x128xf32>
    %2 = tpu.matmul %0, %1, %cst {dimension_numbers = #tpu.dot_dimension_numbers<[1], [0], [0], [1], [0, 0, 1, 1], [], []>} : vector<32x1600xbf16>, vector<1600x128xbf16>, vector<32x128xf32> -> vector<32x128xf32>
    %c0_3 = arith.constant 0 : index
    %c0_4 = arith.constant 0 : index
    %3 = vector.load %arg3[%c0_3, %c0_4] : memref<1x128xf32, #tpu.memory_space<vmem>>, vector<1x128xf32>
    %4 = vector.broadcast %3 : vector<1x128xf32> to vector<32x128xf32>
    %5 = arith.addf %2, %4 : vector<32x128xf32>
    %6 = arith.truncf %5 : vector<32x128xf32> to vector<32x128xbf16>
    %c0_5 = arith.constant 0 : index
    %c0_6 = arith.constant 0 : index
    %7 = vector.load %arg4[%c0_5, %c0_6] : memref<32x128xbf16, #tpu.memory_space<vmem>>, vector<32x128xbf16>
    tpu.vector_store %arg4[%c0_5, %c0_6], %6 {strides = array<i32>} : memref<32x128xbf16, #tpu.memory_space<vmem>>, vector<32x128xbf16>,
    return
  }
  func.func @transform_0(%arg0: i32) -> (i32, i32) {
    %c0_i32 = arith.constant 0 : i32
    %c0_i32_0 = arith.constant 0 : i32
    return %arg0, %c0_i32 : i32, i32
  }
  func.func @transform_1(%arg0: i32) -> (i32, i32) {
    %c0_i32 = arith.constant 0 : i32
    %c0_i32_0 = arith.constant 0 : i32
    %c0_i32_1 = arith.constant 0 : i32
    return %c0_i32, %c0_i32_0 : i32, i32
  }
  func.func @transform_2(%arg0: i32) -> (i32, i32) {
    %c0_i32 = arith.constant 0 : i32
    %c0_i32_0 = arith.constant 0 : i32
    %c0_i32_1 = arith.constant 0 : i32
    return %c0_i32, %c0_i32_0 : i32, i32
  }
  func.func @transform_3(%arg0: i32) -> (i32, i32) {
    %c0_i32 = arith.constant 0 : i32
    %c0_i32_0 = arith.constant 0 : i32
    return %arg0, %c0_i32 : i32, i32
  }
}

module attributes {stable_mosaic.version = 11 : i64} {
  func.func @kernel(%arg0: i32, %arg1: memref<8x256xbf16, #tpu.memory_space<vmem>>, %arg2: memref<256x128xbf16, #tpu.memory_space<vmem>>, %arg3: memref<1x128xf32, #tpu.memory_space<vmem>>, %arg4: memref<8x128xf32, #tpu.memory_space<vmem>>) attributes {dimension_semantics = [#tpu.dimension_semantics<parallel>], iteration_bounds = array<i64: 1>, scalar_prefetch = 0 : i64, scratch_operands = 0 : i64, tpu.core_type = #tpu.core_type<tc>, window_params = [{transform_indices = @transform_0, window_bounds = array<i64: 8, 256>}, {pipeline_mode = #tpu.pipeline_mode<synchronous>, transform_indices = @transform_1, window_bounds = array<i64: 256, 128>}, {pipeline_mode = #tpu.pipeline_mode<synchronous>, transform_indices = @transform_2, window_bounds = array<i64: 1, 128>}, {transform_indices = @transform_3, window_bounds = array<i64: 8, 128>}]} {
    %c0 = arith.constant 0 : index
    %c0_0 = arith.constant 0 : index
    %0 = vector.load %arg1[%c0, %c0_0] : memref<8x256xbf16, #tpu.memory_space<vmem>>, vector<8x256xbf16>
    %c0_1 = arith.constant 0 : index
    %c0_2 = arith.constant 0 : index
    %1 = vector.load %arg2[%c0_1, %c0_2] : memref<256x128xbf16, #tpu.memory_space<vmem>>, vector<256x128xbf16>
    %cst = arith.constant dense<0.000000e+00> : vector<8x128xf32>
    %2 = tpu.matmul %0, %1, %cst {dimension_numbers = #tpu.dot_dimension_numbers<[1], [0], [0], [1], [0, 0, 1, 1], [], []>} : vector<8x256xbf16>, vector<256x128xbf16>, vector<8x128xf32> -> vector<8x128xf32>
    %c0_3 = arith.constant 0 : index
    %c0_4 = arith.constant 0 : index
    %3 = vector.load %arg3[%c0_3, %c0_4] : memref<1x128xf32, #tpu.memory_space<vmem>>, vector<1x128xf32>
    %4 = vector.broadcast %3 : vector<1x128xf32> to vector<8x128xf32>
    %5 = arith.addf %2, %4 : vector<8x128xf32>
    %c0_5 = arith.constant 0 : index
    %c0_6 = arith.constant 0 : index
    %6 = vector.load %arg4[%c0_5, %c0_6] : memref<8x128xf32, #tpu.memory_space<vmem>>, vector<8x128xf32>
    tpu.vector_store %arg4[%c0_5, %c0_6], %5 {strides = array<i32>} : memref<8x128xf32, #tpu.memory_space<vmem>>, vector<8x128xf32>,
    return
  }
  func.func @transform_0(%arg0: i32) -> (i32, i32) {
    %c0_i32 = arith.constant 0 : i32
    %c0_i32_0 = arith.constant 0 : i32
    return %arg0, %c0_i32 : i32, i32
  }
  func.func @transform_1(%arg0: i32) -> (i32, i32) {
    %c0_i32 = arith.constant 0 : i32
    %c0_i32_0 = arith.constant 0 : i32
    %c0_i32_1 = arith.constant 0 : i32
    return %c0_i32, %c0_i32_0 : i32, i32
  }
  func.func @transform_2(%arg0: i32) -> (i32, i32) {
    %c0_i32 = arith.constant 0 : i32
    %c0_i32_0 = arith.constant 0 : i32
    %c0_i32_1 = arith.constant 0 : i32
    return %c0_i32, %c0_i32_0 : i32, i32
  }
  func.func @transform_3(%arg0: i32) -> (i32, i32) {
    %c0_i32 = arith.constant 0 : i32
    %c0_i32_0 = arith.constant 0 : i32
    return %arg0, %c0_i32 : i32, i32
  }
}

module attributes {stable_mosaic.version = 11 : i64} {
  func.func @_reparam_fc_kernel(%arg0: memref<8x128xf32, #tpu.memory_space<vmem>>, %arg1: memref<8x128xf32, #tpu.memory_space<vmem>>, %arg2: memref<8x128xf32, #tpu.memory_space<vmem>>, %arg3: memref<128x256xf32, #tpu.memory_space<vmem>>, %arg4: memref<1x256xf32, #tpu.memory_space<vmem>>, %arg5: memref<8x256xf32, #tpu.memory_space<vmem>>) attributes {dimension_semantics = [], scalar_prefetch = 0 : i64, scratch_operands = 0 : i64, tpu.core_type = #tpu.core_type<tc>} {
    %c0 = arith.constant 0 : index
    %c0_0 = arith.constant 0 : index
    %0 = vector.load %arg0[%c0, %c0_0] : memref<8x128xf32, #tpu.memory_space<vmem>>, vector<8x128xf32>
    %c0_1 = arith.constant 0 : index
    %c0_2 = arith.constant 0 : index
    %1 = vector.load %arg2[%c0_1, %c0_2] : memref<8x128xf32, #tpu.memory_space<vmem>>, vector<8x128xf32>
    %c0_3 = arith.constant 0 : index
    %c0_4 = arith.constant 0 : index
    %2 = vector.load %arg1[%c0_3, %c0_4] : memref<8x128xf32, #tpu.memory_space<vmem>>, vector<8x128xf32>
    %cst = arith.constant 5.000000e-01 : f32
    %3 = vector.broadcast %cst : f32 to vector<8x128xf32>
    %4 = arith.mulf %3, %2 : vector<8x128xf32>
    %5 = math.exp %4 : vector<8x128xf32>
    %6 = arith.mulf %1, %5 : vector<8x128xf32>
    %7 = arith.addf %0, %6 : vector<8x128xf32>
    %c0_5 = arith.constant 0 : index
    %c0_6 = arith.constant 0 : index
    %8 = vector.load %arg3[%c0_5, %c0_6] : memref<128x256xf32, #tpu.memory_space<vmem>>, vector<128x256xf32>
    %cst_7 = arith.constant dense<0.000000e+00> : vector<8x256xf32>
    %9 = tpu.matmul %7, %8, %cst_7 {dimension_numbers = #tpu.dot_dimension_numbers<[1], [0], [0], [1], [0, 0, 1, 1], [], []>} : vector<8x128xf32>, vector<128x256xf32>, vector<8x256xf32> -> vector<8x256xf32>
    %c0_8 = arith.constant 0 : index
    %c0_9 = arith.constant 0 : index
    %10 = vector.load %arg4[%c0_8, %c0_9] : memref<1x256xf32, #tpu.memory_space<vmem>>, vector<1x256xf32>
    %11 = vector.broadcast %10 : vector<1x256xf32> to vector<8x256xf32>
    %12 = arith.addf %9, %11 : vector<8x256xf32>
    %c0_10 = arith.constant 0 : index
    %c0_11 = arith.constant 0 : index
    %13 = vector.load %arg5[%c0_10, %c0_11] : memref<8x256xf32, #tpu.memory_space<vmem>>, vector<8x256xf32>
    tpu.vector_store %arg5[%c0_10, %c0_11], %12 {strides = array<i32>} : memref<8x256xf32, #tpu.memory_space<vmem>>, vector<8x256xf32>,
    return
  }
}

module attributes {stable_mosaic.version = 11 : i64} {
  func.func @kernel(%arg0: i32, %arg1: memref<24x256xbf16, #tpu.memory_space<vmem>>, %arg2: memref<256x128xbf16, #tpu.memory_space<vmem>>, %arg3: memref<1x128xf32, #tpu.memory_space<vmem>>, %arg4: memref<24x128xbf16, #tpu.memory_space<vmem>>) attributes {dimension_semantics = [#tpu.dimension_semantics<parallel>], iteration_bounds = array<i64: 1>, scalar_prefetch = 0 : i64, scratch_operands = 0 : i64, tpu.core_type = #tpu.core_type<tc>, window_params = [{transform_indices = @transform_0, window_bounds = array<i64: 24, 256>}, {pipeline_mode = #tpu.pipeline_mode<synchronous>, transform_indices = @transform_1, window_bounds = array<i64: 256, 128>}, {pipeline_mode = #tpu.pipeline_mode<synchronous>, transform_indices = @transform_2, window_bounds = array<i64: 1, 128>}, {transform_indices = @transform_3, window_bounds = array<i64: 24, 128>}]} {
    %c0 = arith.constant 0 : index
    %c0_0 = arith.constant 0 : index
    %0 = vector.load %arg1[%c0, %c0_0] : memref<24x256xbf16, #tpu.memory_space<vmem>>, vector<24x256xbf16>
    %c0_1 = arith.constant 0 : index
    %c0_2 = arith.constant 0 : index
    %1 = vector.load %arg2[%c0_1, %c0_2] : memref<256x128xbf16, #tpu.memory_space<vmem>>, vector<256x128xbf16>
    %cst = arith.constant dense<0.000000e+00> : vector<24x128xf32>
    %2 = tpu.matmul %0, %1, %cst {dimension_numbers = #tpu.dot_dimension_numbers<[1], [0], [0], [1], [0, 0, 1, 1], [], []>} : vector<24x256xbf16>, vector<256x128xbf16>, vector<24x128xf32> -> vector<24x128xf32>
    %c0_3 = arith.constant 0 : index
    %c0_4 = arith.constant 0 : index
    %3 = vector.load %arg3[%c0_3, %c0_4] : memref<1x128xf32, #tpu.memory_space<vmem>>, vector<1x128xf32>
    %4 = vector.broadcast %3 : vector<1x128xf32> to vector<24x128xf32>
    %5 = arith.addf %2, %4 : vector<24x128xf32>
    %cst_5 = arith.constant 0.000000e+00 : f32
    %6 = vector.broadcast %cst_5 : f32 to vector<24x128xf32>
    %7 = arith.cmpf ogt, %5, %6 : vector<24x128xf32>
    %cst_6 = arith.constant 0.000000e+00 : f32
    %8 = vector.broadcast %cst_6 : f32 to vector<24x128xf32>
    %9 = arith.minimumf %5, %8 : vector<24x128xf32>
    %10 = math.exp %9 : vector<24x128xf32>
    %cst_7 = arith.constant 1.000000e+00 : f32
    %11 = vector.broadcast %cst_7 : f32 to vector<24x128xf32>
    %12 = arith.subf %10, %11 : vector<24x128xf32>
    %13 = arith.select %7, %5, %12 : vector<24x128xi1>, vector<24x128xf32>
    %14 = arith.truncf %13 : vector<24x128xf32> to vector<24x128xbf16>
    %c0_8 = arith.constant 0 : index
    %c0_9 = arith.constant 0 : index
    %15 = vector.load %arg4[%c0_8, %c0_9] : memref<24x128xbf16, #tpu.memory_space<vmem>>, vector<24x128xbf16>
    tpu.vector_store %arg4[%c0_8, %c0_9], %14 {strides = array<i32>} : memref<24x128xbf16, #tpu.memory_space<vmem>>, vector<24x128xbf16>,
    return
  }
  func.func @transform_0(%arg0: i32) -> (i32, i32) {
    %c0_i32 = arith.constant 0 : i32
    %c0_i32_0 = arith.constant 0 : i32
    return %arg0, %c0_i32 : i32, i32
  }
  func.func @transform_1(%arg0: i32) -> (i32, i32) {
    %c0_i32 = arith.constant 0 : i32
    %c0_i32_0 = arith.constant 0 : i32
    %c0_i32_1 = arith.constant 0 : i32
    return %c0_i32, %c0_i32_0 : i32, i32
  }
  func.func @transform_2(%arg0: i32) -> (i32, i32) {
    %c0_i32 = arith.constant 0 : i32
    %c0_i32_0 = arith.constant 0 : i32
    %c0_i32_1 = arith.constant 0 : i32
    return %c0_i32, %c0_i32_0 : i32, i32
  }
  func.func @transform_3(%arg0: i32) -> (i32, i32) {
    %c0_i32 = arith.constant 0 : i32
    %c0_i32_0 = arith.constant 0 : i32
    return %arg0, %c0_i32 : i32, i32
  }
}

module attributes {stable_mosaic.version = 11 : i64} {
  func.func @kernel(%arg0: i32, %arg1: memref<128x800xbf16, #tpu.memory_space<vmem>>, %arg2: memref<800x128xbf16, #tpu.memory_space<vmem>>, %arg3: memref<1x128xf32, #tpu.memory_space<vmem>>, %arg4: memref<128x128xbf16, #tpu.memory_space<vmem>>) attributes {dimension_semantics = [#tpu.dimension_semantics<parallel>], iteration_bounds = array<i64: 1>, scalar_prefetch = 0 : i64, scratch_operands = 0 : i64, tpu.core_type = #tpu.core_type<tc>, window_params = [{transform_indices = @transform_0, window_bounds = array<i64: 128, 800>}, {pipeline_mode = #tpu.pipeline_mode<synchronous>, transform_indices = @transform_1, window_bounds = array<i64: 800, 128>}, {pipeline_mode = #tpu.pipeline_mode<synchronous>, transform_indices = @transform_2, window_bounds = array<i64: 1, 128>}, {transform_indices = @transform_3, window_bounds = array<i64: 128, 128>}]} {
    %c0 = arith.constant 0 : index
    %c0_0 = arith.constant 0 : index
    %0 = vector.load %arg1[%c0, %c0_0] : memref<128x800xbf16, #tpu.memory_space<vmem>>, vector<128x800xbf16>
    %c0_1 = arith.constant 0 : index
    %c0_2 = arith.constant 0 : index
    %1 = vector.load %arg2[%c0_1, %c0_2] : memref<800x128xbf16, #tpu.memory_space<vmem>>, vector<800x128xbf16>
    %cst = arith.constant dense<0.000000e+00> : vector<128x128xf32>
    %2 = tpu.matmul %0, %1, %cst {dimension_numbers = #tpu.dot_dimension_numbers<[1], [0], [0], [1], [0, 0, 1, 1], [], []>} : vector<128x800xbf16>, vector<800x128xbf16>, vector<128x128xf32> -> vector<128x128xf32>
    %c0_3 = arith.constant 0 : index
    %c0_4 = arith.constant 0 : index
    %3 = vector.load %arg3[%c0_3, %c0_4] : memref<1x128xf32, #tpu.memory_space<vmem>>, vector<1x128xf32>
    %4 = vector.broadcast %3 : vector<1x128xf32> to vector<128x128xf32>
    %5 = arith.addf %2, %4 : vector<128x128xf32>
    %cst_5 = arith.constant 0.000000e+00 : f32
    %6 = vector.broadcast %cst_5 : f32 to vector<128x128xf32>
    %7 = arith.cmpf ogt, %5, %6 : vector<128x128xf32>
    %cst_6 = arith.constant 0.000000e+00 : f32
    %8 = vector.broadcast %cst_6 : f32 to vector<128x128xf32>
    %9 = arith.minimumf %5, %8 : vector<128x128xf32>
    %10 = math.exp %9 : vector<128x128xf32>
    %cst_7 = arith.constant 1.000000e+00 : f32
    %11 = vector.broadcast %cst_7 : f32 to vector<128x128xf32>
    %12 = arith.subf %10, %11 : vector<128x128xf32>
    %13 = arith.select %7, %5, %12 : vector<128x128xi1>, vector<128x128xf32>
    %14 = arith.truncf %13 : vector<128x128xf32> to vector<128x128xbf16>
    %c0_8 = arith.constant 0 : index
    %c0_9 = arith.constant 0 : index
    %15 = vector.load %arg4[%c0_8, %c0_9] : memref<128x128xbf16, #tpu.memory_space<vmem>>, vector<128x128xbf16>
    tpu.vector_store %arg4[%c0_8, %c0_9], %14 {strides = array<i32>} : memref<128x128xbf16, #tpu.memory_space<vmem>>, vector<128x128xbf16>,
    return
  }
  func.func @transform_0(%arg0: i32) -> (i32, i32) {
    %c0_i32 = arith.constant 0 : i32
    %c0_i32_0 = arith.constant 0 : i32
    return %arg0, %c0_i32 : i32, i32
  }
  func.func @transform_1(%arg0: i32) -> (i32, i32) {
    %c0_i32 = arith.constant 0 : i32
    %c0_i32_0 = arith.constant 0 : i32
    %c0_i32_1 = arith.constant 0 : i32
    return %c0_i32, %c0_i32_0 : i32, i32
  }
  func.func @transform_2(%arg0: i32) -> (i32, i32) {
    %c0_i32 = arith.constant 0 : i32
    %c0_i32_0 = arith.constant 0 : i32
    %c0_i32_1 = arith.constant 0 : i32
    return %c0_i32, %c0_i32_0 : i32, i32
  }
  func.func @transform_3(%arg0: i32) -> (i32, i32) {
    %c0_i32 = arith.constant 0 : i32
    %c0_i32_0 = arith.constant 0 : i32
    return %arg0, %c0_i32 : i32, i32
  }
}

module attributes {stable_mosaic.version = 11 : i64} {
  func.func @kernel(%arg0: i32, %arg1: memref<256x400xbf16, #tpu.memory_space<vmem>>, %arg2: memref<400x128xbf16, #tpu.memory_space<vmem>>, %arg3: memref<1x128xf32, #tpu.memory_space<vmem>>, %arg4: memref<256x128xbf16, #tpu.memory_space<vmem>>) attributes {dimension_semantics = [#tpu.dimension_semantics<parallel>], iteration_bounds = array<i64: 2>, scalar_prefetch = 0 : i64, scratch_operands = 0 : i64, tpu.core_type = #tpu.core_type<tc>, window_params = [{transform_indices = @transform_0, window_bounds = array<i64: 256, 400>}, {pipeline_mode = #tpu.pipeline_mode<synchronous>, transform_indices = @transform_1, window_bounds = array<i64: 400, 128>}, {pipeline_mode = #tpu.pipeline_mode<synchronous>, transform_indices = @transform_2, window_bounds = array<i64: 1, 128>}, {transform_indices = @transform_3, window_bounds = array<i64: 256, 128>}]} {
    %c0 = arith.constant 0 : index
    %c0_0 = arith.constant 0 : index
    %0 = vector.load %arg1[%c0, %c0_0] : memref<256x400xbf16, #tpu.memory_space<vmem>>, vector<256x400xbf16>
    %c0_1 = arith.constant 0 : index
    %c0_2 = arith.constant 0 : index
    %1 = vector.load %arg2[%c0_1, %c0_2] : memref<400x128xbf16, #tpu.memory_space<vmem>>, vector<400x128xbf16>
    %cst = arith.constant dense<0.000000e+00> : vector<256x128xf32>
    %2 = tpu.matmul %0, %1, %cst {dimension_numbers = #tpu.dot_dimension_numbers<[1], [0], [0], [1], [0, 0, 1, 1], [], []>} : vector<256x400xbf16>, vector<400x128xbf16>, vector<256x128xf32> -> vector<256x128xf32>
    %c0_3 = arith.constant 0 : index
    %c0_4 = arith.constant 0 : index
    %3 = vector.load %arg3[%c0_3, %c0_4] : memref<1x128xf32, #tpu.memory_space<vmem>>, vector<1x128xf32>
    %4 = vector.broadcast %3 : vector<1x128xf32> to vector<256x128xf32>
    %5 = arith.addf %2, %4 : vector<256x128xf32>
    %cst_5 = arith.constant 0.000000e+00 : f32
    %6 = vector.broadcast %cst_5 : f32 to vector<256x128xf32>
    %7 = arith.cmpf ogt, %5, %6 : vector<256x128xf32>
    %cst_6 = arith.constant 0.000000e+00 : f32
    %8 = vector.broadcast %cst_6 : f32 to vector<256x128xf32>
    %9 = arith.minimumf %5, %8 : vector<256x128xf32>
    %10 = math.exp %9 : vector<256x128xf32>
    %cst_7 = arith.constant 1.000000e+00 : f32
    %11 = vector.broadcast %cst_7 : f32 to vector<256x128xf32>
    %12 = arith.subf %10, %11 : vector<256x128xf32>
    %13 = arith.select %7, %5, %12 : vector<256x128xi1>, vector<256x128xf32>
    %14 = arith.truncf %13 : vector<256x128xf32> to vector<256x128xbf16>
    %c0_8 = arith.constant 0 : index
    %c0_9 = arith.constant 0 : index
    %15 = vector.load %arg4[%c0_8, %c0_9] : memref<256x128xbf16, #tpu.memory_space<vmem>>, vector<256x128xbf16>
    tpu.vector_store %arg4[%c0_8, %c0_9], %14 {strides = array<i32>} : memref<256x128xbf16, #tpu.memory_space<vmem>>, vector<256x128xbf16>,
    return
  }
  func.func @transform_0(%arg0: i32) -> (i32, i32) {
    %c0_i32 = arith.constant 0 : i32
    %c0_i32_0 = arith.constant 0 : i32
    return %arg0, %c0_i32 : i32, i32
  }
  func.func @transform_1(%arg0: i32) -> (i32, i32) {
    %c0_i32 = arith.constant 0 : i32
    %c0_i32_0 = arith.constant 0 : i32
    %c0_i32_1 = arith.constant 0 : i32
    return %c0_i32, %c0_i32_0 : i32, i32
  }
  func.func @transform_2(%arg0: i32) -> (i32, i32) {
    %c0_i32 = arith.constant 0 : i32
    %c0_i32_0 = arith.constant 0 : i32
    %c0_i32_1 = arith.constant 0 : i32
    return %c0_i32, %c0_i32_0 : i32, i32
  }
  func.func @transform_3(%arg0: i32) -> (i32, i32) {
    %c0_i32 = arith.constant 0 : i32
    %c0_i32_0 = arith.constant 0 : i32
    return %arg0, %c0_i32 : i32, i32
  }
}

module attributes {stable_mosaic.version = 11 : i64} {
  func.func @kernel(%arg0: i32, %arg1: memref<256x144xbf16, #tpu.memory_space<vmem>>, %arg2: memref<144x128xbf16, #tpu.memory_space<vmem>>, %arg3: memref<1x128xf32, #tpu.memory_space<vmem>>, %arg4: memref<256x128xf32, #tpu.memory_space<vmem>>) attributes {dimension_semantics = [#tpu.dimension_semantics<parallel>], iteration_bounds = array<i64: 2>, scalar_prefetch = 0 : i64, scratch_operands = 0 : i64, tpu.core_type = #tpu.core_type<tc>, window_params = [{transform_indices = @transform_0, window_bounds = array<i64: 256, 144>}, {pipeline_mode = #tpu.pipeline_mode<synchronous>, transform_indices = @transform_1, window_bounds = array<i64: 144, 128>}, {pipeline_mode = #tpu.pipeline_mode<synchronous>, transform_indices = @transform_2, window_bounds = array<i64: 1, 128>}, {transform_indices = @transform_3, window_bounds = array<i64: 256, 128>}]} {
    %c0 = arith.constant 0 : index
    %c0_0 = arith.constant 0 : index
    %0 = vector.load %arg1[%c0, %c0_0] : memref<256x144xbf16, #tpu.memory_space<vmem>>, vector<256x144xbf16>
    %c0_1 = arith.constant 0 : index
    %c0_2 = arith.constant 0 : index
    %1 = vector.load %arg2[%c0_1, %c0_2] : memref<144x128xbf16, #tpu.memory_space<vmem>>, vector<144x128xbf16>
    %cst = arith.constant dense<0.000000e+00> : vector<256x128xf32>
    %2 = tpu.matmul %0, %1, %cst {dimension_numbers = #tpu.dot_dimension_numbers<[1], [0], [0], [1], [0, 0, 1, 1], [], []>} : vector<256x144xbf16>, vector<144x128xbf16>, vector<256x128xf32> -> vector<256x128xf32>
    %c0_3 = arith.constant 0 : index
    %c0_4 = arith.constant 0 : index
    %3 = vector.load %arg3[%c0_3, %c0_4] : memref<1x128xf32, #tpu.memory_space<vmem>>, vector<1x128xf32>
    %4 = vector.broadcast %3 : vector<1x128xf32> to vector<256x128xf32>
    %5 = arith.addf %2, %4 : vector<256x128xf32>
    %cst_5 = arith.constant 0.000000e+00 : f32
    %6 = vector.broadcast %cst_5 : f32 to vector<256x128xf32>
    %7 = arith.subf %6, %5 : vector<256x128xf32>
    %8 = math.exp %7 : vector<256x128xf32>
    %cst_6 = arith.constant 1.000000e+00 : f32
    %9 = vector.broadcast %cst_6 : f32 to vector<256x128xf32>
    %10 = arith.addf %9, %8 : vector<256x128xf32>
    %cst_7 = arith.constant 1.000000e+00 : f32
    %11 = vector.broadcast %cst_7 : f32 to vector<256x128xf32>
    %12 = arith.divf %11, %10 : vector<256x128xf32>
    %c0_8 = arith.constant 0 : index
    %c0_9 = arith.constant 0 : index
    %13 = vector.load %arg4[%c0_8, %c0_9] : memref<256x128xf32, #tpu.memory_space<vmem>>, vector<256x128xf32>
    tpu.vector_store %arg4[%c0_8, %c0_9], %12 {strides = array<i32>} : memref<256x128xf32, #tpu.memory_space<vmem>>, vector<256x128xf32>,
    return
  }
  func.func @transform_0(%arg0: i32) -> (i32, i32) {
    %c0_i32 = arith.constant 0 : i32
    %c0_i32_0 = arith.constant 0 : i32
    return %arg0, %c0_i32 : i32, i32
  }
  func.func @transform_1(%arg0: i32) -> (i32, i32) {
    %c0_i32 = arith.constant 0 : i32
    %c0_i32_0 = arith.constant 0 : i32
    %c0_i32_1 = arith.constant 0 : i32
    return %c0_i32, %c0_i32_0 : i32, i32
  }
  func.func @transform_2(%arg0: i32) -> (i32, i32) {
    %c0_i32 = arith.constant 0 : i32
    %c0_i32_0 = arith.constant 0 : i32
    %c0_i32_1 = arith.constant 0 : i32
    return %c0_i32, %c0_i32_0 : i32, i32
  }
  func.func @transform_3(%arg0: i32) -> (i32, i32) {
    %c0_i32 = arith.constant 0 : i32
    %c0_i32_0 = arith.constant 0 : i32
    return %arg0, %c0_i32 : i32, i32
  }
}

</mosaic_0001>

<bundles_post_ra>
// kernel: vae2d_forward.10
= control target key start
LH: loop header
LB: loop body
LE: loop exit
PB: predicated region body
PF: predicated region fallthrough
CT: control target
= control target key end

     0   :  { %s1341_s12 = smov 0   ;;  %s1704_s0 = inlined_call_operand.vmem [shape: bf16[512,32], index: 0, kind: input, shape index: {}]   ;;  %s1705_s1 = inlined_call_operand.vmem [shape: bf16[32,128], index: 1, kind: input, shape index: {}]   ;;  %s1706_s2 = inlined_call_operand.vmem [shape: f32[1,128], index: 2, kind: input, shape index: {}]   ;;  %s1707_s3 = inlined_call_operand.vmem [shape: bf16[512,128], index: 3, kind: output, shape index: {}]  }
   0x1 LB: > { %s928_s13 = sadd.s32 4294967295, %s1319_s12   ;;  %p932_p0 = scmp.ge.s32.totalorder %s1319_s12, 1  ;;  %s1319_s12 = sphi %s1341_s12, %s13_s12  }
   0x2   : > { %p138_p1 = scmp.lt.s32.totalorder %s1319_s12, 3 }
   0x4   : > { %p139_p2 = pnand %p932_p0, %p138_p1 }
   0x5   : > { %v1231_v0 = vld [vmem:[%s1705_s1] sm:$0xff] (!%p139_p2)   ;;  %s933_s16 = sshll.u32 (!%p139_p2), %s928_s13, 5  ;;  %v1232_v1 = vld [vmem:[%s1705_s1 + $0x8] sm:$0xff] (!%p139_p2)   ;;  %vm310_vm0 = vcmask (!%p139_p2), 261120  }
   0x6   : > { %142 = sbr.rel (%p139_p2) target bundleno = 301 (0x12d), region = 32  ;;  %p163_p3 = scmp.lt.s32.totalorder (!%p139_p2), %s933_s16, 63  ;;  %1183 = vmatprep.subr.bf16.mxu0 (!%p139_p2), %v1231_v0  ;;  %1219 = vmatprep.subr.bf16.mxu1 (!%p139_p2), %v1231_v0  ;;  %v1400_v18 = vld [vmem:[%s1706_s2] ss:$0 sm:$0xff] (!%p139_p2) }
   0x7   : > { %1184 = vmatpush3.bf16.msra.mxu0 (!%p139_p2), %v1231_v0  ;;  %1221 = vmatpush3.bf16.msra.mxu1 (!%p139_p2), %v1231_v0 }
   0x8   : > { %1185 = vmatprep.subr.bf16.mxu0 (!%p139_p2), %v1232_v1  ;;  %1220 = vmatprep.subr.bf16.mxu1 (!%p139_p2), %v1232_v1 }
   0xb   : > { %1186 = vmatpush3.bf16.msra.mxu0 (!%p139_p2), %v1232_v1  ;;  %1222 = vmatpush3.bf16.msra.mxu1 (!%p139_p2), %v1232_v1 }
   0xd   : > { %s1709_s16 = smov (!%p163_p3, %s933_s16), 63 }
   0xe   : > { %s934_s19 = sshll.u32 %s1709_s16, 2 }
   0xf   : > { %s1363_s22 = scalar_lea.vmem %s1704_s0, %s934_s19  ;;  %s1502_s27 = scalar_lea.vmem %s1707_s3, %s934_s19 }
  0x10   : > { %v1233_v2 = vld [vmem:[%s1363_s22] sm:$0xff]   ;;  %v1235_v4 = vld [vmem:[%s1363_s22 + $0x8] sm:$0xff]   ;;  %v1237_v6 = vld [vmem:[%s1363_s22 + $0x10] sm:$0xff]  }
  0x11   : > { %v1234_v3 = vld [vmem:[%s1363_s22 + $0x40] sm:$0xff]   ;;  %1187 = vmatprep.mubr.msk.bf16.mxu0 %vm310_vm0, %v1233_v2  ;;  %v1236_v5 = vld [vmem:[%s1363_s22 + $0x48] sm:$0xff]   ;;  %v1238_v7 = vld [vmem:[%s1363_s22 + $0x50] sm:$0xff]  }
  0x12   : > { %1203 = vmatprep.mubr.msk.bf16.mxu1 %vm310_vm0, %v1234_v3  ;;  %1188 = vmatmul.mubr.msk.bf16.vlgmr.msra.gmra.mrb[0].mxu0 %vm310_vm0, %v1235_v4  ;;  %v1239_v8 = vld [vmem:[%s1363_s22 + $0x18] sm:$0xff]   ;;  %v1241_v10 = vld [vmem:[%s1363_s22 + $0x20] sm:$0xff]   ;;  %v1243_v12 = vld [vmem:[%s1363_s22 + $0x28] sm:$0xff]  }
  0x13   : > { %1204 = vmatmul.mubr.msk.bf16.vlgmr.msra.gmra.mrb[0].mxu1 %vm310_vm0, %v1236_v5  ;;  %1191 = vmatprep.mubr.msk.bf16.mxu0 %vm310_vm0, %v1237_v6  ;;  %v1240_v9 = vld [vmem:[%s1363_s22 + $0x58] sm:$0xff]   ;;  %v1242_v11 = vld [vmem:[%s1363_s22 + $0x60] sm:$0xff]   ;;  %v1244_v13 = vld [vmem:[%s1363_s22 + $0x68] sm:$0xff]  }
  0x14   : > { %1207 = vmatprep.mubr.msk.bf16.mxu1 %vm310_vm0, %v1238_v7  ;;  %v1245_v14 = vld [vmem:[%s1363_s22 + $0x30] sm:$0xff]   ;;  %v1247_v16 = vld [vmem:[%s1363_s22 + $0x38] sm:$0xff]  }
  0x15   : > { %v1246_v15 = vld [vmem:[%s1363_s22 + $0x70] sm:$0xff]   ;;  %v1248_v17 = vld [vmem:[%s1363_s22 + $0x78] sm:$0xff]  }
  0x1a   : > { %1192 = vmatmul.mubr.msk.bf16.gmra.mrb[4].mxu0 %vm310_vm0, %v1239_v8 }
  0x1b   : > { %1208 = vmatmul.mubr.msk.bf16.gmra.mrb[4].mxu1 %vm310_vm0, %v1240_v9  ;;  %1195 = vmatprep.mubr.msk.bf16.mxu0 %vm310_vm0, %v1241_v10 }
  0x1c   : > { %1211 = vmatprep.mubr.msk.bf16.mxu1 %vm310_vm0, %v1242_v11 }
  0x22   : > { %1196 = vmatmul.mubr.msk.bf16.gmra.mrb[8].mxu0 %vm310_vm0, %v1243_v12 }
  0x23   : > { %1212 = vmatmul.mubr.msk.bf16.gmra.mrb[8].mxu1 %vm310_vm0, %v1244_v13  ;;  %1199 = vmatprep.mubr.msk.bf16.mxu0 %vm310_vm0, %v1245_v14 }
  0x24   : > { %1215 = vmatprep.mubr.msk.bf16.mxu1 %vm310_vm0, %v1246_v15 }
  0x2a   : > { %1200 = vmatmul.mubr.msk.bf16.gmra.mrb[12].mxu0 %vm310_vm0, %v1247_v16 }
  0x2b   : > { %1216 = vmatmul.mubr.msk.bf16.gmra.mrb[12].mxu1 %vm310_vm0, %v1248_v17 }
  0xe5   : > { %v1189_v19 = vpop.f32.mrb[0].mxu0 }
  0xe6   : > { %v1403_v20 = vadd.f32 %v1189_v19, %v1400_v18  ;;  %v1205_v21 = vpop.f32.mrb[0].mxu1  ;;  %v393_v22 = vpop.f32.mrb[1].mxu0 }
  0xe7   : > { %v1406_v23 = vadd.f32 %v1205_v21, %v1400_v18  ;;  %v1409_v24 = vadd.f32 %v1400_v18, %v393_v22  ;;  %v457_v25 = vpop.f32.mrb[1].mxu1  ;;  %v1190_v26 = vpop.f32.mrb[2].mxu0 }
  0xe8   : > { %v554_v27 = vmin.f32 %v1403_v20, 0.0  ;;  %v1413_v28 = vadd.f32 %v1400_v18, %v457_v25  ;;  %v1416_v29 = vadd.f32 %v1190_v26, %v1400_v18  ;;  %v1206_v30 = vpop.f32.mrb[2].mxu1  ;;  %v396_v31 = vpop.f32.mrb[3].mxu0  ;;  %vm522_vm1 = vcmp.gt.f32.partialorder %v1403_v20, 0.0 }
  0xe9   : > { %v570_v32 = vmin.f32 %v1406_v23, 0.0  ;;  %v552_v33 = vmin.f32 %v1409_v24, 0.0  ;;  %v460_v34 = vpop.f32.mrb[3].mxu1  ;;  %v1423_v40 = vadd.f32 %v1206_v30, %v1400_v18  ;;  %v1426_v42 = vadd.f32 %v1400_v18, %v396_v31 }
  0xea   : > { %v588_v35 = vmul.f32 1.442695, %v554_v27  ;;  %v568_v36 = vmin.f32 %v1413_v28, 0.0  ;;  %v555_v39 = vmin.f32 %v1416_v29, 0.0  ;;  %v1429_v43 = vadd.f32 %v1400_v18, %v460_v34 }
  0xeb   : > { %v620_v37 = vmul.f32 1.442695, %v570_v32  ;;  %v584_v38 = vmul.f32 1.442695, %v552_v33  ;;  %v571_v45 = vmin.f32 %v1423_v40, 0.0  ;;  %v553_v47 = vmin.f32 %v1426_v42, 0.0 }
  0xec   : > { %1249 = vpow2.f32 %v588_v35  ;;  %v616_v41 = vmul.f32 1.442695, %v568_v36  ;;  %v590_v44 = vmul.f32 1.442695, %v555_v39  ;;  %v569_v51 = vmin.f32 %v1429_v43, 0.0 }
  0xed   : > { %1251 = vpow2.f32 %v620_v37  ;;  %v1193_v46 = vpop.f32.mrb[4].mxu0  ;;  %v622_v50 = vmul.f32 1.442695, %v571_v45  ;;  %v586_v55 = vmul.f32 1.442695, %v553_v47  ;;  %vm538_vm2 = vcmp.gt.f32.partialorder %v1406_v23, 0.0 }
  0xee   : > { %1253 = vpow2.f32 %v584_v38  ;;  %v1209_v48 = vpop.f32.mrb[4].mxu1  ;;  %v409_v49 = vpop.f32.mrb[5].mxu0  ;;  %v1435_v52 = vadd.f32 %v1193_v46, %v1400_v18  ;;  %v618_v60 = vmul.f32 1.442695, %v569_v51  ;;  %vm520_vm3 = vcmp.gt.f32.partialorder %v1409_v24, 0.0 }
  0xef   : > { %1255 = vpow2.f32 %v616_v41  ;;  %v473_v53 = vpop.f32.mrb[5].mxu1  ;;  %v1194_v54 = vpop.f32.mrb[6].mxu0  ;;  %v1438_v56 = vadd.f32 %v1209_v48, %v1400_v18  ;;  %v1441_v57 = vadd.f32 %v1400_v18, %v409_v49  ;;  %vm536_vm4 = vcmp.gt.f32.partialorder %v1413_v28, 0.0 }
  0xf0   : > { %1257 = vpow2.f32 %v590_v44  ;;  %v1210_v58 = vpop.f32.mrb[6].mxu1  ;;  %v412_v59 = vpop.f32.mrb[7].mxu0  ;;  %v558_v61 = vmin.f32 %v1435_v52, 0.0  ;;  %v1449_v2 = vadd.f32 %v1400_v18, %v473_v53  ;;  %v1452_v4 = vadd.f32 %v1194_v54, %v1400_v18 }
  0xf1   : > { %1259 = vpow2.f32 %v622_v50  ;;  %v476_v62 = vpop.f32.mrb[7].mxu1  ;;  %v574_v63 = vmin.f32 %v1438_v56, 0.0  ;;  %v556_v1 = vmin.f32 %v1441_v57, 0.0  ;;  %v1455_v5 = vadd.f32 %v1210_v58, %v1400_v18 }
  0xf2   : > { %1261 = vpow2.f32 %v586_v55  ;;  %v596_v0 = vmul.f32 1.442695, %v558_v61  ;;  %v1458_v6 = vadd.f32 %v1400_v18, %v412_v59  ;;  %v572_v8 = vmin.f32 %v1449_v2, 0.0 }
  0xf3   : > { %1263 = vpow2.f32 %v618_v60  ;;  %v628_v3 = vmul.f32 1.442695, %v574_v63  ;;  %v592_v7 = vmul.f32 1.442695, %v556_v1  ;;  %vm523_vm5 = vcmp.gt.f32.partialorder %v1416_v29, 0.0 }
  0xf4   : > { %1265 = vpow2.f32 %v596_v0  ;;  %v559_v11 = vmin.f32 %v1452_v4, 0.0  ;;  %v624_v16 = vmul.f32 1.442695, %v572_v8  ;;  %v575_v17 = vmin.f32 %v1455_v5, 0.0 }
  0xf5   : > { %v1197_v9 = vpop.f32.mrb[8].mxu0  ;;  %1267 = vpow2.f32 %v628_v3  ;;  %vm539_vm6 = vcmp.gt.f32.partialorder %v1423_v40, 0.0  ;;  %v557_v27 = vmin.f32 %v1458_v6, 0.0  ;;  %vm521_vm7 = vcmp.gt.f32.partialorder %v1426_v42, 0.0 }
  0xf6   : > { %v1250_v10 = vpop.eup %1249  ;;  %v1213_v12 = vpop.f32.mrb[8].mxu1  ;;  %1269 = vpow2.f32 %v592_v7  ;;  %v598_v26 = vmul.f32 1.442695, %v559_v11  ;;  %v630_v33 = vmul.f32 1.442695, %v575_v17  ;;  %vm537_vm8 = vcmp.gt.f32.partialorder %v1429_v43, 0.0 }
  0xf7   : > { %v1465_v13 = vpop.f32.mrb[9].mxu0  ;;  %v1252_v14 = vpop.eup %1251  ;;  %v974_v15 = vadd.f32 -1.0, %v1250_v10  ;;  %1271 = vpow2.f32 %v624_v16  ;;  %v594_v38 = vmul.f32 1.442695, %v557_v27  ;;  %v1486_v45 = vadd.f32 %v1400_v18, %v476_v62 }
  0xf8   : > { %v1468_v19 = vpop.f32.mrb[9].mxu1  ;;  %v1470_v21 = vpop.f32.mrb[10].mxu0  ;;  %v990_v25 = vadd.f32 -1.0, %v1252_v14  ;;  %1273 = vpow2.f32 %v598_v26  ;;  %v1492_v49 = vadd.f32 %v1197_v9, %v1400_v18  ;;  %v1533_v10 = vadd.f32 %v1213_v12, %v1400_v18 }
  0xf9   : > { %v1254_v22 = vpop.eup %1253  ;;  %v1474_v30 = vpop.f32.mrb[10].mxu1  ;;  %v682_v41 = vsel %vm522_vm1, %v1403_v20, %v974_v15  ;;  %1275 = vpow2.f32 %v630_v33  ;;  %v573_v53 = vmin.f32 %v1486_v45, 0.0  ;;  %vm526_vm9 = vcmp.gt.f32.partialorder %v1435_v52, 0.0 }
  0xfa   : > { %v1256_v31 = vpop.eup %1255  ;;  %v972_v32 = vadd.f32 -1.0, %v1254_v22  ;;  %v1477_v34 = vpop.f32.mrb[11].mxu0  ;;  %v698_v47 = vsel %vm538_vm2, %v1406_v23, %v990_v25  ;;  %1277 = vpow2.f32 %v594_v38  ;;  %vm542_vm10 = vcmp.gt.f32.partialorder %v1438_v56, 0.0 }
  0xfb   : > { %v1479_v35 = vpop.f32.mrb[11].mxu1  ;;  %v1258_v36 = vpop.eup %1257  ;;  %v988_v37 = vadd.f32 -1.0, %v1256_v31  ;;  %v626_v0 = vmul.f32 1.442695, %v573_v53  ;;  %v578_v22 = vmin.f32 %v1533_v10, 0.0  ;;  %vm524_vm11 = vcmp.gt.f32.partialorder %v1441_v57, 0.0 }
  0xfc   : > { %v1260_v39 = vpop.eup %1259  ;;  %v975_v44 = vadd.f32 -1.0, %v1258_v36  ;;  %v680_v20 = vsel %vm520_vm3, %v1409_v24, %v972_v32  ;;  %vm527_vm12 = vcmp.gt.f32.partialorder %v1452_v4, 0.0  ;;  %v1551_v26 = vadd.f32 %v1400_v18, %v1465_v13 }
  0xfd   : > { %v1262_v46 = vpop.eup %1261  ;;  %v991_v48 = vadd.f32 -1.0, %v1260_v39  ;;  %v1508_v54 = vpop.f32.mrb[12].mxu0  ;;  %v696_v24 = vsel %vm536_vm4, %v1413_v28, %v988_v37  ;;  %v562_v28 = vmin.f32 %v1492_v49, 0.0  ;;  %1279 = vpow2.f32 %v626_v0 }
  0xfe   : > { %v1264_v50 = vpop.eup %1263  ;;  %v683_v23 = vsel %vm523_vm5, %v1416_v29, %v975_v44  ;;  %v973_v51 = vadd.f32 -1.0, %v1262_v46  ;;  %v1516_v60 = vpop.f32.mrb[12].mxu1  ;;  %v1555_v27 = vadd.f32 %v1400_v18, %v1468_v19  ;;  %vm543_vm13 = vcmp.gt.f32.partialorder %v1455_v5, 0.0 }
  0xff   : > { %v1078_v55 = vpack.c.bf16 %v683_v23, %v682_v41  ;;  %v699_v58 = vsel %vm539_vm6, %v1423_v40, %v991_v48  ;;  %v989_v59 = vadd.f32 -1.0, %v1264_v50  ;;  %v1518_v61 = vpop.f32.mrb[13].mxu0  ;;  %v1266_v29 = vpop.eup %1265  ;;  %v604_v16 = vmul.f32 1.442695, %v562_v28 }
 0x100   : > { %v1118_v62 = vpack.c.bf16 %v699_v58, %v698_v47  ;;  %v681_v63 = vsel %vm521_vm7, %v1426_v42, %v973_v51  ;;  %v1524_v1 = vpop.f32.mrb[13].mxu1  ;;  %v1526_v3 = vpop.f32.mrb[14].mxu0  ;;  %v978_v9 = vadd.f32 -1.0, %v1266_v29  ;;  %vm525_vm14 = vcmp.gt.f32.partialorder %v1458_v6, 0.0 }
 0x101   : > { %v1268_v40 = vpop.eup %1267  ;;  %1150 = vst [vmem:[%s1502_s27 + $0x8] sm:$0xff] %v1078_v55   ;;  %v1073_v7 = vpack.c.bf16 %v681_v63, %v680_v20  ;;  %v697_v8 = vsel %vm537_vm8, %v1429_v43, %v989_v59  ;;  %v1535_v42 = vpop.f32.mrb[14].mxu1  ;;  %v1564_v33 = vadd.f32 %v1470_v21, %v1400_v18  ;;  %1281 = vpow2.f32 %v604_v16 }
 0x102   : > { %v1537_v11 = vpop.f32.mrb[15].mxu0  ;;  %v1270_v14 = vpop.eup %1269  ;;  %1158 = vst [vmem:[%s1502_s27 + $0x48] sm:$0xff] %v1118_v62   ;;  %v1113_v15 = vpack.c.bf16 %v697_v8, %v696_v24  ;;  %v994_v43 = vadd.f32 -1.0, %v1268_v40  ;;  %v686_v32 = vsel %vm526_vm9, %v1435_v52, %v978_v9  ;;  %v636_v37 = vmul.f32 1.442695, %v578_v22 }
 0x103   : > { %v1541_v17 = vpop.f32.mrb[15].mxu1  ;;  %1074 = vst [vmem:[%s1502_s27] sm:$0xff] %v1073_v7   ;;  %v976_v12 = vadd.f32 -1.0, %v1270_v14  ;;  %v1272_v25 = vpop.eup %1271  ;;  %v560_v19 = vmin.f32 %v1551_v26, 0.0  ;;  %v576_v21 = vmin.f32 %v1555_v27, 0.0  ;;  %v563_v23 = vmin.f32 %v1564_v33, 0.0 }
 0x104   : > { %1157 = vst [vmem:[%s1502_s27 + $0x40] sm:$0xff] %v1113_v15   ;;  %v1274_v31 = vpop.eup %1273  ;;  %v702_v39 = vsel %vm542_vm10, %v1438_v56, %v994_v43  ;;  %v992_v44 = vadd.f32 -1.0, %v1272_v25  ;;  %1283 = vpow2.f32 %v636_v37  ;;  %vm540_vm15 = vcmp.gt.f32.partialorder %v1449_v2, 0.0 }
 0x105   : > { %v1276_v36 = vpop.eup %1275  ;;  %v979_v13 = vadd.f32 -1.0, %v1274_v31  ;;  %v684_v52 = vsel %vm524_vm11, %v1441_v57, %v976_v12  ;;  %v600_v48 = vmul.f32 1.442695, %v560_v19  ;;  %v632_v20 = vmul.f32 1.442695, %v576_v21 }
 0x106   : > { %v1278_v38 = vpop.eup %1277  ;;  %v995_v41 = vadd.f32 -1.0, %v1276_v36  ;;  %v606_v24 = vmul.f32 1.442695, %v563_v23  ;;  %vm541_vm0 = vcmp.gt.f32.partialorder %v1486_v45, 0.0  ;;  %v1613_v8 = vadd.f32 %v1516_v60, %v1400_v18 }
 0x107   : > { %v687_v46 = vsel %vm527_vm12, %v1452_v4, %v979_v13  ;;  %v977_v47 = vadd.f32 -1.0, %v1278_v38  ;;  %v1586_v4 = vadd.f32 %v1474_v30, %v1400_v18  ;;  %1285 = vpow2.f32 %v600_v48  ;;  %v1280_v55 = vpop.eup %1279 }
 0x108   : > { %v1088_v50 = vpack.c.bf16 %v687_v46, %v686_v32  ;;  %v703_v56 = vsel %vm543_vm13, %v1455_v5, %v995_v41  ;;  %v1591_v5 = vadd.f32 %v1400_v18, %v1477_v34  ;;  %1287 = vpow2.f32 %v632_v20 }
 0x109   : > { %v1128_v57 = vpack.c.bf16 %v703_v56, %v702_v39  ;;  %v685_v51 = vsel %vm525_vm14, %v1458_v6, %v977_v47  ;;  %v579_v58 = vmin.f32 %v1586_v4, 0.0  ;;  %v1597_v6 = vadd.f32 %v1400_v18, %v1479_v35 }
 0x10a   : > { %1152 = vst [vmem:[%s1502_s27 + $0x18] sm:$0xff] %v1088_v50   ;;  %v1083_v53 = vpack.c.bf16 %v685_v51, %v684_v52  ;;  %v1601_v30 = vadd.f32 %v1508_v54, %v1400_v18  ;;  %v993_v59 = vadd.f32 -1.0, %v1280_v55  ;;  %1289 = vpow2.f32 %v606_v24 }
 0x10b   : > { %1160 = vst [vmem:[%s1502_s27 + $0x58] sm:$0xff] %v1128_v57   ;;  %v561_v29 = vmin.f32 %v1591_v5, 0.0  ;;  %v638_v34 = vmul.f32 1.442695, %v579_v58  ;;  %v577_v62 = vmin.f32 %v1597_v6, 0.0  ;;  %v700_v35 = vsel %vm540_vm15, %v1449_v2, %v992_v44  ;;  %v1282_v28 = vpop.eup %1281 }
 0x10c   : > { %1151 = vst [vmem:[%s1502_s27 + $0x10] sm:$0xff] %v1083_v53   ;;  %v701_v63 = vsel %vm541_vm0, %v1486_v45, %v993_v59  ;;  %v566_v54 = vmin.f32 %v1601_v30, 0.0  ;;  %v1617_v9 = vadd.f32 %v1400_v18, %v1518_v61  ;;  %v582_v45 = vmin.f32 %v1613_v8, 0.0 }
 0x10d   : > { %v602_v0 = vmul.f32 1.442695, %v561_v29  ;;  %v1123_v40 = vpack.c.bf16 %v701_v63, %v700_v35  ;;  %1291 = vpow2.f32 %v638_v34  ;;  %v634_v7 = vmul.f32 1.442695, %v577_v62 }
 0x10e   : > { %v612_v2 = vmul.f32 1.442695, %v566_v54  ;;  %v982_v14 = vadd.f32 -1.0, %v1282_v28  ;;  %v564_v15 = vmin.f32 %v1617_v9, 0.0  ;;  %v1624_v16 = vadd.f32 %v1400_v18, %v1524_v1  ;;  %v1284_v43 = vpop.eup %1283 }
 0x10f   : > { %1293 = vpow2.f32 %v602_v0  ;;  %1159 = vst [vmem:[%s1502_s27 + $0x50] sm:$0xff] %v1123_v40   ;;  %vm530_vm1 = vcmp.gt.f32.partialorder %v1492_v49, 0.0  ;;  %v644_v60 = vmul.f32 1.442695, %v582_v45  ;;  %v1629_v61 = vadd.f32 %v1526_v3, %v1400_v18 }
 0x110   : > { %1295 = vpow2.f32 %v634_v7  ;;  %v1633_v12 = vadd.f32 %v1535_v42, %v1400_v18  ;;  %vm546_vm2 = vcmp.gt.f32.partialorder %v1533_v10, 0.0  ;;  %vm528_vm3 = vcmp.gt.f32.partialorder %v1551_v26, 0.0 }
 0x111   : > { %v1286_v22 = vpop.eup %1285  ;;  %v608_v25 = vmul.f32 1.442695, %v564_v15  ;;  %v580_v1 = vmin.f32 %v1624_v16, 0.0  ;;  %vm544_vm4 = vcmp.gt.f32.partialorder %v1555_v27, 0.0  ;;  %vm531_vm5 = vcmp.gt.f32.partialorder %v1564_v33, 0.0 }
 0x112   : > { %v1288_v31 = vpop.eup %1287  ;;  %vm547_vm6 = vcmp.gt.f32.partialorder %v1586_v4, 0.0  ;;  %1297 = vpow2.f32 %v612_v2  ;;  %v567_v3 = vmin.f32 %v1629_v61, 0.0  ;;  %v690_v32 = vsel %vm530_vm1, %v1492_v49, %v982_v14 }
 0x113   : > { %v998_v36 = vadd.f32 -1.0, %v1284_v43  ;;  %vm529_vm7 = vcmp.gt.f32.partialorder %v1591_v5, 0.0  ;;  %v640_v13 = vmul.f32 1.442695, %v580_v1  ;;  %1299 = vpow2.f32 %v644_v60 }
 0x114   : > { %v1290_v42 = vpop.eup %1289  ;;  %v614_v19 = vmul.f32 1.442695, %v567_v3  ;;  %v583_v38 = vmin.f32 %v1633_v12, 0.0  ;;  %v980_v39 = vadd.f32 -1.0, %v1286_v22  ;;  %1301 = vpow2.f32 %v608_v25 }
 0x115   : > { %v983_v37 = vadd.f32 -1.0, %v1290_v42  ;;  %v1649_v52 = vadd.f32 %v1400_v18, %v1537_v11  ;;  %v1653_v41 = vadd.f32 %v1400_v18, %v1541_v17  ;;  %v996_v21 = vadd.f32 -1.0, %v1288_v31 }
 0x116   : > { %1303 = vpow2.f32 %v614_v19  ;;  %v646_v46 = vmul.f32 1.442695, %v583_v38  ;;  %vm545_vm8 = vcmp.gt.f32.partialorder %v1597_v6, 0.0  ;;  %v706_v17 = vsel %vm546_vm2, %v1533_v10, %v998_v36 }
 0x117   : > { %v1292_v49 = vpop.eup %1291  ;;  %v691_v44 = vsel %vm531_vm5, %v1564_v33, %v983_v37  ;;  %1305 = vpow2.f32 %v640_v13  ;;  %v565_v11 = vmin.f32 %v1649_v52, 0.0  ;;  %v581_v18 = vmin.f32 %v1653_v41, 0.0 }
 0x118   : > { %v1098_v48 = vpack.c.bf16 %v691_v44, %v690_v32  ;;  %v999_v50 = vadd.f32 -1.0, %v1292_v49  ;;  %1307 = vpow2.f32 %v646_v46  ;;  %v688_v51 = vsel %vm528_vm3, %v1551_v26, %v980_v39 }
 0x119   : > { %v1294_v47 = vpop.eup %1293  ;;  %v610_v57 = vmul.f32 1.442695, %v565_v11  ;;  %v642_v55 = vmul.f32 1.442695, %v581_v18  ;;  %v704_v10 = vsel %vm544_vm4, %v1555_v27, %v996_v21  ;;  %vm534_vm9 = vcmp.gt.f32.partialorder %v1601_v30, 0.0 }
 0x11a   : > { %v1296_v56 = vpop.eup %1295  ;;  %v981_v20 = vadd.f32 -1.0, %v1294_v47  ;;  %1154 = vst [vmem:[%s1502_s27 + $0x28] sm:$0xff] %v1098_v48   ;;  %v707_v33 = vsel %vm547_vm6, %v1586_v4, %v999_v50  ;;  %vm535_vm10 = vcmp.gt.f32.partialorder %v1629_v61, 0.0  ;;  %vm550_vm11 = vcmp.gt.f32.partialorder %v1613_v8, 0.0 }
 0x11b   : > { %v997_v23 = vadd.f32 -1.0, %v1296_v56  ;;  %v1138_v53 = vpack.c.bf16 %v707_v33, %v706_v17  ;;  %1309 = vpow2.f32 %v610_v57  ;;  %vm551_vm12 = vcmp.gt.f32.partialorder %v1633_v12, 0.0 }
 0x11c   : > { %v689_v24 = vsel %vm529_vm7, %v1591_v5, %v981_v20  ;;  %v1298_v59 = vpop.eup %1297  ;;  %1311 = vpow2.f32 %v642_v55  ;;  %vm532_vm13 = vcmp.gt.f32.partialorder %v1617_v9, 0.0  ;;  %vm533_vm14 = vcmp.gt.f32.partialorder %v1649_v52, 0.0 }
 0x11d   : > { %v1093_v58 = vpack.c.bf16 %v689_v24, %v688_v51  ;;  %v705_v4 = vsel %vm545_vm8, %v1597_v6, %v997_v23  ;;  %1162 = vst [vmem:[%s1502_s27 + $0x68] sm:$0xff] %v1138_v53   ;;  %v1300_v26 = vpop.eup %1299  ;;  %v986_v62 = vadd.f32 -1.0, %v1298_v59  ;;  %vm548_vm15 = vcmp.gt.f32.partialorder %v1624_v16, 0.0 }
 0x11e   : > { %v1133_v29 = vpack.c.bf16 %v705_v4, %v704_v10  ;;  %v1302_v34 = vpop.eup %1301  ;;  %v1002_v63 = vadd.f32 -1.0, %v1300_v26  ;;  %vm549_vm0 = vcmp.gt.f32.partialorder %v1653_v41, 0.0 }
 0x11f   : > { %1153 = vst [vmem:[%s1502_s27 + $0x20] sm:$0xff] %v1093_v58   ;;  %v694_v27 = vsel %vm534_vm9, %v1601_v30, %v986_v62  ;;  %v984_v40 = vadd.f32 -1.0, %v1302_v34 }
 0x120   : > { %1161 = vst [vmem:[%s1502_s27 + $0x60] sm:$0xff] %v1133_v29   ;;  %v1304_v35 = vpop.eup %1303  ;;  %v710_v45 = vsel %vm550_vm11, %v1613_v8, %v1002_v63 }
 0x121   : > { %v1306_v5 = vpop.eup %1305  ;;  %v987_v0 = vadd.f32 -1.0, %v1304_v35  ;;  %v692_v22 = vsel %vm532_vm13, %v1617_v9, %v984_v40 }
 0x122   : > { %v1308_v54 = vpop.eup %1307  ;;  %v1000_v14 = vadd.f32 -1.0, %v1306_v5 }
 0x123   : > { %v695_v6 = vsel %vm535_vm10, %v1629_v61, %v987_v0  ;;  %v1003_v28 = vadd.f32 -1.0, %v1308_v54 }
 0x124   : > { %v1108_v7 = vpack.c.bf16 %v695_v6, %v694_v27 }
 0x125   : > { %v1310_v2 = vpop.eup %1309  ;;  %v711_v15 = vsel %vm551_vm12, %v1633_v12, %v1003_v28  ;;  %v708_v12 = vsel %vm548_vm15, %v1624_v16, %v1000_v14 }
 0x126   : > { %v1312_v43 = vpop.eup %1311  ;;  %1156 = vst [vmem:[%s1502_s27 + $0x38] sm:$0xff] %v1108_v7   ;;  %v1148_v30 = vpack.c.bf16 %v711_v15, %v710_v45  ;;  %v985_v60 = vadd.f32 -1.0, %v1310_v2 }
 0x127   : > { %v1001_v61 = vadd.f32 -1.0, %v1312_v43 }
 0x128   : > { %1164 = vst [vmem:[%s1502_s27 + $0x78] sm:$0xff] %v1148_v30   ;;  %v693_v8 = vsel %vm533_vm14, %v1649_v52, %v985_v60 }
 0x129   : > { %v1103_v25 = vpack.c.bf16 %v693_v8, %v692_v22  ;;  %v709_v1 = vsel %vm549_vm0, %v1653_v41, %v1001_v61 }
 0x12a   : > { %v1143_v31 = vpack.c.bf16 %v709_v1, %v708_v12 }
 0x12b   : > { %1155 = vst [vmem:[%s1502_s27 + $0x30] sm:$0xff] %v1103_v25  }
 0x12c   : > { %1163 = vst [vmem:[%s1502_s27 + $0x70] sm:$0xff] %v1143_v31  }
 0x12d PF: > { %s13_s12 = sadd.s32 1, %s1319_s12  }
 0x12e   : > { %p10_p4 = scmp.ge.s32.totalorder %s13_s12, 4  }
 0x130   :  { %12 = sbr.rel (!%p10_p4) target bundleno = 1 (0x1), region = 62 }

// kernel: vae2d_forward.11
= control target key start
LH: loop header
LB: loop body
LE: loop exit
PB: predicated region body
PF: predicated region fallthrough
CT: control target
= control target key end

     0   :  { %s1556_s1 = inlined_call_operand.vmem [shape: bf16[512,128], index: 1, kind: input, shape index: {}]   ;;  %s1557_s0 = inlined_call_operand.vmem [shape: bf16[128,512], index: 0, kind: input, shape index: {}]   ;;  %s1558_s2 = inlined_call_operand.vmem [shape: f32[1,128], index: 2, kind: input, shape index: {}]   ;;  %s1559_s3 = inlined_call_operand.vmem [shape: bf16[128,128], index: 3, kind: output, shape index: {}]  }
   0x1   :  { %v1132_v0 = vld [vmem:[%s1556_s1 + $0x40] sm:$0xff]   ;;  %v1136_v4 = vld [vmem:[%s1556_s1 + $0x48] sm:$0xff]   ;;  %v1140_v8 = vld [vmem:[%s1556_s1 + $0x50] sm:$0xff]  }
   0x2   :  { %v1133_v1 = vld [vmem:[%s1556_s1 + $0xc0] sm:$0xff]   ;;  %1004 = vmatprep.subr.bf16.mxu0 %v1132_v0  ;;  %v1137_v5 = vld [vmem:[%s1556_s1 + $0xc8] sm:$0xff]   ;;  %v1141_v9 = vld [vmem:[%s1556_s1 + $0xd0] sm:$0xff]  }
   0x3   :  { %v1134_v2 = vld [vmem:[%s1556_s1] sm:$0xff]   ;;  %1068 = vmatprep.subr.bf16.mxu1 %v1133_v1  ;;  %v1138_v6 = vld [vmem:[%s1556_s1 + $0x8] sm:$0xff]   ;;  %v1142_v10 = vld [vmem:[%s1556_s1 + $0x10] sm:$0xff]  }
   0x4   :  { %v1135_v3 = vld [vmem:[%s1556_s1 + $0x80] sm:$0xff]   ;;  %1005 = vmatpush3.bf16.msra.mxu0 %v1134_v2  ;;  %v1139_v7 = vld [vmem:[%s1556_s1 + $0x88] sm:$0xff]   ;;  %v1143_v11 = vld [vmem:[%s1556_s1 + $0x90] sm:$0xff]  }
   0x5   :  { %1069 = vmatpush3.bf16.msra.mxu1 %v1135_v3  ;;  %1006 = vmatprep.subr.bf16.mxu0 %v1136_v4  ;;  %v1144_v12 = vld [vmem:[%s1556_s1 + $0x58] sm:$0xff]   ;;  %v1148_v16 = vld [vmem:[%s1556_s1 + $0x60] sm:$0xff]   ;;  %v1152_v20 = vld [vmem:[%s1556_s1 + $0x68] sm:$0xff]  }
   0x6   :  { %1070 = vmatprep.subr.bf16.mxu1 %v1137_v5  ;;  %v1145_v13 = vld [vmem:[%s1556_s1 + $0xd8] sm:$0xff]   ;;  %v1149_v17 = vld [vmem:[%s1556_s1 + $0xe0] sm:$0xff]   ;;  %v1153_v21 = vld [vmem:[%s1556_s1 + $0xe8] sm:$0xff]  }
   0x7   :  { %v1146_v14 = vld [vmem:[%s1556_s1 + $0x18] sm:$0xff]   ;;  %v1150_v18 = vld [vmem:[%s1556_s1 + $0x20] sm:$0xff]   ;;  %v1154_v22 = vld [vmem:[%s1556_s1 + $0x28] sm:$0xff]  }
   0x8   :  { %1007 = vmatpush3.bf16.msra.mxu0 %v1138_v6  ;;  %v1147_v15 = vld [vmem:[%s1556_s1 + $0x98] sm:$0xff]   ;;  %v1151_v19 = vld [vmem:[%s1556_s1 + $0xa0] sm:$0xff]   ;;  %v1155_v23 = vld [vmem:[%s1556_s1 + $0xa8] sm:$0xff]  }
   0x9   :  { %1071 = vmatpush3.bf16.msra.mxu1 %v1139_v7  ;;  %1008 = vmatprep.subr.bf16.mxu0 %v1140_v8  ;;  %v1156_v24 = vld [vmem:[%s1556_s1 + $0x70] sm:$0xff]   ;;  %v1160_v28 = vld [vmem:[%s1556_s1 + $0x78] sm:$0xff]   ;;  %v1459_v2 = vld [vmem:[%s1558_s2] ss:$0 sm:$0xff] }
   0xa   :  { %1072 = vmatprep.subr.bf16.mxu1 %v1141_v9  ;;  %v1157_v25 = vld [vmem:[%s1556_s1 + $0xf0] sm:$0xff]   ;;  %v1161_v29 = vld [vmem:[%s1556_s1 + $0xf8] sm:$0xff]  }
   0xb   :  { %v1158_v26 = vld [vmem:[%s1556_s1 + $0x30] sm:$0xff]   ;;  %v1162_v30 = vld [vmem:[%s1556_s1 + $0x38] sm:$0xff]  }
   0xc   :  { %1009 = vmatpush3.bf16.msra.mxu0 %v1142_v10  ;;  %v1159_v27 = vld [vmem:[%s1556_s1 + $0xb0] sm:$0xff]   ;;  %v1163_v31 = vld [vmem:[%s1556_s1 + $0xb8] sm:$0xff]  }
   0xd   :  { %1073 = vmatpush3.bf16.msra.mxu1 %v1143_v11  ;;  %1010 = vmatprep.subr.bf16.mxu0 %v1144_v12  ;;  %v1164_v32 = vld [vmem:[%s1557_s0] ss:$16 sps:$4 sm:$0xff]   ;;  %v1166_v33 = vld [vmem:[%s1557_s0 + $0x4] ss:$16 sps:$4 sm:$0xff]   ;;  %v1167_v34 = vld [vmem:[%s1557_s0 + $0x8] ss:$16 sps:$4 sm:$0xff]  }
   0xe   :  { %1074 = vmatprep.subr.bf16.mxu1 %v1145_v13  ;;  %v1169_v35 = vld [vmem:[%s1557_s0 + $0xc] ss:$16 sps:$4 sm:$0xff]   ;;  %502 = vmatprep.mubr.bf16.mxu0 %v1166_v33  ;;  %v1170_v36 = vld [vmem:[%s1557_s0 + $0x24] ss:$16 sps:$4 sm:$0xff]   ;;  %v1174_v38 = vld [vmem:[%s1557_s0 + $0x20] ss:$16 sps:$4 sm:$0xff]  }
   0xf   :  { %599 = vmatprep.mubr.bf16.mxu1 %v1169_v35  ;;  %v1172_v37 = vld [vmem:[%s1557_s0 + $0x2c] ss:$16 sps:$4 sm:$0xff]   ;;  %v1175_v39 = vld [vmem:[%s1557_s0 + $0x28] ss:$16 sps:$4 sm:$0xff]   ;;  %v1176_v40 = vld [vmem:[%s1557_s0 + $0x44] ss:$16 sps:$4 sm:$0xff]  }
  0x10   :  { %1011 = vmatpush3.bf16.msra.mxu0 %v1146_v14  ;;  %v1178_v41 = vld [vmem:[%s1557_s0 + $0x4c] ss:$16 sps:$4 sm:$0xff]   ;;  %v1180_v42 = vld [vmem:[%s1557_s0 + $0x40] ss:$16 sps:$4 sm:$0xff]   ;;  %v1181_v43 = vld [vmem:[%s1557_s0 + $0x48] ss:$16 sps:$4 sm:$0xff]  }
  0x11   :  { %1075 = vmatpush3.bf16.msra.mxu1 %v1147_v15  ;;  %1012 = vmatprep.subr.bf16.mxu0 %v1148_v16  ;;  %v1182_v44 = vld [vmem:[%s1557_s0 + $0x64] ss:$16 sps:$4 sm:$0xff]   ;;  %v1184_v45 = vld [vmem:[%s1557_s0 + $0x6c] ss:$16 sps:$4 sm:$0xff]   ;;  %v1186_v46 = vld [vmem:[%s1557_s0 + $0x60] ss:$16 sps:$4 sm:$0xff]  }
  0x12   :  { %1076 = vmatprep.subr.bf16.mxu1 %v1149_v17  ;;  %v1187_v47 = vld [vmem:[%s1557_s0 + $0x68] ss:$16 sps:$4 sm:$0xff]   ;;  %v1188_v48 = vld [vmem:[%s1557_s0 + $0x84] ss:$16 sps:$4 sm:$0xff]   ;;  %v1190_v49 = vld [vmem:[%s1557_s0 + $0x8c] ss:$16 sps:$4 sm:$0xff]  }
  0x13   :  { %v1192_v50 = vld [vmem:[%s1557_s0 + $0x80] ss:$16 sps:$4 sm:$0xff]   ;;  %v1193_v51 = vld [vmem:[%s1557_s0 + $0x88] ss:$16 sps:$4 sm:$0xff]   ;;  %v1194_v52 = vld [vmem:[%s1557_s0 + $0xa4] ss:$16 sps:$4 sm:$0xff]  }
  0x14   :  { %1013 = vmatpush3.bf16.msra.mxu0 %v1150_v18  ;;  %v1196_v53 = vld [vmem:[%s1557_s0 + $0xac] ss:$16 sps:$4 sm:$0xff]   ;;  %v1198_v54 = vld [vmem:[%s1557_s0 + $0xa0] ss:$16 sps:$4 sm:$0xff]   ;;  %v1199_v55 = vld [vmem:[%s1557_s0 + $0xa8] ss:$16 sps:$4 sm:$0xff]  }
  0x15   :  { %1077 = vmatpush3.bf16.msra.mxu1 %v1151_v19  ;;  %1014 = vmatprep.subr.bf16.mxu0 %v1152_v20  ;;  %v1200_v56 = vld [vmem:[%s1557_s0 + $0xc4] ss:$16 sps:$4 sm:$0xff]   ;;  %v1202_v57 = vld [vmem:[%s1557_s0 + $0xcc] ss:$16 sps:$4 sm:$0xff]   ;;  %v1204_v58 = vld [vmem:[%s1557_s0 + $0xc0] ss:$16 sps:$4 sm:$0xff]  }
  0x16   :  { %1078 = vmatprep.subr.bf16.mxu1 %v1153_v21  ;;  %v1205_v59 = vld [vmem:[%s1557_s0 + $0xc8] ss:$16 sps:$4 sm:$0xff]   ;;  %v1206_v60 = vld [vmem:[%s1557_s0 + $0xe4] ss:$16 sps:$4 sm:$0xff]   ;;  %v1208_v61 = vld [vmem:[%s1557_s0 + $0xec] ss:$16 sps:$4 sm:$0xff]  }
  0x17   :  { %v1210_v62 = vld [vmem:[%s1557_s0 + $0xe0] ss:$16 sps:$4 sm:$0xff]   ;;  %v1211_v63 = vld [vmem:[%s1557_s0 + $0xe8] ss:$16 sps:$4 sm:$0xff]  }
  0x18   :  { %1015 = vmatpush3.bf16.msra.mxu0 %v1154_v22 }
  0x19   :  { %1079 = vmatpush3.bf16.msra.mxu1 %v1155_v23  ;;  %1016 = vmatprep.subr.bf16.mxu0 %v1156_v24 }
  0x1a   :  { %1080 = vmatprep.subr.bf16.mxu1 %v1157_v25 }
  0x1c   :  { %1017 = vmatpush3.bf16.msra.mxu0 %v1158_v26 }
  0x1d   :  { %1081 = vmatpush3.bf16.msra.mxu1 %v1159_v27  ;;  %1018 = vmatprep.subr.bf16.mxu0 %v1160_v28 }
  0x1e   :  { %1082 = vmatprep.subr.bf16.mxu1 %v1161_v29 }
  0x20   :  { %1019 = vmatpush3.bf16.msra.mxu0 %v1162_v30 }
  0x21   :  { %1083 = vmatpush3.bf16.msra.mxu1 %v1163_v31 }
  0x23   :  { %503 = vmatmul.mubr.bf16.vlgmr.msra.gmra.mrb[0].mxu0 %v1164_v32 }
  0x24   :  { %600 = vmatmul.mubr.bf16.vlgmr.msra.gmra.mrb[0].mxu1 %v1167_v34  ;;  %510 = vmatprep.mubr.bf16.mxu0 %v1170_v36 }
  0x25   :  { %607 = vmatprep.mubr.bf16.mxu1 %v1172_v37 }
  0x2b   :  { %511 = vmatmul.mubr.bf16.gmra.mrb[4].mxu0 %v1174_v38 }
  0x2c   :  { %608 = vmatmul.mubr.bf16.gmra.mrb[4].mxu1 %v1175_v39  ;;  %518 = vmatprep.mubr.bf16.mxu0 %v1176_v40 }
  0x2d   :  { %615 = vmatprep.mubr.bf16.mxu1 %v1178_v41 }
  0x33   :  { %519 = vmatmul.mubr.bf16.gmra.mrb[8].mxu0 %v1180_v42 }
  0x34   :  { %616 = vmatmul.mubr.bf16.gmra.mrb[8].mxu1 %v1181_v43  ;;  %526 = vmatprep.mubr.bf16.mxu0 %v1182_v44 }
  0x35   :  { %623 = vmatprep.mubr.bf16.mxu1 %v1184_v45 }
  0x3b   :  { %527 = vmatmul.mubr.bf16.gmra.mrb[12].mxu0 %v1186_v46 }
  0x3c   :  { %624 = vmatmul.mubr.bf16.gmra.mrb[12].mxu1 %v1187_v47  ;;  %534 = vmatprep.mubr.bf16.mxu0 %v1188_v48 }
  0x3d   :  { %631 = vmatprep.mubr.bf16.mxu1 %v1190_v49 }
  0x43   :  { %535 = vmatmul.mubr.bf16.gmra.mrb[16].mxu0 %v1192_v50 }
  0x44   :  { %632 = vmatmul.mubr.bf16.gmra.mrb[16].mxu1 %v1193_v51  ;;  %542 = vmatprep.mubr.bf16.mxu0 %v1194_v52 }
  0x45   :  { %639 = vmatprep.mubr.bf16.mxu1 %v1196_v53 }
  0x4b   :  { %543 = vmatmul.mubr.bf16.gmra.mrb[20].mxu0 %v1198_v54 }
  0x4c   :  { %640 = vmatmul.mubr.bf16.gmra.mrb[20].mxu1 %v1199_v55  ;;  %550 = vmatprep.mubr.bf16.mxu0 %v1200_v56 }
  0x4d   :  { %647 = vmatprep.mubr.bf16.mxu1 %v1202_v57 }
  0x53   :  { %551 = vmatmul.mubr.bf16.gmra.mrb[24].mxu0 %v1204_v58 }
  0x54   :  { %648 = vmatmul.mubr.bf16.gmra.mrb[24].mxu1 %v1205_v59  ;;  %558 = vmatprep.mubr.bf16.mxu0 %v1206_v60 }
  0x55   :  { %655 = vmatprep.mubr.bf16.mxu1 %v1208_v61 }
  0x5b   :  { %559 = vmatmul.mubr.bf16.gmra.mrb[28].mxu0 %v1210_v62 }
  0x5c   :  { %656 = vmatmul.mubr.bf16.gmra.mrb[28].mxu1 %v1211_v63 }
  0xf6   :  { %v1020_v0 = vpop.f32.mrb[0].mxu0 }
  0xf7   :  { %v1084_v1 = vpop.f32.mrb[0].mxu1  ;;  %v1021_v3 = vpop.f32.mrb[1].mxu0 }
  0xf8   :  { %v1022_v4 = vadd.f32 %v1021_v3, %v1020_v0  ;;  %v1085_v5 = vpop.f32.mrb[1].mxu1  ;;  %v1023_v6 = vpop.f32.mrb[2].mxu0 }
  0xf9   :  { %v1086_v7 = vadd.f32 %v1085_v5, %v1084_v1  ;;  %v1087_v8 = vpop.f32.mrb[2].mxu1  ;;  %v1024_v9 = vpop.f32.mrb[3].mxu0 }
  0xfa   :  { %v505_v10 = vadd.f32 %v1022_v4, %v1459_v2  ;;  %v1025_v11 = vadd.f32 %v1024_v9, %v1023_v6  ;;  %v1088_v12 = vpop.f32.mrb[3].mxu1 }
  0xfb   :  { %v1089_v13 = vadd.f32 %v1088_v12, %v1087_v8 }
  0xfc   :  { %v1462_v14 = vadd.f32 %v1086_v7, %v505_v10  ;;  %v508_v15 = vadd.f32 %v1025_v11, %v1459_v2 }
  0xfe   :  { %v680_v16 = vmin.f32 %v1462_v14, 0.0  ;;  %v605_v17 = vadd.f32 %v1089_v13, %v508_v15  ;;  %v1026_v18 = vpop.f32.mrb[4].mxu0  ;;  %vm664_vm0 = vcmp.gt.f32.partialorder %v1462_v14, 0.0 }
  0xff   :  { %v1090_v19 = vpop.f32.mrb[4].mxu1  ;;  %v1027_v20 = vpop.f32.mrb[5].mxu0 }
 0x100   :  { %v696_v21 = vmul.f32 1.442695, %v680_v16  ;;  %v681_v22 = vmin.f32 %v605_v17, 0.0  ;;  %v1028_v23 = vadd.f32 %v1027_v20, %v1026_v18  ;;  %v1091_v24 = vpop.f32.mrb[5].mxu1  ;;  %v1029_v25 = vpop.f32.mrb[6].mxu0  ;;  %vm665_vm1 = vcmp.gt.f32.partialorder %v605_v17, 0.0 }
 0x101   :  { %v1092_v26 = vadd.f32 %v1091_v24, %v1090_v19  ;;  %v1093_v27 = vpop.f32.mrb[6].mxu1  ;;  %v1030_v28 = vpop.f32.mrb[7].mxu0 }
 0x102   :  { %1212 = vpow2.f32 %v696_v21  ;;  %v698_v29 = vmul.f32 1.442695, %v681_v22  ;;  %v513_v30 = vadd.f32 %v1028_v23, %v1459_v2  ;;  %v1031_v31 = vadd.f32 %v1030_v28, %v1029_v25  ;;  %v1094_v32 = vpop.f32.mrb[7].mxu1 }
 0x103   :  { %v1095_v33 = vadd.f32 %v1094_v32, %v1093_v27 }
 0x104   :  { %1214 = vpow2.f32 %v698_v29  ;;  %v1467_v34 = vadd.f32 %v1092_v26, %v513_v30  ;;  %v516_v35 = vadd.f32 %v1031_v31, %v1459_v2 }
 0x106   :  { %v682_v36 = vmin.f32 %v1467_v34, 0.0  ;;  %v1471_v37 = vadd.f32 %v1095_v33, %v516_v35  ;;  %v1032_v38 = vpop.f32.mrb[8].mxu0  ;;  %vm666_vm2 = vcmp.gt.f32.partialorder %v1467_v34, 0.0 }
 0x107   :  { %v1096_v39 = vpop.f32.mrb[8].mxu1  ;;  %v1033_v40 = vpop.f32.mrb[9].mxu0 }
 0x108   :  { %v700_v41 = vmul.f32 1.442695, %v682_v36  ;;  %v683_v42 = vmin.f32 %v1471_v37, 0.0  ;;  %v1034_v43 = vadd.f32 %v1033_v40, %v1032_v38  ;;  %v1097_v44 = vpop.f32.mrb[9].mxu1  ;;  %v1035_v45 = vpop.f32.mrb[10].mxu0  ;;  %vm667_vm3 = vcmp.gt.f32.partialorder %v1471_v37, 0.0 }
 0x109   :  { %v1098_v46 = vadd.f32 %v1097_v44, %v1096_v39  ;;  %v1099_v47 = vpop.f32.mrb[10].mxu1  ;;  %v1036_v48 = vpop.f32.mrb[11].mxu0 }
 0x10a   :  { %1216 = vpow2.f32 %v700_v41  ;;  %v702_v49 = vmul.f32 1.442695, %v683_v42  ;;  %v521_v50 = vadd.f32 %v1034_v43, %v1459_v2  ;;  %v1037_v51 = vadd.f32 %v1036_v48, %v1035_v45  ;;  %v1100_v52 = vpop.f32.mrb[11].mxu1 }
 0x10b   :  { %v1101_v53 = vadd.f32 %v1100_v52, %v1099_v47 }
 0x10c   :  { %v1213_v54 = vpop.eup %1212  ;;  %1218 = vpow2.f32 %v702_v49  ;;  %v1475_v55 = vadd.f32 %v1098_v46, %v521_v50  ;;  %v524_v56 = vadd.f32 %v1037_v51, %v1459_v2 }
 0x10d   :  { %v909_v57 = vadd.f32 -1.0, %v1213_v54 }
 0x10e   :  { %v1215_v58 = vpop.eup %1214  ;;  %v684_v59 = vmin.f32 %v1475_v55, 0.0  ;;  %v1479_v60 = vadd.f32 %v1101_v53, %v524_v56  ;;  %v1038_v61 = vpop.f32.mrb[12].mxu0  ;;  %vm668_vm4 = vcmp.gt.f32.partialorder %v1475_v55, 0.0 }
 0x10f   :  { %v910_v62 = vadd.f32 -1.0, %v1215_v58  ;;  %v1102_v63 = vpop.f32.mrb[12].mxu1  ;;  %v1039_v0 = vpop.f32.mrb[13].mxu0  ;;  %v744_v7 = vsel %vm664_vm0, %v1462_v14, %v909_v57 }
 0x110   :  { %v704_v1 = vmul.f32 1.442695, %v684_v59  ;;  %v685_v3 = vmin.f32 %v1479_v60, 0.0  ;;  %v1040_v4 = vadd.f32 %v1039_v0, %v1038_v61  ;;  %v1103_v5 = vpop.f32.mrb[13].mxu1  ;;  %v1041_v6 = vpop.f32.mrb[14].mxu0  ;;  %vm669_vm5 = vcmp.gt.f32.partialorder %v1479_v60, 0.0 }
 0x111   :  { %v745_v8 = vsel %vm665_vm1, %v605_v17, %v910_v62  ;;  %v1104_v9 = vadd.f32 %v1103_v5, %v1102_v63  ;;  %v1105_v10 = vpop.f32.mrb[14].mxu1  ;;  %v1042_v11 = vpop.f32.mrb[15].mxu0 }
 0x112   :  { %v960_v12 = vpack.c.bf16 %v745_v8, %v744_v7  ;;  %1220 = vpow2.f32 %v704_v1  ;;  %v706_v13 = vmul.f32 1.442695, %v685_v3  ;;  %v529_v15 = vadd.f32 %v1040_v4, %v1459_v2  ;;  %v1106_v16 = vpop.f32.mrb[15].mxu1 }
 0x113   :  { %v1043_v18 = vadd.f32 %v1042_v11, %v1041_v6  ;;  %v1107_v19 = vadd.f32 %v1106_v16, %v1105_v10 }
 0x114   :  { %v1217_v20 = vpop.eup %1216  ;;  %961 = vst [vmem:[%s1559_s3] sm:$0xff] %v960_v12   ;;  %1222 = vpow2.f32 %v706_v13  ;;  %v1488_v21 = vadd.f32 %v1104_v9, %v529_v15 }
 0x115   :  { %v911_v14 = vadd.f32 -1.0, %v1217_v20  ;;  %v532_v17 = vadd.f32 %v1043_v18, %v1459_v2 }
 0x116   :  { %v1219_v22 = vpop.eup %1218  ;;  %v686_v23 = vmin.f32 %v1488_v21, 0.0  ;;  %v1044_v24 = vpop.f32.mrb[16].mxu0  ;;  %vm670_vm6 = vcmp.gt.f32.partialorder %v1488_v21, 0.0 }
 0x117   :  { %v912_v25 = vadd.f32 -1.0, %v1219_v22  ;;  %v1492_v26 = vadd.f32 %v1107_v19, %v532_v17  ;;  %v1108_v27 = vpop.f32.mrb[16].mxu1  ;;  %v1045_v28 = vpop.f32.mrb[17].mxu0  ;;  %v746_v33 = vsel %vm666_vm2, %v1467_v34, %v911_v14 }
 0x118   :  { %v708_v29 = vmul.f32 1.442695, %v686_v23  ;;  %v1046_v30 = vadd.f32 %v1045_v28, %v1044_v24  ;;  %v1109_v31 = vpop.f32.mrb[17].mxu1  ;;  %v1047_v32 = vpop.f32.mrb[18].mxu0 }
 0x119   :  { %v747_v35 = vsel %vm667_vm3, %v1471_v37, %v912_v25  ;;  %v687_v36 = vmin.f32 %v1492_v26, 0.0  ;;  %v1110_v38 = vadd.f32 %v1109_v31, %v1108_v27  ;;  %v1111_v39 = vpop.f32.mrb[18].mxu1  ;;  %v1048_v40 = vpop.f32.mrb[19].mxu0  ;;  %vm671_vm7 = vcmp.gt.f32.partialorder %v1492_v26, 0.0 }
 0x11a   :  { %v965_v41 = vpack.c.bf16 %v747_v35, %v746_v33  ;;  %1224 = vpow2.f32 %v708_v29  ;;  %v537_v42 = vadd.f32 %v1046_v30, %v1459_v2  ;;  %v1049_v43 = vadd.f32 %v1048_v40, %v1047_v32  ;;  %v1112_v44 = vpop.f32.mrb[19].mxu1 }
 0x11b   :  { %v710_v45 = vmul.f32 1.442695, %v687_v36  ;;  %v1113_v46 = vadd.f32 %v1112_v44, %v1111_v39 }
 0x11c   :  { %v1221_v47 = vpop.eup %1220  ;;  %997 = vst [vmem:[%s1559_s3 + $0x8] sm:$0xff] %v965_v41   ;;  %v1503_v34 = vadd.f32 %v1110_v38, %v537_v42  ;;  %v540_v37 = vadd.f32 %v1049_v43, %v1459_v2 }
 0x11d   :  { %v913_v48 = vadd.f32 -1.0, %v1221_v47  ;;  %1226 = vpow2.f32 %v710_v45 }
 0x11e   :  { %v1223_v49 = vpop.eup %1222  ;;  %v688_v50 = vmin.f32 %v1503_v34, 0.0  ;;  %v1507_v51 = vadd.f32 %v1113_v46, %v540_v37  ;;  %v1050_v52 = vpop.f32.mrb[20].mxu0  ;;  %vm672_vm8 = vcmp.gt.f32.partialorder %v1503_v34, 0.0 }
 0x11f   :  { %v914_v53 = vadd.f32 -1.0, %v1223_v49  ;;  %v1114_v54 = vpop.f32.mrb[20].mxu1  ;;  %v1051_v56 = vpop.f32.mrb[21].mxu0  ;;  %v748_v63 = vsel %vm668_vm4, %v1475_v55, %v913_v48 }
 0x120   :  { %v712_v57 = vmul.f32 1.442695, %v688_v50  ;;  %v689_v58 = vmin.f32 %v1507_v51, 0.0  ;;  %v1052_v59 = vadd.f32 %v1051_v56, %v1050_v52  ;;  %v1115_v61 = vpop.f32.mrb[21].mxu1  ;;  %v1053_v62 = vpop.f32.mrb[22].mxu0  ;;  %vm673_vm9 = vcmp.gt.f32.partialorder %v1507_v51, 0.0 }
 0x121   :  { %v749_v0 = vsel %vm669_vm5, %v1479_v60, %v914_v53  ;;  %v1116_v1 = vadd.f32 %v1115_v61, %v1114_v54  ;;  %v1117_v3 = vpop.f32.mrb[22].mxu1  ;;  %v1054_v4 = vpop.f32.mrb[23].mxu0 }
 0x122   :  { %v970_v5 = vpack.c.bf16 %v749_v0, %v748_v63  ;;  %1228 = vpow2.f32 %v712_v57  ;;  %v714_v6 = vmul.f32 1.442695, %v689_v58  ;;  %v545_v7 = vadd.f32 %v1052_v59, %v1459_v2  ;;  %v1118_v8 = vpop.f32.mrb[23].mxu1 }
 0x123   :  { %v1055_v9 = vadd.f32 %v1054_v4, %v1053_v62  ;;  %v1119_v10 = vadd.f32 %v1118_v8, %v1117_v3 }
 0x124   :  { %v1225_v11 = vpop.eup %1224  ;;  %998 = vst [vmem:[%s1559_s3 + $0x10] sm:$0xff] %v970_v5   ;;  %1230 = vpow2.f32 %v714_v6  ;;  %v1518_v55 = vadd.f32 %v1116_v1, %v545_v7 }
 0x125   :  { %v915_v60 = vadd.f32 -1.0, %v1225_v11  ;;  %v548_v12 = vadd.f32 %v1055_v9, %v1459_v2 }
 0x126   :  { %v690_v13 = vmin.f32 %v1518_v55, 0.0  ;;  %v1056_v15 = vpop.f32.mrb[24].mxu0  ;;  %vm674_vm10 = vcmp.gt.f32.partialorder %v1518_v55, 0.0 }
 0x127   :  { %v1227_v16 = vpop.eup %1226  ;;  %v1522_v18 = vadd.f32 %v1119_v10, %v548_v12  ;;  %v1120_v19 = vpop.f32.mrb[24].mxu1  ;;  %v750_v25 = vsel %vm670_vm6, %v1488_v21, %v915_v60 }
 0x128   :  { %v1057_v20 = vpop.f32.mrb[25].mxu0  ;;  %v916_v14 = vadd.f32 -1.0, %v1227_v16  ;;  %v716_v17 = vmul.f32 1.442695, %v690_v13  ;;  %v1121_v23 = vpop.f32.mrb[25].mxu1 }
 0x129   :  { %v1058_v22 = vadd.f32 %v1057_v20, %v1056_v15  ;;  %v1059_v24 = vpop.f32.mrb[26].mxu0  ;;  %v691_v27 = vmin.f32 %v1522_v18, 0.0  ;;  %v1122_v28 = vadd.f32 %v1121_v23, %v1120_v19  ;;  %v1123_v29 = vpop.f32.mrb[26].mxu1  ;;  %vm675_vm11 = vcmp.gt.f32.partialorder %v1522_v18, 0.0 }
 0x12a   :  { %v1060_v30 = vpop.f32.mrb[27].mxu0  ;;  %v751_v31 = vsel %vm671_vm7, %v1492_v26, %v916_v14  ;;  %1232 = vpow2.f32 %v716_v17  ;;  %v1124_v35 = vpop.f32.mrb[27].mxu1 }
 0x12b   :  { %v553_v32 = vadd.f32 %v1058_v22, %v1459_v2  ;;  %v1061_v33 = vadd.f32 %v1060_v30, %v1059_v24  ;;  %v975_v36 = vpack.c.bf16 %v751_v31, %v750_v25  ;;  %v718_v38 = vmul.f32 1.442695, %v691_v27 }
 0x12c   :  { %v1125_v39 = vadd.f32 %v1124_v35, %v1123_v29  ;;  %v1229_v40 = vpop.eup %1228 }
 0x12d   :  { %v650_v41 = vadd.f32 %v1122_v28, %v553_v32  ;;  %v556_v21 = vadd.f32 %v1061_v33, %v1459_v2  ;;  %999 = vst [vmem:[%s1559_s3 + $0x18] sm:$0xff] %v975_v36   ;;  %v917_v42 = vadd.f32 -1.0, %v1229_v40  ;;  %1234 = vpow2.f32 %v718_v38 }
 0x12e   :  { %v1231_v43 = vpop.eup %1230  ;;  %v1062_v45 = vpop.f32.mrb[28].mxu0 }
 0x12f   :  { %v692_v26 = vmin.f32 %v650_v41, 0.0  ;;  %v653_v44 = vadd.f32 %v1125_v39, %v556_v21  ;;  %v918_v46 = vadd.f32 -1.0, %v1231_v43  ;;  %v1126_v47 = vpop.f32.mrb[28].mxu1  ;;  %v1063_v37 = vpop.f32.mrb[29].mxu0  ;;  %v752_v54 = vsel %vm672_vm8, %v1503_v34, %v917_v42 }
 0x130   :  { %v1064_v50 = vadd.f32 %v1063_v37, %v1062_v45  ;;  %v1127_v52 = vpop.f32.mrb[29].mxu1  ;;  %v1065_v53 = vpop.f32.mrb[30].mxu0  ;;  %vm676_vm12 = vcmp.gt.f32.partialorder %v650_v41, 0.0 }
 0x131   :  { %v720_v48 = vmul.f32 1.442695, %v692_v26  ;;  %v693_v49 = vmin.f32 %v653_v44, 0.0  ;;  %v753_v56 = vsel %vm673_vm9, %v1507_v51, %v918_v46  ;;  %v1128_v57 = vadd.f32 %v1127_v52, %v1126_v47  ;;  %v1129_v58 = vpop.f32.mrb[30].mxu1  ;;  %v1066_v59 = vpop.f32.mrb[31].mxu0 }
 0x132   :  { %v980_v61 = vpack.c.bf16 %v753_v56, %v752_v54  ;;  %v561_v63 = vadd.f32 %v1064_v50, %v1459_v2  ;;  %v1130_v0 = vpop.f32.mrb[31].mxu1  ;;  %v1067_v1 = vadd.f32 %v1066_v59, %v1065_v53  ;;  %vm677_vm13 = vcmp.gt.f32.partialorder %v653_v44, 0.0 }
 0x133   :  { %1236 = vpow2.f32 %v720_v48  ;;  %v722_v62 = vmul.f32 1.442695, %v693_v49  ;;  %v1131_v3 = vadd.f32 %v1130_v0, %v1129_v58 }
 0x134   :  { %v1233_v4 = vpop.eup %1232  ;;  %1000 = vst [vmem:[%s1559_s3 + $0x20] sm:$0xff] %v980_v61   ;;  %v658_v34 = vadd.f32 %v1128_v57, %v561_v63  ;;  %v564_v51 = vadd.f32 %v1067_v1, %v1459_v2 }
 0x135   :  { %1238 = vpow2.f32 %v722_v62  ;;  %v919_v5 = vadd.f32 -1.0, %v1233_v4 }
 0x136   :  { %v694_v6 = vmin.f32 %v658_v34, 0.0  ;;  %v661_v8 = vadd.f32 %v1131_v3, %v564_v51  ;;  %vm678_vm14 = vcmp.gt.f32.partialorder %v658_v34, 0.0 }
 0x137   :  { %v1235_v7 = vpop.eup %1234  ;;  %v754_v60 = vsel %vm674_vm10, %v1518_v55, %v919_v5 }
 0x138   :  { %v920_v9 = vadd.f32 -1.0, %v1235_v7  ;;  %v724_v10 = vmul.f32 1.442695, %v694_v6  ;;  %v695_v11 = vmin.f32 %v661_v8, 0.0  ;;  %vm679_vm15 = vcmp.gt.f32.partialorder %v661_v8, 0.0 }
 0x13a   :  { %v755_v12 = vsel %vm675_vm11, %v1522_v18, %v920_v9  ;;  %1240 = vpow2.f32 %v724_v10  ;;  %v726_v15 = vmul.f32 1.442695, %v695_v11 }
 0x13b   :  { %v985_v13 = vpack.c.bf16 %v755_v12, %v754_v60 }
 0x13c   :  { %1242 = vpow2.f32 %v726_v15 }
 0x13d   :  { %v1237_v16 = vpop.eup %1236  ;;  %1001 = vst [vmem:[%s1559_s3 + $0x28] sm:$0xff] %v985_v13  }
 0x13e   :  { %v921_v2 = vadd.f32 -1.0, %v1237_v16 }
 0x13f   :  { %v1239_v19 = vpop.eup %1238 }
 0x140   :  { %v922_v20 = vadd.f32 -1.0, %v1239_v19  ;;  %v756_v14 = vsel %vm676_vm12, %v650_v41, %v921_v2 }
 0x142   :  { %v757_v17 = vsel %vm677_vm13, %v653_v44, %v922_v20 }
 0x143   :  { %v990_v22 = vpack.c.bf16 %v757_v17, %v756_v14 }
 0x144   :  { %v1241_v55 = vpop.eup %1240 }
 0x145   :  { %1002 = vst [vmem:[%s1559_s3 + $0x30] sm:$0xff] %v990_v22   ;;  %v923_v18 = vadd.f32 -1.0, %v1241_v55 }
 0x146   :  { %v1243_v23 = vpop.eup %1242 }
 0x147   :  { %v924_v24 = vadd.f32 -1.0, %v1243_v23  ;;  %v758_v25 = vsel %vm678_vm14, %v658_v34, %v923_v18 }
 0x149   :  { %v759_v27 = vsel %vm679_vm15, %v661_v8, %v924_v24 }
 0x14a   :  { %v995_v28 = vpack.c.bf16 %v759_v27, %v758_v25 }
 0x14c   :  { %1003 = vst [vmem:[%s1559_s3 + $0x38] sm:$0xff] %v995_v28  }

// kernel: vae2d_forward.12
= control target key start
LH: loop header
LB: loop body
LE: loop exit
PB: predicated region body
PF: predicated region fallthrough
CT: control target
= control target key end

     0   :  { %vm204_vm0 = vcmask 261120   ;;  %s582_s1 = inlined_call_operand.vmem [shape: bf16[288,128], index: 1, kind: input, shape index: {}]   ;;  %s583_s0 = inlined_call_operand.vmem [shape: bf16[32,288], index: 0, kind: input, shape index: {}]   ;;  %s584_s2 = inlined_call_operand.vmem [shape: f32[1,128], index: 2, kind: input, shape index: {}]   ;;  %s585_s3 = inlined_call_operand.vmem [shape: bf16[32,128], index: 3, kind: output, shape index: {}]  }
   0x1   :  { %v447_v0 = vld [vmem:[%s582_s1 + $0x40] sm:$0xff]   ;;  %v449_v2 = vld [vmem:[%s582_s1 + $0x48] sm:$0xff]   ;;  %v451_v4 = vld [vmem:[%s582_s1 + $0x50] sm:$0xff]  }
   0x2   :  { %v448_v1 = vld [vmem:[%s582_s1] sm:$0xff]   ;;  %407 = vmatprep.subr.bf16.mxu0 %v447_v0  ;;  %v450_v3 = vld [vmem:[%s582_s1 + $0x8] sm:$0xff]   ;;  %v452_v5 = vld [vmem:[%s582_s1 + $0x10] sm:$0xff]  }
   0x3   :  { %408 = vmatpush3.bf16.msra.mxu0 %v448_v1  ;;  %v453_v6 = vld [vmem:[%s582_s1 + $0x58] sm:$0xff]   ;;  %v455_v8 = vld [vmem:[%s582_s1 + $0x60] sm:$0xff]   ;;  %v457_v11 = vld [vmem:[%s582_s1 + $0x68] sm:$0xff]  }
   0x4   :  { %409 = vmatprep.subr.bf16.mxu0 %v449_v2  ;;  %v454_v7 = vld [vmem:[%s582_s1 + $0x18] sm:$0xff]   ;;  %v456_v9 = vld [vmem:[%s582_s1 + $0x20] sm:$0xff]   ;;  %v458_v12 = vld [vmem:[%s582_s1 + $0x28] sm:$0xff]  }
   0x5   :  { %v462_v10 = vld [vmem:[%s582_s1 + $0x80] sm:$0xff]   ;;  %v459_v13 = vld [vmem:[%s582_s1 + $0x70] sm:$0xff]   ;;  %v467_v15 = vld [vmem:[%s582_s1 + $0x88] sm:$0xff]  }
   0x6   :  { %439 = vmatprep.subr.bf16.mxu1 %v462_v10  ;;  %v466_v14 = vld [vmem:[%s583_s0 + $0x4] ss:$12 sps:$4 sm:$0xff]   ;;  %v468_v16 = vld [vmem:[%s583_s0 + $0x8] ss:$12 sps:$4 sm:$0xff]   ;;  %v469_v17 = vld [vmem:[%s583_s0 + $0x20] ss:$12 sps:$4 sm:$0xff]  }
   0x7   :  { %410 = vmatpush3.bf16.msra.mxu0 %v450_v3  ;;  %440 = vmatpush3.bf16.msra.mxu1 %v462_v10  ;;  %v460_v18 = vld [vmem:[%s582_s1 + $0x30] sm:$0xff]   ;;  %v461_v19 = vld [vmem:[%s582_s1 + $0x78] sm:$0xff]   ;;  %v464_v21 = vld [vmem:[%s583_s0] ss:$12 sps:$4 sm:$0xff]  }
   0x8   :  { %411 = vmatprep.subr.bf16.mxu0 %v451_v4  ;;  %243 = vmatprep.mubr.bf16.mxu0 %v466_v14  ;;  %v463_v20 = vld [vmem:[%s582_s1 + $0x38] sm:$0xff]   ;;  %v357_v30 = vld [vmem:[%s584_s2] ss:$0 sm:$0xff] }
   0x9   :  { %441 = vmatprep.subr.bf16.mxu1 %v467_v15  ;;  %443 = vmatprep.mubr.msk.bf16.mxu1 %vm204_vm0, %v468_v16  ;;  %v470_v22 = vld [vmem:[%s583_s0 + $0x1c] ss:$12 sps:$4 sm:$0xff]   ;;  %v472_v23 = vld [vmem:[%s583_s0 + $0x18] ss:$12 sps:$4 sm:$0xff]  }
   0xb   :  { %412 = vmatpush3.bf16.msra.mxu0 %v452_v5  ;;  %442 = vmatpush3.bf16.msra.mxu1 %v467_v15 }
   0xc   :  { %413 = vmatprep.subr.bf16.mxu0 %v453_v6 }
   0xe   :  { %444 = vmatmul.mubr.msk.bf16.vlgmr.msra.gmra.mrb[0].mxu1 %vm204_vm0, %v469_v17 }
   0xf   :  { %414 = vmatpush3.bf16.msra.mxu0 %v454_v7 }
  0x10   :  { %415 = vmatprep.subr.bf16.mxu0 %v455_v8 }
  0x13   :  { %416 = vmatpush3.bf16.msra.mxu0 %v456_v9 }
  0x14   :  { %417 = vmatprep.subr.bf16.mxu0 %v457_v11 }
  0x17   :  { %418 = vmatpush3.bf16.msra.mxu0 %v458_v12 }
  0x18   :  { %419 = vmatprep.subr.bf16.mxu0 %v459_v13 }
  0x1b   :  { %420 = vmatpush3.bf16.msra.mxu0 %v460_v18 }
  0x1c   :  { %421 = vmatprep.subr.bf16.mxu0 %v461_v19 }
  0x1f   :  { %422 = vmatpush3.bf16.msra.mxu0 %v463_v20 }
  0x22   :  { %244 = vmatmul.mubr.bf16.vlgmr.msra.gmra.mrb[0].mxu0 %v464_v21 }
  0x23   :  { %251 = vmatprep.mubr.bf16.mxu0 %v470_v22 }
  0x2a   :  { %252 = vmatmul.mubr.bf16.gmra.mrb[4].mxu0 %v472_v23 }
  0xe1   :  { %v445_v24 = vpop.f32.mrb[0].mxu1 }
  0xe2   :  { %v294_v25 = vpop.f32.mrb[1].mxu1 }
  0xe3   :  { %v446_v26 = vpop.f32.mrb[2].mxu1 }
  0xe4   :  { %v297_v27 = vpop.f32.mrb[3].mxu1 }
  0xf5   :  { %v423_v28 = vpop.f32.mrb[0].mxu0 }
  0xf6   :  { %v424_v29 = vpop.f32.mrb[1].mxu0 }
  0xf7   :  { %v425_v31 = vadd.f32 %v424_v29, %v423_v28  ;;  %v426_v32 = vpop.f32.mrb[2].mxu0 }
  0xf8   :  { %v427_v33 = vpop.f32.mrb[3].mxu0 }
  0xf9   :  { %v428_v34 = vadd.f32 %v427_v33, %v426_v32  ;;  %v246_v35 = vadd.f32 %v425_v31, %v357_v30 }
  0xfb   :  { %v295_v36 = vadd.f32 %v294_v25, %v246_v35  ;;  %v249_v37 = vadd.f32 %v428_v34, %v357_v30 }
  0xfd   :  { %v313_v38 = vmin.f32 %v295_v36, 0.0  ;;  %v298_v39 = vadd.f32 %v297_v27, %v249_v37  ;;  %v429_v40 = vpop.f32.mrb[4].mxu0  ;;  %vm309_vm1 = vcmp.gt.f32.partialorder %v295_v36, 0.0 }
  0xfe   :  { %v430_v41 = vpop.f32.mrb[5].mxu0 }
  0xff   :  { %v317_v42 = vmul.f32 1.442695, %v313_v38  ;;  %v314_v43 = vmin.f32 %v298_v39, 0.0  ;;  %v431_v44 = vadd.f32 %v430_v41, %v429_v40  ;;  %v432_v45 = vpop.f32.mrb[6].mxu0  ;;  %vm310_vm2 = vcmp.gt.f32.partialorder %v298_v39, 0.0 }
 0x100   :  { %v433_v46 = vpop.f32.mrb[7].mxu0 }
 0x101   :  { %473 = vpow2.f32 %v317_v42  ;;  %v319_v47 = vmul.f32 1.442695, %v314_v43  ;;  %v254_v48 = vadd.f32 %v431_v44, %v357_v30  ;;  %v434_v49 = vadd.f32 %v433_v46, %v432_v45 }
 0x103   :  { %475 = vpow2.f32 %v319_v47  ;;  %v303_v50 = vadd.f32 %v445_v24, %v254_v48  ;;  %v257_v51 = vadd.f32 %v434_v49, %v357_v30 }
 0x105   :  { %v315_v52 = vmin.f32 %v303_v50, 0.0  ;;  %v306_v53 = vadd.f32 %v446_v26, %v257_v51  ;;  %vm311_vm3 = vcmp.gt.f32.partialorder %v303_v50, 0.0 }
 0x107   :  { %v321_v54 = vmul.f32 1.442695, %v315_v52  ;;  %v316_v55 = vmin.f32 %v306_v53, 0.0  ;;  %vm312_vm4 = vcmp.gt.f32.partialorder %v306_v53, 0.0 }
 0x109   :  { %477 = vpow2.f32 %v321_v54  ;;  %v323_v56 = vmul.f32 1.442695, %v316_v55 }
 0x10b   :  { %v474_v57 = vpop.eup %473  ;;  %479 = vpow2.f32 %v323_v56 }
 0x10c   :  { %v384_v58 = vadd.f32 -1.0, %v474_v57 }
 0x10d   :  { %v476_v59 = vpop.eup %475 }
 0x10e   :  { %v385_v60 = vadd.f32 -1.0, %v476_v59  ;;  %v329_v61 = vsel %vm309_vm1, %v295_v36, %v384_v58 }
 0x110   :  { %v330_v62 = vsel %vm310_vm2, %v298_v39, %v385_v60 }
 0x111   :  { %v399_v63 = vpack.c.bf16 %v330_v62, %v329_v61 }
 0x113   :  { %v478_v0 = vpop.eup %477  ;;  %400 = vst [vmem:[%s585_s3] sm:$0xff] %v399_v63  }
 0x114   :  { %v386_v1 = vadd.f32 -1.0, %v478_v0 }
 0x115   :  { %v480_v2 = vpop.eup %479 }
 0x116   :  { %v387_v3 = vadd.f32 -1.0, %v480_v2  ;;  %v331_v4 = vsel %vm311_vm3, %v303_v50, %v386_v1 }
 0x118   :  { %v332_v5 = vsel %vm312_vm4, %v306_v53, %v387_v3 }
 0x119   :  { %v404_v6 = vpack.c.bf16 %v332_v5, %v331_v4 }
 0x11b   :  { %406 = vst [vmem:[%s585_s3 + $0x8] sm:$0xff] %v404_v6  }

// kernel: vae2d_forward.14
= control target key start
LH: loop header
LB: loop body
LE: loop exit
PB: predicated region body
PF: predicated region fallthrough
CT: control target
= control target key end

     0   :  { %s339_s1 = inlined_call_operand.vmem [shape: bf16[256,128], index: 1, kind: input, shape index: {}]   ;;  %s340_s0 = inlined_call_operand.vmem [shape: bf16[8,256], index: 0, kind: input, shape index: {}]   ;;  %s341_s2 = inlined_call_operand.vmem [shape: f32[1,128], index: 2, kind: input, shape index: {}]   ;;  %s342_s3 = inlined_call_operand.vmem [shape: f32[8,128], index: 3, kind: output, shape index: {}]  }
   0x1   :  { %v244_v0 = vld [vmem:[%s339_s1 + $0x40] sm:$0xff]   ;;  %v246_v2 = vld [vmem:[%s339_s1 + $0x48] sm:$0xff]   ;;  %v248_v4 = vld [vmem:[%s339_s1 + $0x50] sm:$0xff]  }
   0x2   :  { %v245_v1 = vld [vmem:[%s339_s1] sm:$0xff]   ;;  %222 = vmatprep.subr.bf16.mxu0 %v244_v0  ;;  %v247_v3 = vld [vmem:[%s339_s1 + $0x8] sm:$0xff]   ;;  %v249_v5 = vld [vmem:[%s339_s1 + $0x10] sm:$0xff]  }
   0x3   :  { %223 = vmatpush3.bf16.msra.mxu0 %v245_v1  ;;  %v250_v6 = vld [vmem:[%s339_s1 + $0x58] sm:$0xff]   ;;  %v252_v8 = vld [vmem:[%s339_s1 + $0x60] sm:$0xff]   ;;  %v254_v10 = vld [vmem:[%s339_s1 + $0x68] sm:$0xff]  }
   0x4   :  { %224 = vmatprep.subr.bf16.mxu0 %v246_v2  ;;  %v251_v7 = vld [vmem:[%s339_s1 + $0x18] sm:$0xff]   ;;  %v253_v9 = vld [vmem:[%s339_s1 + $0x20] sm:$0xff]   ;;  %v255_v13 = vld [vmem:[%s339_s1 + $0x28] sm:$0xff]  }
   0x5   :  { %v15_v11 = vld [vmem:[%s340_s0] sm:$0xff]  ;;  %v256_v14 = vld [vmem:[%s339_s1 + $0x70] sm:$0xff]   ;;  %v258_v16 = vld [vmem:[%s339_s1 + $0x78] sm:$0xff]  }
   0x6   :  { %v205_v12 = vcombine.high %v15_v11, %v15_v11  ;;  %v257_v15 = vld [vmem:[%s339_s1 + $0x30] sm:$0xff]   ;;  %v259_v17 = vld [vmem:[%s339_s1 + $0x38] sm:$0xff]   ;;  %v204_v18 = vcombine.low %v15_v11, %v15_v11  ;;  %v203_v20 = vld [vmem:[%s341_s2] ss:$0 sm:$0xff] }
   0x7   :  { %225 = vmatpush3.bf16.msra.mxu0 %v247_v3 }
   0x8   :  { %226 = vmatprep.subr.bf16.mxu0 %v248_v4  ;;  %190 = vmatprep.mubr.bf16.mxu0 %v205_v12 }
   0xb   :  { %227 = vmatpush3.bf16.msra.mxu0 %v249_v5 }
   0xc   :  { %228 = vmatprep.subr.bf16.mxu0 %v250_v6 }
   0xf   :  { %229 = vmatpush3.bf16.msra.mxu0 %v251_v7 }
  0x10   :  { %230 = vmatprep.subr.bf16.mxu0 %v252_v8 }
  0x13   :  { %231 = vmatpush3.bf16.msra.mxu0 %v253_v9 }
  0x14   :  { %232 = vmatprep.subr.bf16.mxu0 %v254_v10 }
  0x17   :  { %233 = vmatpush3.bf16.msra.mxu0 %v255_v13 }
  0x18   :  { %234 = vmatprep.subr.bf16.mxu0 %v256_v14 }
  0x1b   :  { %235 = vmatpush3.bf16.msra.mxu0 %v257_v15 }
  0x1c   :  { %236 = vmatprep.subr.bf16.mxu0 %v258_v16 }
  0x1f   :  { %237 = vmatpush3.bf16.msra.mxu0 %v259_v17 }
  0x22   :  { %191 = vmatmul.mubr.bf16.vlgmr.msra.gmra.mrb[0].mxu0 %v204_v18 }
  0xf5   :  { %v238_v19 = vpop.f32.mrb[0].mxu0 }
  0xf6   :  { %v239_v21 = vpop.f32.mrb[1].mxu0 }
  0xf7   :  { %v240_v22 = vadd.f32 %v239_v21, %v238_v19  ;;  %v241_v23 = vpop.f32.mrb[2].mxu0 }
  0xf8   :  { %v242_v24 = vpop.f32.mrb[3].mxu0 }
  0xf9   :  { %v193_v25 = vadd.f32 %v240_v22, %v203_v20 }
  0xfb   :  { %198 = vst [vmem:[%s342_s3] sm:$0xff] %v193_v25 }

// kernel: vae2d_forward.13
= control target key start
LH: loop header
LB: loop body
LE: loop exit
PB: predicated region body
PF: predicated region fallthrough
CT: control target
= control target key end

     0   :  { %vm980_vm0 = vcmask 523264   ;;  %s2233_s1 = inlined_call_operand.vmem [shape: bf16[1600,128], index: 1, kind: input, shape index: {}]   ;;  %s2234_s0 = inlined_call_operand.vmem [shape: bf16[32,1600], index: 0, kind: input, shape index: {}]   ;;  %s2235_s2 = inlined_call_operand.vmem [shape: f32[1,128], index: 2, kind: input, shape index: {}]   ;;  %s2236_s3 = inlined_call_operand.vmem [shape: bf16[32,128], index: 3, kind: output, shape index: {}]  }
   0x1   :  { %v1688_v0 = vld [vmem:[%s2233_s1 + $0x40] sm:$0xff]   ;;  %v1692_v4 = vld [vmem:[%s2233_s1 + $0x48] sm:$0xff]   ;;  %v1696_v8 = vld [vmem:[%s2233_s1 + $0x50] sm:$0xff]  }
   0x2   :  { %v1689_v1 = vld [vmem:[%s2233_s1] sm:$0xff]   ;;  %1502 = vmatprep.subr.bf16.mxu0 %v1688_v0  ;;  %v1693_v5 = vld [vmem:[%s2233_s1 + $0x8] sm:$0xff]   ;;  %v1697_v9 = vld [vmem:[%s2233_s1 + $0x10] sm:$0xff]  }
   0x3   :  { %v1690_v2 = vld [vmem:[%s2233_s1 + $0xc0] sm:$0xff]   ;;  %1503 = vmatpush3.bf16.msra.mxu0 %v1689_v1  ;;  %v1694_v6 = vld [vmem:[%s2233_s1 + $0xc8] sm:$0xff]   ;;  %v1698_v10 = vld [vmem:[%s2233_s1 + $0xd0] sm:$0xff]  }
   0x4   :  { %v1691_v3 = vld [vmem:[%s2233_s1 + $0x80] sm:$0xff]   ;;  %1530 = vmatprep.subr.bf16.mxu1 %v1690_v2  ;;  %1504 = vmatprep.subr.bf16.mxu0 %v1692_v4  ;;  %v1695_v7 = vld [vmem:[%s2233_s1 + $0x88] sm:$0xff]   ;;  %v1699_v11 = vld [vmem:[%s2233_s1 + $0x90] sm:$0xff]  }
   0x5   :  { %1531 = vmatpush3.bf16.msra.mxu1 %v1691_v3  ;;  %v1700_v12 = vld [vmem:[%s2233_s1 + $0x58] sm:$0xff]   ;;  %v1704_v16 = vld [vmem:[%s2233_s1 + $0x60] sm:$0xff]   ;;  %v1708_v20 = vld [vmem:[%s2233_s1 + $0x68] sm:$0xff]  }
   0x6   :  { %1532 = vmatprep.subr.bf16.mxu1 %v1694_v6  ;;  %v1701_v13 = vld [vmem:[%s2233_s1 + $0x18] sm:$0xff]   ;;  %v1705_v17 = vld [vmem:[%s2233_s1 + $0x20] sm:$0xff]   ;;  %v1709_v21 = vld [vmem:[%s2233_s1 + $0x28] sm:$0xff]  }
   0x7   :  { %1505 = vmatpush3.bf16.msra.mxu0 %v1693_v5  ;;  %v1702_v14 = vld [vmem:[%s2233_s1 + $0xd8] sm:$0xff]   ;;  %v1706_v18 = vld [vmem:[%s2233_s1 + $0xe0] sm:$0xff]   ;;  %v1710_v22 = vld [vmem:[%s2233_s1 + $0xe8] sm:$0xff]  }
   0x8   :  { %1506 = vmatprep.subr.bf16.mxu0 %v1696_v8  ;;  %v1703_v15 = vld [vmem:[%s2233_s1 + $0x98] sm:$0xff]   ;;  %v1707_v19 = vld [vmem:[%s2233_s1 + $0xa0] sm:$0xff]   ;;  %v1711_v23 = vld [vmem:[%s2233_s1 + $0xa8] sm:$0xff]  }
   0x9   :  { %1533 = vmatpush3.bf16.msra.mxu1 %v1695_v7  ;;  %v1712_v24 = vld [vmem:[%s2233_s1 + $0x70] sm:$0xff]   ;;  %v1716_v28 = vld [vmem:[%s2233_s1 + $0x78] sm:$0xff]   ;;  %v1723_v34 = vld [vmem:[%s2233_s1 + $0x140] sm:$0xff]  }
   0xa   :  { %1534 = vmatprep.subr.bf16.mxu1 %v1698_v10  ;;  %v1713_v25 = vld [vmem:[%s2233_s1 + $0x30] sm:$0xff]   ;;  %v1717_v29 = vld [vmem:[%s2233_s1 + $0x38] sm:$0xff]   ;;  %v1726_v36 = vld [vmem:[%s2234_s0 + $0xc] ss:$52 sps:$4 sm:$0xff]  }
   0xb   :  { %1507 = vmatpush3.bf16.msra.mxu0 %v1697_v9  ;;  %v1714_v26 = vld [vmem:[%s2233_s1 + $0xf0] sm:$0xff]   ;;  %v1718_v30 = vld [vmem:[%s2233_s1 + $0xf8] sm:$0xff]   ;;  %v1727_v37 = vld [vmem:[%s2233_s1 + $0x100] sm:$0xff]   ;;  %1068 = vmatprep.mubr.bf16.mxu1 %v1726_v36 }
   0xc   :  { %1508 = vmatprep.subr.bf16.mxu0 %v1700_v12  ;;  %v1715_v27 = vld [vmem:[%s2233_s1 + $0xb0] sm:$0xff]   ;;  %v1721_v32 = vld [vmem:[%s2234_s0 + $0x4] ss:$52 sps:$4 sm:$0xff]   ;;  %v1724_v35 = vld [vmem:[%s2234_s0 + $0x8] ss:$52 sps:$4 sm:$0xff]  }
   0xd   :  { %1535 = vmatpush3.bf16.msra.mxu1 %v1699_v11  ;;  %v1719_v31 = vld [vmem:[%s2234_s0] ss:$52 sps:$4 sm:$0xff]   ;;  %v1722_v33 = vld [vmem:[%s2233_s1 + $0xb8] sm:$0xff]   ;;  %1019 = vmatprep.mubr.bf16.mxu0 %v1721_v32  ;;  %v1730_v40 = vld [vmem:[%s2233_s1 + $0x148] sm:$0xff]  }
   0xe   :  { %1536 = vmatprep.subr.bf16.mxu1 %v1702_v14  ;;  %v1728_v38 = vld [vmem:[%s2233_s1 + $0x1c0] sm:$0xff]   ;;  %v1731_v41 = vld [vmem:[%s2233_s1 + $0x108] sm:$0xff]   ;;  %v1734_v44 = vld [vmem:[%s2233_s1 + $0x150] sm:$0xff]  }
   0xf   :  { %1509 = vmatpush3.bf16.msra.mxu0 %v1701_v13  ;;  %v1729_v39 = vld [vmem:[%s2233_s1 + $0x180] sm:$0xff]   ;;  %v1732_v42 = vld [vmem:[%s2233_s1 + $0x1c8] sm:$0xff]   ;;  %v1735_v45 = vld [vmem:[%s2233_s1 + $0x110] sm:$0xff]  }
  0x10   :  { %1510 = vmatprep.subr.bf16.mxu0 %v1704_v16  ;;  %v1733_v43 = vld [vmem:[%s2233_s1 + $0x188] sm:$0xff]   ;;  %v1736_v46 = vld [vmem:[%s2233_s1 + $0x1d0] sm:$0xff]   ;;  %v1738_v48 = vld [vmem:[%s2233_s1 + $0x158] sm:$0xff]  }
  0x11   :  { %1537 = vmatpush3.bf16.msra.mxu1 %v1703_v15  ;;  %v1737_v47 = vld [vmem:[%s2233_s1 + $0x190] sm:$0xff]   ;;  %v1739_v49 = vld [vmem:[%s2233_s1 + $0x118] sm:$0xff]   ;;  %v1742_v52 = vld [vmem:[%s2233_s1 + $0x160] sm:$0xff]  }
  0x12   :  { %1538 = vmatprep.subr.bf16.mxu1 %v1706_v18  ;;  %v1740_v50 = vld [vmem:[%s2233_s1 + $0x1d8] sm:$0xff]   ;;  %v1743_v53 = vld [vmem:[%s2233_s1 + $0x120] sm:$0xff]   ;;  %v1746_v56 = vld [vmem:[%s2233_s1 + $0x168] sm:$0xff]  }
  0x13   :  { %1511 = vmatpush3.bf16.msra.mxu0 %v1705_v17  ;;  %v1741_v51 = vld [vmem:[%s2233_s1 + $0x198] sm:$0xff]   ;;  %v1744_v54 = vld [vmem:[%s2233_s1 + $0x1e0] sm:$0xff]   ;;  %v1749_v58 = vld [vmem:[%s2233_s1 + $0x128] sm:$0xff]  }
  0x14   :  { %1512 = vmatprep.subr.bf16.mxu0 %v1708_v20  ;;  %v1745_v55 = vld [vmem:[%s2233_s1 + $0x1a0] sm:$0xff]   ;;  %v1750_v59 = vld [vmem:[%s2234_s0 + $0x68] ss:$52 sps:$4 sm:$0xff]   ;;  %v1756_v0 = vld [vmem:[%s2233_s1 + $0x170] sm:$0xff]  }
  0x15   :  { %1539 = vmatpush3.bf16.msra.mxu1 %v1707_v19  ;;  %v1747_v57 = vld [vmem:[%s2234_s0 + $0x6c] ss:$52 sps:$4 sm:$0xff]   ;;  %v1752_v61 = vld [vmem:[%s2234_s0 + $0x74] ss:$52 sps:$4 sm:$0xff]   ;;  %v1755_v63 = vld [vmem:[%s2234_s0 + $0x70] ss:$52 sps:$4 sm:$0xff]  }
  0x16   :  { %1540 = vmatprep.subr.bf16.mxu1 %v1710_v22  ;;  %v1751_v60 = vld [vmem:[%s2233_s1 + $0x1e8] sm:$0xff]   ;;  %v1757_v1 = vld [vmem:[%s2233_s1 + $0x130] sm:$0xff]   ;;  %v1760_v4 = vld [vmem:[%s2233_s1 + $0x178] sm:$0xff]  }
  0x17   :  { %1513 = vmatpush3.bf16.msra.mxu0 %v1709_v21  ;;  %v1754_v62 = vld [vmem:[%s2233_s1 + $0x1a8] sm:$0xff]   ;;  %v1758_v2 = vld [vmem:[%s2233_s1 + $0x1f0] sm:$0xff]   ;;  %v1761_v5 = vld [vmem:[%s2233_s1 + $0x138] sm:$0xff]  }
  0x18   :  { %1514 = vmatprep.subr.bf16.mxu0 %v1712_v24  ;;  %v1759_v3 = vld [vmem:[%s2233_s1 + $0x1b0] sm:$0xff]   ;;  %v1762_v6 = vld [vmem:[%s2233_s1 + $0x1f8] sm:$0xff]   ;;  %v1767_v10 = vld [vmem:[%s2233_s1 + $0x240] sm:$0xff]  }
  0x19   :  { %1541 = vmatpush3.bf16.msra.mxu1 %v1711_v23  ;;  %v1763_v7 = vld [vmem:[%s2234_s0 + $0x10] ss:$52 sps:$4 sm:$0xff]   ;;  %v1765_v8 = vld [vmem:[%s2234_s0 + $0x14] ss:$52 sps:$4 sm:$0xff]   ;;  %v1766_v9 = vld [vmem:[%s2233_s1 + $0x1b8] sm:$0xff]  }
  0x1a   :  { %1542 = vmatprep.subr.bf16.mxu1 %v1714_v26  ;;  %v1768_v11 = vld [vmem:[%s2234_s0 + $0x18] ss:$52 sps:$4 sm:$0xff]   ;;  %v1770_v12 = vld [vmem:[%s2234_s0 + $0x1c] ss:$52 sps:$4 sm:$0xff]   ;;  %v1771_v13 = vld [vmem:[%s2233_s1 + $0x200] sm:$0xff]  }
  0x1b   :  { %1515 = vmatpush3.bf16.msra.mxu0 %v1713_v25  ;;  %v1772_v14 = vld [vmem:[%s2233_s1 + $0x2c0] sm:$0xff]   ;;  %v1774_v16 = vld [vmem:[%s2233_s1 + $0x248] sm:$0xff]   ;;  %v1777_v19 = vld [vmem:[%s2234_s0 + $0x7c] ss:$52 sps:$4 sm:$0xff]  }
  0x1c   :  { %1516 = vmatprep.subr.bf16.mxu0 %v1716_v28  ;;  %v1773_v15 = vld [vmem:[%s2233_s1 + $0x280] sm:$0xff]   ;;  %v1775_v17 = vld [vmem:[%s2233_s1 + $0x208] sm:$0xff]   ;;  %v1781_v22 = vld [vmem:[%s2233_s1 + $0x250] sm:$0xff]  }
  0x1d   :  { %1543 = vmatpush3.bf16.msra.mxu1 %v1715_v27  ;;  %v1776_v18 = vld [vmem:[%s2233_s1 + $0x2c8] sm:$0xff]   ;;  %v1782_v23 = vld [vmem:[%s2234_s0 + $0x84] ss:$52 sps:$4 sm:$0xff]   ;;  %v1784_v24 = vld [vmem:[%s2233_s1 + $0x210] sm:$0xff]  }
  0x1e   :  { %1544 = vmatprep.subr.bf16.mxu1 %v1718_v30  ;;  %v1779_v20 = vld [vmem:[%s2233_s1 + $0x288] sm:$0xff]   ;;  %v1785_v25 = vld [vmem:[%s2234_s0 + $0x80] ss:$52 sps:$4 sm:$0xff]   ;;  %v1788_v28 = vld [vmem:[%s2233_s1 + $0x258] sm:$0xff]  }
  0x1f   :  { %1517 = vmatpush3.bf16.msra.mxu0 %v1717_v29  ;;  %v1780_v21 = vld [vmem:[%s2234_s0 + $0x78] ss:$52 sps:$4 sm:$0xff]   ;;  %v1786_v26 = vld [vmem:[%s2233_s1 + $0x2d0] sm:$0xff]   ;;  %v1792_v32 = vld [vmem:[%s2233_s1 + $0x260] sm:$0xff]  }
  0x20   :  { %1558 = vmatprep.subr.bf16.mxu0 %v1723_v34  ;;  %v1787_v27 = vld [vmem:[%s2233_s1 + $0x290] sm:$0xff]   ;;  %v1789_v29 = vld [vmem:[%s2233_s1 + $0x218] sm:$0xff]   ;;  %v1794_v34 = vld [vmem:[%s2233_s1 + $0x2e0] sm:$0xff]  }
  0x21   :  { %1545 = vmatpush3.bf16.msra.mxu1 %v1722_v33  ;;  %v1790_v30 = vld [vmem:[%s2233_s1 + $0x2d8] sm:$0xff]   ;;  %v1793_v33 = vld [vmem:[%s2233_s1 + $0x220] sm:$0xff]   ;;  %v1796_v36 = vld [vmem:[%s2233_s1 + $0x268] sm:$0xff]  }
  0x22   :  { %1020 = vmatmul.mubr.bf16.vlgmr.msra.gmra.mrb[0].mxu0 %v1719_v31  ;;  %1586 = vmatprep.subr.bf16.mxu1 %v1728_v38  ;;  %v1791_v31 = vld [vmem:[%s2233_s1 + $0x298] sm:$0xff]   ;;  %v1798_v38 = vld [vmem:[%s2233_s1 + $0x2e8] sm:$0xff]  }
  0x23   :  { %1559 = vmatpush3.bf16.msra.mxu0 %v1727_v37  ;;  %1027 = vmatprep.mubr.bf16.mxu0 %v1747_v57  ;;  %v1797_v37 = vld [vmem:[%s2233_s1 + $0x228] sm:$0xff]  }
  0x24   :  { %1069 = vmatmul.mubr.bf16.vlgmr.msra.gmra.mrb[0].mxu1 %v1724_v35  ;;  %1560 = vmatprep.subr.bf16.mxu0 %v1730_v40  ;;  %v1795_v35 = vld [vmem:[%s2233_s1 + $0x2a0] sm:$0xff]   ;;  %v1800_v40 = vld [vmem:[%s2233_s1 + $0x270] sm:$0xff]  }
  0x25   :  { %1587 = vmatpush3.bf16.msra.mxu1 %v1729_v39  ;;  %1076 = vmatprep.mubr.bf16.mxu1 %v1752_v61  ;;  %v1799_v39 = vld [vmem:[%s2233_s1 + $0x2a8] sm:$0xff]  }
  0x26   :  { %1588 = vmatprep.subr.bf16.mxu1 %v1732_v42  ;;  %v1802_v42 = vld [vmem:[%s2233_s1 + $0x2f0] sm:$0xff]   ;;  %v1825_v61 = vld [vmem:[%s2234_s0 + $0x98] ss:$52 sps:$4 sm:$0xff]  }
  0x27   :  { %1561 = vmatpush3.bf16.msra.mxu0 %v1731_v41  ;;  %v1801_v41 = vld [vmem:[%s2233_s1 + $0x230] sm:$0xff]  }
  0x28   :  { %1562 = vmatprep.subr.bf16.mxu0 %v1734_v44  ;;  %v1804_v44 = vld [vmem:[%s2233_s1 + $0x278] sm:$0xff]   ;;  %v1820_v57 = vld [vmem:[%s2234_s0 + $0x94] ss:$52 sps:$4 sm:$0xff]  }
  0x29   :  { %1589 = vmatpush3.bf16.msra.mxu1 %v1733_v43  ;;  %v1803_v43 = vld [vmem:[%s2233_s1 + $0x2b0] sm:$0xff]  }
  0x2a   :  { %1590 = vmatprep.subr.bf16.mxu1 %v1736_v46  ;;  %1028 = vmatmul.mubr.bf16.gmra.mrb[4].mxu0 %v1750_v59  ;;  %v1806_v46 = vld [vmem:[%s2233_s1 + $0x2f8] sm:$0xff]   ;;  %v1824_v59 = vld [vmem:[%s2234_s0 + $0x30] ss:$52 sps:$4 sm:$0xff]  }
  0x2b   :  { %1563 = vmatpush3.bf16.msra.mxu0 %v1735_v45  ;;  %1117 = vmatprep.mubr.bf16.mxu0 %v1765_v8  ;;  %v1805_v45 = vld [vmem:[%s2233_s1 + $0x238] sm:$0xff]  }
  0x2c   :  { %1564 = vmatprep.subr.bf16.mxu0 %v1738_v48  ;;  %1077 = vmatmul.mubr.bf16.gmra.mrb[4].mxu1 %v1755_v63  ;;  %v1809_v48 = vld [vmem:[%s2234_s0 + $0x24] ss:$52 sps:$4 sm:$0xff]   ;;  %v1354_v63 = vld [vmem:[%s2235_s2] ss:$0 sm:$0xff] }
  0x2d   :  { %1591 = vmatpush3.bf16.msra.mxu1 %v1737_v47  ;;  %1166 = vmatprep.mubr.bf16.mxu1 %v1770_v12  ;;  %v1807_v47 = vld [vmem:[%s2234_s0 + $0x20] ss:$52 sps:$4 sm:$0xff]  }
  0x2e   :  { %1592 = vmatprep.subr.bf16.mxu1 %v1740_v50  ;;  %v1811_v50 = vld [vmem:[%s2233_s1 + $0x300] sm:$0xff]  }
  0x2f   :  { %1565 = vmatpush3.bf16.msra.mxu0 %v1739_v49  ;;  %v1810_v49 = vld [vmem:[%s2233_s1 + $0x2b8] sm:$0xff]  }
  0x30   :  { %1566 = vmatprep.subr.bf16.mxu0 %v1742_v52  ;;  %v1814_v52 = vld [vmem:[%s2234_s0 + $0x2c] ss:$52 sps:$4 sm:$0xff]  }
  0x31   :  { %1593 = vmatpush3.bf16.msra.mxu1 %v1741_v51  ;;  %v1812_v51 = vld [vmem:[%s2234_s0 + $0x28] ss:$52 sps:$4 sm:$0xff]  }
  0x32   :  { %1594 = vmatprep.subr.bf16.mxu1 %v1744_v54  ;;  %v1816_v54 = vld [vmem:[%s2234_s0 + $0x8c] ss:$52 sps:$4 sm:$0xff]  }
  0x33   :  { %1567 = vmatpush3.bf16.msra.mxu0 %v1743_v53  ;;  %v1815_v53 = vld [vmem:[%s2233_s1 + $0x308] sm:$0xff]  }
  0x34   :  { %1568 = vmatprep.subr.bf16.mxu0 %v1746_v56  ;;  %v1819_v56 = vld [vmem:[%s2233_s1 + $0x310] sm:$0xff]  }
  0x35   :  { %1595 = vmatpush3.bf16.msra.mxu1 %v1745_v55  ;;  %v1818_v55 = vld [vmem:[%s2234_s0 + $0x88] ss:$52 sps:$4 sm:$0xff]  }
  0x36   :  { %1596 = vmatprep.subr.bf16.mxu1 %v1751_v60  ;;  %v1822_v60 = vld [vmem:[%s2234_s0 + $0x90] ss:$52 sps:$4 sm:$0xff]  }
  0x37   :  { %1569 = vmatpush3.bf16.msra.mxu0 %v1749_v58  ;;  %v1823_v58 = vld [vmem:[%s2233_s1 + $0x318] sm:$0xff]  }
  0x38   :  { %1570 = vmatprep.subr.bf16.mxu0 %v1756_v0 }
  0x39   :  { %1597 = vmatpush3.bf16.msra.mxu1 %v1754_v62 }
  0x3a   :  { %1598 = vmatprep.subr.bf16.mxu1 %v1758_v2 }
  0x3b   :  { %1571 = vmatpush3.bf16.msra.mxu0 %v1757_v1 }
  0x3c   :  { %1572 = vmatprep.subr.bf16.mxu0 %v1760_v4 }
  0x3d   :  { %1599 = vmatpush3.bf16.msra.mxu1 %v1759_v3 }
  0x3e   :  { %1600 = vmatprep.subr.bf16.mxu1 %v1762_v6 }
  0x3f   :  { %1573 = vmatpush3.bf16.msra.mxu0 %v1761_v5 }
  0x40   :  { %1614 = vmatprep.subr.bf16.mxu0 %v1767_v10 }
  0x41   :  { %1601 = vmatpush3.bf16.msra.mxu1 %v1766_v9 }
  0x42   :  { %1118 = vmatmul.mubr.bf16.vlgmr.msra.gmra.mrb[8].mxu0 %v1763_v7  ;;  %1642 = vmatprep.subr.bf16.mxu1 %v1772_v14 }
  0x43   :  { %1615 = vmatpush3.bf16.msra.mxu0 %v1771_v13  ;;  %1125 = vmatprep.mubr.bf16.mxu0 %v1777_v19 }
  0x44   :  { %1167 = vmatmul.mubr.bf16.vlgmr.msra.gmra.mrb[8].mxu1 %v1768_v11  ;;  %1616 = vmatprep.subr.bf16.mxu0 %v1774_v16 }
  0x45   :  { %1643 = vmatpush3.bf16.msra.mxu1 %v1773_v15  ;;  %1174 = vmatprep.mubr.bf16.mxu1 %v1782_v23 }
  0x46   :  { %1644 = vmatprep.subr.bf16.mxu1 %v1776_v18 }
  0x47   :  { %1617 = vmatpush3.bf16.msra.mxu0 %v1775_v17 }
  0x48   :  { %1618 = vmatprep.subr.bf16.mxu0 %v1781_v22 }
  0x49   :  { %1645 = vmatpush3.bf16.msra.mxu1 %v1779_v20 }
  0x4a   :  { %1126 = vmatmul.mubr.bf16.gmra.mrb[12].mxu0 %v1780_v21  ;;  %1646 = vmatprep.subr.bf16.mxu1 %v1786_v26 }
  0x4b   :  { %1619 = vmatpush3.bf16.msra.mxu0 %v1784_v24  ;;  %1215 = vmatprep.mubr.bf16.mxu0 %v1809_v48 }
  0x4c   :  { %1175 = vmatmul.mubr.bf16.gmra.mrb[12].mxu1 %v1785_v25  ;;  %1620 = vmatprep.subr.bf16.mxu0 %v1788_v28 }
  0x4d   :  { %1647 = vmatpush3.bf16.msra.mxu1 %v1787_v27  ;;  %1264 = vmatprep.mubr.bf16.mxu1 %v1814_v52 }
  0x4e   :  { %1648 = vmatprep.subr.bf16.mxu1 %v1790_v30 }
  0x4f   :  { %1621 = vmatpush3.bf16.msra.mxu0 %v1789_v29 }
  0x50   :  { %1622 = vmatprep.subr.bf16.mxu0 %v1792_v32 }
  0x51   :  { %1649 = vmatpush3.bf16.msra.mxu1 %v1791_v31 }
  0x52   :  { %1650 = vmatprep.subr.bf16.mxu1 %v1794_v34 }
  0x53   :  { %1623 = vmatpush3.bf16.msra.mxu0 %v1793_v33 }
  0x54   :  { %1624 = vmatprep.subr.bf16.mxu0 %v1796_v36 }
  0x55   :  { %1651 = vmatpush3.bf16.msra.mxu1 %v1795_v35 }
  0x56   :  { %1652 = vmatprep.subr.bf16.mxu1 %v1798_v38 }
  0x57   :  { %1625 = vmatpush3.bf16.msra.mxu0 %v1797_v37 }
  0x58   :  { %1626 = vmatprep.subr.bf16.mxu0 %v1800_v40 }
  0x59   :  { %1653 = vmatpush3.bf16.msra.mxu1 %v1799_v39 }
  0x5a   :  { %1654 = vmatprep.subr.bf16.mxu1 %v1802_v42 }
  0x5b   :  { %1627 = vmatpush3.bf16.msra.mxu0 %v1801_v41 }
  0x5c   :  { %1628 = vmatprep.subr.bf16.mxu0 %v1804_v44 }
  0x5d   :  { %1655 = vmatpush3.bf16.msra.mxu1 %v1803_v43 }
  0x5e   :  { %1656 = vmatprep.subr.bf16.mxu1 %v1806_v46 }
  0x5f   :  { %1629 = vmatpush3.bf16.msra.mxu0 %v1805_v45 }
  0x60   :  { %1676 = vmatprep.subr.bf16.mxu0 %v1811_v50 }
  0x61   :  { %1657 = vmatpush3.bf16.msra.mxu1 %v1810_v49 }
  0x62   :  { %1216 = vmatmul.mubr.bf16.vlgmr.msra.gmra.mrb[16].mxu0 %v1807_v47 }
  0x63   :  { %1677 = vmatpush3.bf16.msra.mxu0 %v1811_v50  ;;  %1223 = vmatprep.mubr.bf16.mxu0 %v1816_v54 }
  0x64   :  { %1265 = vmatmul.mubr.bf16.vlgmr.msra.gmra.mrb[16].mxu1 %v1812_v51  ;;  %1678 = vmatprep.subr.bf16.mxu0 %v1815_v53 }
  0x65   :  { %1272 = vmatprep.mubr.bf16.mxu1 %v1820_v57 }
  0x67   :  { %1679 = vmatpush3.bf16.msra.mxu0 %v1815_v53 }
  0x68   :  { %1680 = vmatprep.subr.bf16.mxu0 %v1819_v56 }
  0x6a   :  { %1224 = vmatmul.mubr.bf16.gmra.mrb[20].mxu0 %v1818_v55 }
  0x6b   :  { %1684 = vmatprep.mubr.msk.bf16.mxu0 %vm980_vm0, %v1824_v59  ;;  %1681 = vmatpush3.bf16.msra.mxu0 %v1819_v56 }
  0x6c   :  { %1682 = vmatprep.subr.bf16.mxu0 %v1823_v58  ;;  %1273 = vmatmul.mubr.bf16.gmra.mrb[20].mxu1 %v1822_v60 }
  0x6f   :  { %1683 = vmatpush3.bf16.msra.mxu0 %v1823_v58 }
  0x72   :  { %1685 = vmatmul.mubr.msk.bf16.vlgmr.msra.gmra.mrb[24].mxu0 %vm980_vm0, %v1825_v61 }
  0xf5   :  { %v1518_v62 = vpop.f32.mrb[0].mxu0 }
  0xf6   :  { %v1519_v0 = vpop.f32.mrb[1].mxu0 }
  0xf7   :  { %v1520_v1 = vadd.f32 %v1519_v0, %v1518_v62  ;;  %v1521_v2 = vpop.f32.mrb[2].mxu0  ;;  %v1546_v3 = vpop.f32.mrb[0].mxu1 }
  0xf8   :  { %v1522_v4 = vpop.f32.mrb[3].mxu0  ;;  %v1547_v7 = vpop.f32.mrb[1].mxu1 }
  0xf9   :  { %v1022_v5 = vadd.f32 %v1520_v1, %v1354_v63  ;;  %v1523_v6 = vadd.f32 %v1522_v4, %v1521_v2  ;;  %v1548_v8 = vadd.f32 %v1547_v7, %v1546_v3  ;;  %v1549_v9 = vpop.f32.mrb[2].mxu1 }
  0xfa   :  { %v1550_v11 = vpop.f32.mrb[3].mxu1 }
  0xfb   :  { %v1025_v10 = vadd.f32 %v1523_v6, %v1354_v63  ;;  %v1071_v12 = vadd.f32 %v1548_v8, %v1022_v5  ;;  %v1551_v13 = vadd.f32 %v1550_v11, %v1549_v9 }
  0xfd   :  { %v1074_v14 = vadd.f32 %v1551_v13, %v1025_v10  ;;  %v1524_v15 = vpop.f32.mrb[4].mxu0 }
  0xfe   :  { %v1525_v16 = vpop.f32.mrb[5].mxu0 }
  0xff   :  { %v1526_v17 = vadd.f32 %v1525_v16, %v1524_v15  ;;  %v1527_v18 = vpop.f32.mrb[6].mxu0  ;;  %v1552_v19 = vpop.f32.mrb[4].mxu1 }
 0x100   :  { %v1528_v20 = vpop.f32.mrb[7].mxu0  ;;  %v1553_v23 = vpop.f32.mrb[5].mxu1 }
 0x101   :  { %v1030_v21 = vadd.f32 %v1526_v17, %v1354_v63  ;;  %v1529_v22 = vadd.f32 %v1528_v20, %v1527_v18  ;;  %v1554_v24 = vadd.f32 %v1553_v23, %v1552_v19  ;;  %v1555_v25 = vpop.f32.mrb[6].mxu1 }
 0x102   :  { %v1556_v27 = vpop.f32.mrb[7].mxu1 }
 0x103   :  { %v1033_v26 = vadd.f32 %v1529_v22, %v1354_v63  ;;  %v1079_v28 = vadd.f32 %v1554_v24, %v1030_v21  ;;  %v1557_v29 = vadd.f32 %v1556_v27, %v1555_v25 }
 0x105   :  { %v1082_v30 = vadd.f32 %v1557_v29, %v1033_v26 }
 0x115   :  { %v1574_v31 = vpop.f32.mrb[8].mxu0 }
 0x116   :  { %v1575_v32 = vpop.f32.mrb[9].mxu0 }
 0x117   :  { %v1576_v33 = vadd.f32 %v1575_v32, %v1574_v31  ;;  %v1577_v34 = vpop.f32.mrb[10].mxu0  ;;  %v1602_v35 = vpop.f32.mrb[8].mxu1 }
 0x118   :  { %v1578_v36 = vpop.f32.mrb[11].mxu0  ;;  %v1603_v39 = vpop.f32.mrb[9].mxu1 }
 0x119   :  { %v1120_v37 = vadd.f32 %v1576_v33, %v1071_v12  ;;  %v1579_v38 = vadd.f32 %v1578_v36, %v1577_v34  ;;  %v1604_v40 = vadd.f32 %v1603_v39, %v1602_v35  ;;  %v1605_v41 = vpop.f32.mrb[10].mxu1 }
 0x11a   :  { %v1606_v43 = vpop.f32.mrb[11].mxu1 }
 0x11b   :  { %v1123_v42 = vadd.f32 %v1579_v38, %v1074_v14  ;;  %v1169_v44 = vadd.f32 %v1604_v40, %v1120_v37  ;;  %v1607_v45 = vadd.f32 %v1606_v43, %v1605_v41 }
 0x11d   :  { %v1172_v46 = vadd.f32 %v1607_v45, %v1123_v42  ;;  %v1580_v47 = vpop.f32.mrb[12].mxu0 }
 0x11e   :  { %v1581_v48 = vpop.f32.mrb[13].mxu0 }
 0x11f   :  { %v1582_v49 = vadd.f32 %v1581_v48, %v1580_v47  ;;  %v1583_v50 = vpop.f32.mrb[14].mxu0  ;;  %v1608_v51 = vpop.f32.mrb[12].mxu1 }
 0x120   :  { %v1584_v52 = vpop.f32.mrb[15].mxu0  ;;  %v1609_v55 = vpop.f32.mrb[13].mxu1 }
 0x121   :  { %v1128_v53 = vadd.f32 %v1582_v49, %v1079_v28  ;;  %v1585_v54 = vadd.f32 %v1584_v52, %v1583_v50  ;;  %v1610_v56 = vadd.f32 %v1609_v55, %v1608_v51  ;;  %v1611_v57 = vpop.f32.mrb[14].mxu1 }
 0x122   :  { %v1612_v59 = vpop.f32.mrb[15].mxu1 }
 0x123   :  { %v1131_v58 = vadd.f32 %v1585_v54, %v1082_v30  ;;  %v1177_v60 = vadd.f32 %v1610_v56, %v1128_v53  ;;  %v1613_v61 = vadd.f32 %v1612_v59, %v1611_v57 }
 0x125   :  { %v1180_v62 = vadd.f32 %v1613_v61, %v1131_v58 }
 0x135   :  { %v1630_v63 = vpop.f32.mrb[16].mxu0 }
 0x136   :  { %v1631_v0 = vpop.f32.mrb[17].mxu0 }
 0x137   :  { %v1632_v1 = vadd.f32 %v1631_v0, %v1630_v63  ;;  %v1633_v2 = vpop.f32.mrb[18].mxu0  ;;  %v1658_v5 = vpop.f32.mrb[16].mxu1 }
 0x138   :  { %v1634_v3 = vpop.f32.mrb[19].mxu0  ;;  %v1659_v7 = vpop.f32.mrb[17].mxu1 }
 0x139   :  { %v1218_v4 = vadd.f32 %v1632_v1, %v1169_v44  ;;  %v1635_v6 = vadd.f32 %v1634_v3, %v1633_v2  ;;  %v1660_v9 = vadd.f32 %v1659_v7, %v1658_v5  ;;  %v1661_v10 = vpop.f32.mrb[18].mxu1 }
 0x13a   :  { %v1662_v11 = vpop.f32.mrb[19].mxu1 }
 0x13b   :  { %v1221_v8 = vadd.f32 %v1635_v6, %v1172_v46  ;;  %v1663_v12 = vadd.f32 %v1662_v11, %v1661_v10  ;;  %v1267_v14 = vadd.f32 %v1660_v9, %v1218_v4 }
 0x13d   :  { %v1636_v13 = vpop.f32.mrb[20].mxu0  ;;  %v1270_v18 = vadd.f32 %v1663_v12, %v1221_v8 }
 0x13e   :  { %v1637_v15 = vpop.f32.mrb[21].mxu0 }
 0x13f   :  { %v1638_v16 = vadd.f32 %v1637_v15, %v1636_v13  ;;  %v1639_v17 = vpop.f32.mrb[22].mxu0  ;;  %v1664_v21 = vpop.f32.mrb[20].mxu1 }
 0x140   :  { %v1640_v19 = vpop.f32.mrb[23].mxu0  ;;  %v1665_v23 = vpop.f32.mrb[21].mxu1 }
 0x141   :  { %v1226_v20 = vadd.f32 %v1638_v16, %v1177_v60  ;;  %v1641_v22 = vadd.f32 %v1640_v19, %v1639_v17  ;;  %v1666_v25 = vadd.f32 %v1665_v23, %v1664_v21  ;;  %v1667_v26 = vpop.f32.mrb[22].mxu1 }
 0x142   :  { %v1668_v27 = vpop.f32.mrb[23].mxu1 }
 0x143   :  { %v1229_v24 = vadd.f32 %v1641_v22, %v1180_v62  ;;  %v1669_v28 = vadd.f32 %v1668_v27, %v1667_v26  ;;  %v1275_v29 = vadd.f32 %v1666_v25, %v1226_v20 }
 0x145   :  { %v1686_v30 = vpop.f32.mrb[24].mxu0  ;;  %v1278_v33 = vadd.f32 %v1669_v28, %v1229_v24 }
 0x146   :  { %v1324_v31 = vadd.f32 %v1686_v30, %v1275_v29  ;;  %v1315_v32 = vpop.f32.mrb[25].mxu0 }
 0x147   :  { %v1316_v34 = vadd.f32 %v1315_v32, %v1267_v14  ;;  %v1687_v35 = vpop.f32.mrb[26].mxu0 }
 0x148   :  { %v1327_v36 = vadd.f32 %v1687_v35, %v1278_v33  ;;  %v1318_v37 = vpop.f32.mrb[27].mxu0 }
 0x149   :  { %v1319_v38 = vadd.f32 %v1318_v37, %v1270_v18 }
 0x14a   :  { %v1499_v39 = vpack.c.bf16 %v1327_v36, %v1324_v31 }
 0x14b   :  { %v1494_v40 = vpack.c.bf16 %v1319_v38, %v1316_v34 }
 0x14c   :  { %1501 = vst [vmem:[%s2236_s3 + $0x8] sm:$0xff] %v1499_v39  }
 0x14d   :  { %1495 = vst [vmem:[%s2236_s3] sm:$0xff] %v1494_v40  }

// kernel: vae2d_forward.15
= control target key start
LH: loop header
LB: loop body
LE: loop exit
PB: predicated region body
PF: predicated region fallthrough
CT: control target
= control target key end

     0   :  { %v184_v3 = vmov 0.0   ;;  %v62_v57 = vlaneseq  ;;  %s329_s3 = inlined_call_operand.vmem [shape: f32[128,256], index: 3, kind: input, shape index: {}]   ;;  %s330_s1 = inlined_call_operand.vmem [shape: f32[8,128], index: 1, kind: input, shape index: {}]   ;;  %s331_s2 = inlined_call_operand.vmem [shape: f32[8,128], index: 2, kind: input, shape index: {}]   ;;  %s332_s0 = inlined_call_operand.vmem [shape: f32[8,128], index: 0, kind: input, shape index: {}]   ;;  %s333_s4 = inlined_call_operand.vmem [shape: f32[1,256], index: 4, kind: input, shape index: {}]   ;;  %s334_s5 = inlined_call_operand.vmem [shape: f32[8,256], index: 5, kind: output, shape index: {}]  }
   0x1   :  { %v29_v0 = vld [vmem:[%s329_s3 + $0x8] sm:$0xff]  ;;  %v31_v1 = vld [vmem:[%s329_s3 + $0x18] sm:$0xff]  ;;  %v28_v2 = vld [vmem:[%s329_s3] sm:$0xff]  ;;  %136 = vmatprep.mubr.f32.mxu0 %v184_v3 }
   0x2   :  { %v149_v4 = vpack.c.bf16 %v31_v1, %v29_v0  ;;  %v30_v5 = vld [vmem:[%s329_s3 + $0x10] sm:$0xff]  ;;  %v33_v6 = vld [vmem:[%s329_s3 + $0x28] sm:$0xff]  ;;  %v35_v7 = vld [vmem:[%s329_s3 + $0x38] sm:$0xff]  ;;  %v63_v58 = vshrl.u32 %v62_v57, 7 }
   0x3   :  { %v151_v8 = vpack.c.bf16 %v30_v5, %v28_v2  ;;  %v153_v9 = vpack.c.bf16 %v35_v7, %v33_v6  ;;  %v32_v10 = vld [vmem:[%s329_s3 + $0x20] sm:$0xff]  ;;  %v34_v11 = vld [vmem:[%s329_s3 + $0x30] sm:$0xff]  ;;  %v37_v12 = vld [vmem:[%s329_s3 + $0x48] sm:$0xff] }
   0x4   :  { %150 = vmatprep.subr.bf16.mxu0 %v149_v4  ;;  %v39_v13 = vld [vmem:[%s329_s3 + $0x58] sm:$0xff]  ;;  %v155_v14 = vpack.c.bf16 %v34_v11, %v32_v10  ;;  %v36_v16 = vld [vmem:[%s329_s3 + $0x40] sm:$0xff]  ;;  %v38_v17 = vld [vmem:[%s329_s3 + $0x50] sm:$0xff]  ;;  %v64_v59 = vsub.s32 0, %v63_v58  ;;  %v68_v61 = vsub.s32 1, %v63_v58 }
   0x5   :  { %152 = vmatpush1.bf16.msra.mxu0 %v151_v8  ;;  %v157_v15 = vpack.c.bf16 %v39_v13, %v37_v12  ;;  %v41_v18 = vld [vmem:[%s329_s3 + $0x68] sm:$0xff]  ;;  %v43_v19 = vld [vmem:[%s329_s3 + $0x78] sm:$0xff]  ;;  %v159_v20 = vpack.c.bf16 %v38_v17, %v36_v16  ;;  %v40_v22 = vld [vmem:[%s329_s3 + $0x60] sm:$0xff] }
   0x6   :  { %154 = vmatprep.subr.bf16.mxu0 %v153_v9  ;;  %v161_v21 = vpack.c.bf16 %v43_v19, %v41_v18  ;;  %v42_v23 = vld [vmem:[%s329_s3 + $0x70] sm:$0xff]  ;;  %v45_v24 = vld [vmem:[%s329_s3 + $0x88] sm:$0xff]  ;;  %v47_v25 = vld [vmem:[%s329_s3 + $0x98] sm:$0xff] }
   0x7   :  { %v22_v26 = vld [vmem:[%s330_s1] sm:$0xff]  ;;  %v163_v27 = vpack.c.bf16 %v42_v23, %v40_v22  ;;  %v165_v29 = vpack.c.bf16 %v47_v25, %v45_v24  ;;  %v46_v31 = vld [vmem:[%s329_s3 + $0x90] sm:$0xff]  ;;  %v49_v32 = vld [vmem:[%s329_s3 + $0xa8] sm:$0xff] }
   0x8   :  { %v23_v28 = vmul.f32 0.5, %v22_v26  ;;  %v44_v30 = vld [vmem:[%s329_s3 + $0x80] sm:$0xff]  ;;  %v51_v33 = vld [vmem:[%s329_s3 + $0xb8] sm:$0xff]  ;;  %v50_v38 = vld [vmem:[%s329_s3 + $0xb0] sm:$0xff] }
   0x9   :  { %156 = vmatpush1.bf16.msra.mxu0 %v155_v14  ;;  %v167_v35 = vpack.c.bf16 %v46_v31, %v44_v30  ;;  %v169_v36 = vpack.c.bf16 %v51_v33, %v49_v32  ;;  %v48_v37 = vld [vmem:[%s329_s3 + $0xa0] sm:$0xff]  ;;  %v53_v39 = vld [vmem:[%s329_s3 + $0xc8] sm:$0xff]  ;;  %v55_v40 = vld [vmem:[%s329_s3 + $0xd8] sm:$0xff] }
   0xa   :  { %158 = vmatprep.subr.bf16.mxu0 %v157_v15  ;;  %v24_v34 = vmul.f32 1.442695, %v23_v28  ;;  %v171_v41 = vpack.c.bf16 %v50_v38, %v48_v37  ;;  %v173_v42 = vpack.c.bf16 %v55_v40, %v53_v39  ;;  %v52_v43 = vld [vmem:[%s329_s3 + $0xc0] sm:$0xff]  ;;  %v54_v44 = vld [vmem:[%s329_s3 + $0xd0] sm:$0xff]  ;;  %v57_v45 = vld [vmem:[%s329_s3 + $0xe8] sm:$0xff] }
   0xb   :  { %v59_v46 = vld [vmem:[%s329_s3 + $0xf8] sm:$0xff]  ;;  %v175_v47 = vpack.c.bf16 %v54_v44, %v52_v43  ;;  %v21_v48 = vld [vmem:[%s331_s2] sm:$0xff]  ;;  %v58_v51 = vld [vmem:[%s329_s3 + $0xf0] sm:$0xff] }
   0xc   :  { %182 = vpow2.f32 %v24_v34  ;;  %v177_v49 = vpack.c.bf16 %v59_v46, %v57_v45  ;;  %v56_v50 = vld [vmem:[%s329_s3 + $0xe0] sm:$0xff] }
   0xd   :  { %160 = vmatpush1.bf16.msra.mxu0 %v159_v20  ;;  %v179_v54 = vpack.c.bf16 %v58_v51, %v56_v50  ;;  %v20_v55 = vld [vmem:[%s332_s0] sm:$0xff] }
   0xe   :  { %162 = vmatprep.subr.bf16.mxu0 %v161_v21  ;;  %v60_v60 = vld [vmem:[%s333_s4] sm:$0x3] }
   0xf   :  { %v65_v62 = vrot.slane %v60_v60, %v64_v59  ;;  %v69_v63 = vrot.slane %v60_v60, %v68_v61 }
  0x11   :  { %164 = vmatpush1.bf16.msra.mxu0 %v163_v27 }
  0x12   :  { %166 = vmatprep.subr.bf16.mxu0 %v165_v29 }
  0x15   :  { %168 = vmatpush1.bf16.msra.mxu0 %v167_v35 }
  0x16   :  { %170 = vmatprep.subr.bf16.mxu0 %v169_v36  ;;  %v183_v52 = vpop.eup %182 }
  0x17   :  { %v26_v53 = vmul.f32 %v183_v52, %v21_v48 }
  0x19   :  { %172 = vmatpush1.bf16.msra.mxu0 %v171_v41  ;;  %v27_v56 = vadd.f32 %v26_v53, %v20_v55 }
  0x1a   :  { %174 = vmatprep.subr.bf16.mxu0 %v173_v42 }
  0x1d   :  { %176 = vmatpush1.bf16.msra.mxu0 %v175_v47 }
  0x1e   :  { %178 = vmatprep.subr.bf16.mxu0 %v177_v49 }
  0x21   :  { %180 = vmatpush1.bf16.msra.mxu0 %v179_v54 }
  0x24   :  { %137 = vmatmul.mubr.f32.vlgmr.msra.gmra.mrb[0].mxu0 %v27_v56 }
  0xf7   :  { %v138_v0 = vpop.f32.mrb[0].mxu0 }
  0xf8   :  { %v139_v1 = vadd.f32 %v138_v0, %v65_v62  ;;  %v140_v2 = vpop.f32.mrb[1].mxu0 }
  0xf9   :  { %v141_v3 = vadd.f32 %v140_v2, %v69_v63 }
  0xfa   :  { %143 = vst [vmem:[%s334_s5] sm:$0xff] %v139_v1 }
  0xfb   :  { %144 = vst [vmem:[%s334_s5 + $0x8] sm:$0xff] %v141_v3 }

// kernel: vae2d_forward.16
= control target key start
LH: loop header
LB: loop body
LE: loop exit
PB: predicated region body
PF: predicated region fallthrough
CT: control target
= control target key end

     0   :  { %s448_s1 = inlined_call_operand.vmem [shape: bf16[256,128], index: 1, kind: input, shape index: {}]   ;;  %s449_s0 = inlined_call_operand.vmem [shape: bf16[24,256], index: 0, kind: input, shape index: {}]   ;;  %s450_s2 = inlined_call_operand.vmem [shape: f32[1,128], index: 2, kind: input, shape index: {}]   ;;  %s451_s3 = inlined_call_operand.vmem [shape: bf16[24,128], index: 3, kind: output, shape index: {}]  }
   0x1   :  { %v335_v0 = vld [vmem:[%s448_s1 + $0x40] sm:$0xff]   ;;  %v337_v2 = vld [vmem:[%s448_s1 + $0x48] sm:$0xff]   ;;  %v339_v4 = vld [vmem:[%s448_s1 + $0x50] sm:$0xff]  }
   0x2   :  { %v336_v1 = vld [vmem:[%s448_s1] sm:$0xff]   ;;  %291 = vmatprep.subr.bf16.mxu0 %v335_v0  ;;  %319 = vmatprep.subr.bf16.mxu1 %v335_v0  ;;  %v338_v3 = vld [vmem:[%s448_s1 + $0x8] sm:$0xff]   ;;  %v340_v5 = vld [vmem:[%s448_s1 + $0x10] sm:$0xff]  }
   0x3   :  { %292 = vmatpush3.bf16.msra.mxu0 %v336_v1  ;;  %327 = vmatpush3.bf16.msra.mxu1 %v336_v1  ;;  %v341_v6 = vld [vmem:[%s448_s1 + $0x58] sm:$0xff]   ;;  %v343_v8 = vld [vmem:[%s448_s1 + $0x60] sm:$0xff]   ;;  %v345_v10 = vld [vmem:[%s448_s1 + $0x68] sm:$0xff]  }
   0x4   :  { %293 = vmatprep.subr.bf16.mxu0 %v337_v2  ;;  %320 = vmatprep.subr.bf16.mxu1 %v337_v2  ;;  %v342_v7 = vld [vmem:[%s448_s1 + $0x18] sm:$0xff]   ;;  %v344_v9 = vld [vmem:[%s448_s1 + $0x20] sm:$0xff]   ;;  %v17_v12 = vld [vmem:[%s449_s0 + $0x10] sm:$0xff] }
   0x5   :  { %v353_v11 = vld [vmem:[%s449_s0 + $0x4] ss:$8 sps:$4 sm:$0xff]   ;;  %v260_v13 = vcombine.high %v17_v12, %v17_v12  ;;  %v347_v15 = vld [vmem:[%s448_s1 + $0x70] sm:$0xff]   ;;  %v349_v17 = vld [vmem:[%s448_s1 + $0x78] sm:$0xff]   ;;  %v259_v20 = vcombine.low %v17_v12, %v17_v12 }
   0x6   :  { %v346_v14 = vld [vmem:[%s448_s1 + $0x28] sm:$0xff]   ;;  %202 = vmatprep.mubr.bf16.mxu0 %v353_v11  ;;  %v348_v16 = vld [vmem:[%s448_s1 + $0x30] sm:$0xff]   ;;  %v350_v18 = vld [vmem:[%s448_s1 + $0x38] sm:$0xff]  }
   0x7   :  { %294 = vmatpush3.bf16.msra.mxu0 %v338_v3  ;;  %328 = vmatpush3.bf16.msra.mxu1 %v338_v3  ;;  %v351_v19 = vld [vmem:[%s449_s0] ss:$8 sps:$4 sm:$0xff]  }
   0x8   :  { %295 = vmatprep.subr.bf16.mxu0 %v339_v4  ;;  %321 = vmatprep.subr.bf16.mxu1 %v339_v4  ;;  %v256_v23 = vld [vmem:[%s450_s2] ss:$0 sm:$0xff] }
   0x9   :  { %210 = vmatprep.mubr.bf16.mxu1 %v260_v13 }
   0xb   :  { %296 = vmatpush3.bf16.msra.mxu0 %v340_v5  ;;  %329 = vmatpush3.bf16.msra.mxu1 %v340_v5 }
   0xc   :  { %297 = vmatprep.subr.bf16.mxu0 %v341_v6  ;;  %322 = vmatprep.subr.bf16.mxu1 %v341_v6 }
   0xf   :  { %298 = vmatpush3.bf16.msra.mxu0 %v342_v7  ;;  %330 = vmatpush3.bf16.msra.mxu1 %v342_v7 }
  0x10   :  { %299 = vmatprep.subr.bf16.mxu0 %v343_v8  ;;  %323 = vmatprep.subr.bf16.mxu1 %v343_v8 }
  0x13   :  { %300 = vmatpush3.bf16.msra.mxu0 %v344_v9  ;;  %331 = vmatpush3.bf16.msra.mxu1 %v344_v9 }
  0x14   :  { %301 = vmatprep.subr.bf16.mxu0 %v345_v10  ;;  %324 = vmatprep.subr.bf16.mxu1 %v345_v10 }
  0x17   :  { %302 = vmatpush3.bf16.msra.mxu0 %v346_v14  ;;  %332 = vmatpush3.bf16.msra.mxu1 %v346_v14 }
  0x18   :  { %303 = vmatprep.subr.bf16.mxu0 %v347_v15  ;;  %325 = vmatprep.subr.bf16.mxu1 %v347_v15 }
  0x1b   :  { %304 = vmatpush3.bf16.msra.mxu0 %v348_v16  ;;  %333 = vmatpush3.bf16.msra.mxu1 %v348_v16 }
  0x1c   :  { %305 = vmatprep.subr.bf16.mxu0 %v349_v17  ;;  %326 = vmatprep.subr.bf16.mxu1 %v349_v17 }
  0x1f   :  { %306 = vmatpush3.bf16.msra.mxu0 %v350_v18  ;;  %334 = vmatpush3.bf16.msra.mxu1 %v350_v18 }
  0x22   :  { %203 = vmatmul.mubr.bf16.vlgmr.msra.gmra.mrb[0].mxu0 %v351_v19  ;;  %211 = vmatmul.mubr.bf16.vlgmr.msra.gmra.mrb[0].mxu1 %v259_v20 }
  0xf5   :  { %v307_v21 = vpop.f32.mrb[0].mxu0  ;;  %v313_v22 = vpop.f32.mrb[0].mxu1 }
  0xf6   :  { %v308_v24 = vpop.f32.mrb[1].mxu0  ;;  %v314_v25 = vpop.f32.mrb[1].mxu1 }
  0xf7   :  { %v309_v26 = vadd.f32 %v308_v24, %v307_v21  ;;  %v315_v27 = vadd.f32 %v314_v25, %v313_v22  ;;  %v310_v28 = vpop.f32.mrb[2].mxu0  ;;  %v316_v29 = vpop.f32.mrb[2].mxu1 }
  0xf8   :  { %v311_v30 = vpop.f32.mrb[3].mxu0  ;;  %v317_v31 = vpop.f32.mrb[3].mxu1 }
  0xf9   :  { %v205_v32 = vadd.f32 %v309_v26, %v256_v23  ;;  %v213_v33 = vadd.f32 %v315_v27, %v256_v23  ;;  %v312_v34 = vadd.f32 %v311_v30, %v310_v28 }
  0xfb   :  { %v221_v35 = vmin.f32 %v205_v32, 0.0  ;;  %v223_v36 = vmin.f32 %v213_v33, 0.0  ;;  %v208_v37 = vadd.f32 %v312_v34, %v256_v23  ;;  %vm220_vm0 = vcmp.gt.f32.partialorder %v213_v33, 0.0 }
  0xfc   :  { %vm218_vm1 = vcmp.gt.f32.partialorder %v205_v32, 0.0 }
  0xfd   :  { %v224_v38 = vmul.f32 1.442695, %v221_v35  ;;  %v228_v39 = vmul.f32 1.442695, %v223_v36  ;;  %v222_v40 = vmin.f32 %v208_v37, 0.0  ;;  %vm219_vm2 = vcmp.gt.f32.partialorder %v208_v37, 0.0 }
  0xff   :  { %356 = vpow2.f32 %v224_v38  ;;  %v226_v41 = vmul.f32 1.442695, %v222_v40 }
 0x100   :  { %358 = vpow2.f32 %v228_v39 }
 0x101   :  { %360 = vpow2.f32 %v226_v41 }
 0x109   :  { %v357_v42 = vpop.eup %356 }
 0x10a   :  { %v359_v43 = vpop.eup %358  ;;  %v277_v44 = vadd.f32 -1.0, %v357_v42 }
 0x10b   :  { %v279_v45 = vadd.f32 -1.0, %v359_v43  ;;  %v361_v46 = vpop.eup %360 }
 0x10c   :  { %v278_v48 = vadd.f32 -1.0, %v361_v46  ;;  %v233_v50 = vsel %vm218_vm1, %v205_v32, %v277_v44 }
 0x10d   :  { %v235_v47 = vsel %vm220_vm0, %v213_v33, %v279_v45 }
 0x10e   :  { %v285_v49 = vpack.c.bf16 %v235_v47, %v235_v47  ;;  %v234_v51 = vsel %vm219_vm2, %v208_v37, %v278_v48 }
 0x10f   :  { %v289_v52 = vpack.c.bf16 %v234_v51, %v233_v50 }
 0x110   :  { %251 = vst [vmem:[%s451_s3 + $0x8] sm:$0xf] %v285_v49 }
 0x111   :  { %290 = vst [vmem:[%s451_s3] sm:$0xff] %v289_v52  }

// kernel: vae2d_forward.17
= control target key start
LH: loop header
LB: loop body
LE: loop exit
PB: predicated region body
PF: predicated region fallthrough
CT: control target
= control target key end

     0   :  { %vm766_vm0 = vcmask 261120   ;;  %s2479_s1 = inlined_call_operand.vmem [shape: bf16[800,128], index: 1, kind: input, shape index: {}]   ;;  %s2480_s0 = inlined_call_operand.vmem [shape: bf16[128,800], index: 0, kind: input, shape index: {}]   ;;  %s2481_s2 = inlined_call_operand.vmem [shape: f32[1,128], index: 2, kind: input, shape index: {}]   ;;  %s2482_s3 = inlined_call_operand.vmem [shape: bf16[128,128], index: 3, kind: output, shape index: {}]  }
   0x1   :  { %v1807_v0 = vld [vmem:[%s2479_s1 + $0x40] sm:$0xff]   ;;  %v1811_v4 = vld [vmem:[%s2479_s1 + $0x48] sm:$0xff]   ;;  %v1815_v8 = vld [vmem:[%s2479_s1 + $0x50] sm:$0xff]  }
   0x2   :  { %v1808_v1 = vld [vmem:[%s2479_s1 + $0xc0] sm:$0xff]   ;;  %1569 = vmatprep.subr.bf16.mxu0 %v1807_v0  ;;  %v1812_v5 = vld [vmem:[%s2479_s1 + $0xc8] sm:$0xff]   ;;  %v1816_v9 = vld [vmem:[%s2479_s1 + $0xd0] sm:$0xff]  }
   0x3   :  { %v1809_v2 = vld [vmem:[%s2479_s1] sm:$0xff]   ;;  %1633 = vmatprep.subr.bf16.mxu1 %v1808_v1  ;;  %v1813_v6 = vld [vmem:[%s2479_s1 + $0x8] sm:$0xff]   ;;  %v1817_v10 = vld [vmem:[%s2479_s1 + $0x10] sm:$0xff]  }
   0x4   :  { %v1810_v3 = vld [vmem:[%s2479_s1 + $0x80] sm:$0xff]   ;;  %1570 = vmatpush3.bf16.msra.mxu0 %v1809_v2  ;;  %v1814_v7 = vld [vmem:[%s2479_s1 + $0x88] sm:$0xff]   ;;  %v1818_v11 = vld [vmem:[%s2479_s1 + $0x90] sm:$0xff]  }
   0x5   :  { %1634 = vmatpush3.bf16.msra.mxu1 %v1810_v3  ;;  %1571 = vmatprep.subr.bf16.mxu0 %v1811_v4  ;;  %v1819_v12 = vld [vmem:[%s2479_s1 + $0x58] sm:$0xff]   ;;  %v1823_v16 = vld [vmem:[%s2479_s1 + $0x60] sm:$0xff]   ;;  %v1827_v20 = vld [vmem:[%s2479_s1 + $0x68] sm:$0xff]  }
   0x6   :  { %1635 = vmatprep.subr.bf16.mxu1 %v1812_v5  ;;  %v1820_v13 = vld [vmem:[%s2479_s1 + $0xd8] sm:$0xff]   ;;  %v1824_v17 = vld [vmem:[%s2479_s1 + $0xe0] sm:$0xff]   ;;  %v1828_v21 = vld [vmem:[%s2479_s1 + $0xe8] sm:$0xff]  }
   0x7   :  { %v1821_v14 = vld [vmem:[%s2479_s1 + $0x18] sm:$0xff]   ;;  %v1825_v18 = vld [vmem:[%s2479_s1 + $0x20] sm:$0xff]   ;;  %v1829_v22 = vld [vmem:[%s2479_s1 + $0x28] sm:$0xff]  }
   0x8   :  { %1572 = vmatpush3.bf16.msra.mxu0 %v1813_v6  ;;  %v1822_v15 = vld [vmem:[%s2479_s1 + $0x98] sm:$0xff]   ;;  %v1826_v19 = vld [vmem:[%s2479_s1 + $0xa0] sm:$0xff]   ;;  %v1830_v23 = vld [vmem:[%s2479_s1 + $0xa8] sm:$0xff]  }
   0x9   :  { %1636 = vmatpush3.bf16.msra.mxu1 %v1814_v7  ;;  %1573 = vmatprep.subr.bf16.mxu0 %v1815_v8  ;;  %v1831_v24 = vld [vmem:[%s2479_s1 + $0x70] sm:$0xff]   ;;  %v1835_v28 = vld [vmem:[%s2479_s1 + $0x78] sm:$0xff]   ;;  %v1841_v33 = vld [vmem:[%s2480_s0 + $0x4] ss:$28 sps:$4 sm:$0xff]  }
   0xa   :  { %1637 = vmatprep.subr.bf16.mxu1 %v1816_v9  ;;  %v1832_v25 = vld [vmem:[%s2479_s1 + $0xf0] sm:$0xff]   ;;  %v1836_v29 = vld [vmem:[%s2479_s1 + $0xf8] sm:$0xff]   ;;  %v1842_v34 = vld [vmem:[%s2480_s0 + $0x8] ss:$28 sps:$4 sm:$0xff]   ;;  %823 = vmatprep.mubr.bf16.mxu0 %v1841_v33 }
   0xb   :  { %v1833_v26 = vld [vmem:[%s2479_s1 + $0x30] sm:$0xff]   ;;  %v1837_v30 = vld [vmem:[%s2479_s1 + $0x38] sm:$0xff]   ;;  %v1844_v35 = vld [vmem:[%s2480_s0 + $0xc] ss:$28 sps:$4 sm:$0xff]  }
   0xc   :  { %1574 = vmatpush3.bf16.msra.mxu0 %v1817_v10  ;;  %v1834_v27 = vld [vmem:[%s2479_s1 + $0xb0] sm:$0xff]   ;;  %v1838_v31 = vld [vmem:[%s2479_s1 + $0xb8] sm:$0xff]   ;;  %v1845_v36 = vld [vmem:[%s2479_s1 + $0x140] sm:$0xff]   ;;  %920 = vmatprep.mubr.bf16.mxu1 %v1844_v35 }
   0xd   :  { %1638 = vmatpush3.bf16.msra.mxu1 %v1818_v11  ;;  %1575 = vmatprep.subr.bf16.mxu0 %v1819_v12  ;;  %v1839_v32 = vld [vmem:[%s2480_s0] ss:$28 sps:$4 sm:$0xff]   ;;  %v1851_v40 = vld [vmem:[%s2480_s0 + $0x38] ss:$28 sps:$4 sm:$0xff]   ;;  %v1853_v42 = vld [vmem:[%s2479_s1 + $0x148] sm:$0xff]  }
   0xe   :  { %1639 = vmatprep.subr.bf16.mxu1 %v1820_v13  ;;  %v1846_v37 = vld [vmem:[%s2479_s1 + $0x100] sm:$0xff]   ;;  %v1847_v38 = vld [vmem:[%s2480_s0 + $0x3c] ss:$28 sps:$4 sm:$0xff]   ;;  %v1854_v43 = vld [vmem:[%s2479_s1 + $0x108] sm:$0xff]  }
   0xf   :  { %v1849_v39 = vld [vmem:[%s2480_s0 + $0x44] ss:$28 sps:$4 sm:$0xff]   ;;  %v1855_v44 = vld [vmem:[%s2480_s0 + $0x74] ss:$28 sps:$4 sm:$0xff]   ;;  %v1857_v45 = vld [vmem:[%s2480_s0 + $0x7c] ss:$28 sps:$4 sm:$0xff]  }
  0x10   :  { %1576 = vmatpush3.bf16.msra.mxu0 %v1821_v14  ;;  %v1852_v41 = vld [vmem:[%s2480_s0 + $0x40] ss:$28 sps:$4 sm:$0xff]   ;;  %v1861_v46 = vld [vmem:[%s2479_s1 + $0x150] sm:$0xff]   ;;  %v1863_v50 = vld [vmem:[%s2480_s0 + $0xac] ss:$28 sps:$4 sm:$0xff]  }
  0x11   :  { %1640 = vmatpush3.bf16.msra.mxu1 %v1822_v15  ;;  %1577 = vmatprep.subr.bf16.mxu0 %v1823_v16  ;;  %v1862_v47 = vld [vmem:[%s2479_s1 + $0x110] sm:$0xff]   ;;  %v1869_v52 = vld [vmem:[%s2479_s1 + $0x158] sm:$0xff]   ;;  %v1877_v54 = vld [vmem:[%s2479_s1 + $0x160] sm:$0xff]  }
  0x12   :  { %1641 = vmatprep.subr.bf16.mxu1 %v1824_v17  ;;  %v1859_v48 = vld [vmem:[%s2480_s0 + $0x70] ss:$28 sps:$4 sm:$0xff]   ;;  %v1860_v49 = vld [vmem:[%s2480_s0 + $0x78] ss:$28 sps:$4 sm:$0xff]   ;;  %v1878_v55 = vld [vmem:[%s2479_s1 + $0x120] sm:$0xff]  }
  0x13   :  { %v1865_v51 = vld [vmem:[%s2480_s0 + $0xb4] ss:$28 sps:$4 sm:$0xff]   ;;  %v1870_v53 = vld [vmem:[%s2479_s1 + $0x118] sm:$0xff]   ;;  %v1867_v56 = vld [vmem:[%s2480_s0 + $0xa8] ss:$28 sps:$4 sm:$0xff]  }
  0x14   :  { %1578 = vmatpush3.bf16.msra.mxu0 %v1825_v18  ;;  %v1868_v57 = vld [vmem:[%s2480_s0 + $0xb0] ss:$28 sps:$4 sm:$0xff]   ;;  %v1871_v58 = vld [vmem:[%s2480_s0 + $0xe4] ss:$28 sps:$4 sm:$0xff]   ;;  %v1879_v2 = vld [vmem:[%s2480_s0 + $0x11c] ss:$28 sps:$4 sm:$0xff]  }
  0x15   :  { %1642 = vmatpush3.bf16.msra.mxu1 %v1826_v19  ;;  %1579 = vmatprep.subr.bf16.mxu0 %v1827_v20  ;;  %v1873_v59 = vld [vmem:[%s2480_s0 + $0xec] ss:$28 sps:$4 sm:$0xff]   ;;  %v1875_v62 = vld [vmem:[%s2480_s0 + $0xe0] ss:$28 sps:$4 sm:$0xff]   ;;  %v1893_v0 = vld [vmem:[%s2479_s1 + $0x170] sm:$0xff]  }
  0x16   :  { %1643 = vmatprep.subr.bf16.mxu1 %v1828_v21  ;;  %v1885_v60 = vld [vmem:[%s2479_s1 + $0x168] sm:$0xff]   ;;  %v1894_v1 = vld [vmem:[%s2479_s1 + $0x130] sm:$0xff]   ;;  %v1881_v3 = vld [vmem:[%s2480_s0 + $0x124] ss:$28 sps:$4 sm:$0xff]  }
  0x17   :  { %v1886_v61 = vld [vmem:[%s2479_s1 + $0x128] sm:$0xff]   ;;  %v1901_v4 = vld [vmem:[%s2479_s1 + $0x178] sm:$0xff]   ;;  %v1909_v8 = vld [vmem:[%s2479_s1 + $0x180] sm:$0xff]  }
  0x18   :  { %1580 = vmatpush3.bf16.msra.mxu0 %v1829_v22  ;;  %v1876_v63 = vld [vmem:[%s2480_s0 + $0xe8] ss:$28 sps:$4 sm:$0xff]   ;;  %v1902_v5 = vld [vmem:[%s2479_s1 + $0x138] sm:$0xff]   ;;  %v1887_v9 = vld [vmem:[%s2480_s0 + $0x154] ss:$28 sps:$4 sm:$0xff]  }
  0x19   :  { %1644 = vmatpush3.bf16.msra.mxu1 %v1830_v23  ;;  %1581 = vmatprep.subr.bf16.mxu0 %v1831_v24  ;;  %v1883_v6 = vld [vmem:[%s2480_s0 + $0x118] ss:$28 sps:$4 sm:$0xff]   ;;  %v1884_v7 = vld [vmem:[%s2480_s0 + $0x120] ss:$28 sps:$4 sm:$0xff]   ;;  %v1891_v11 = vld [vmem:[%s2480_s0 + $0x150] ss:$28 sps:$4 sm:$0xff]  }
  0x1a   :  { %1645 = vmatprep.subr.bf16.mxu1 %v1832_v25  ;;  %v1889_v10 = vld [vmem:[%s2480_s0 + $0x15c] ss:$28 sps:$4 sm:$0xff]   ;;  %v1895_v13 = vld [vmem:[%s2480_s0 + $0x18c] ss:$28 sps:$4 sm:$0xff]   ;;  %v1897_v14 = vld [vmem:[%s2480_s0 + $0x194] ss:$28 sps:$4 sm:$0xff]  }
  0x1b   :  { %v1892_v12 = vld [vmem:[%s2480_s0 + $0x158] ss:$28 sps:$4 sm:$0xff]   ;;  %v1899_v15 = vld [vmem:[%s2480_s0 + $0x188] ss:$28 sps:$4 sm:$0xff]   ;;  %v1900_v16 = vld [vmem:[%s2480_s0 + $0x190] ss:$28 sps:$4 sm:$0xff]  }
  0x1c   :  { %1582 = vmatpush3.bf16.msra.mxu0 %v1833_v26  ;;  %v1905_v17 = vld [vmem:[%s2480_s0 + $0x14] ss:$28 sps:$4 sm:$0xff]   ;;  %v1908_v18 = vld [vmem:[%s2480_s0 + $0x164] ss:$28 sps:$4 sm:$0xff]   ;;  %v1910_v21 = vld [vmem:[%s2480_s0 + $0x4c] ss:$28 sps:$4 sm:$0xff]  }
  0x1d   :  { %1646 = vmatpush3.bf16.msra.mxu1 %v1834_v27  ;;  %1583 = vmatprep.subr.bf16.mxu0 %v1835_v28  ;;  %v1903_v19 = vld [vmem:[%s2480_s0 + $0x10] ss:$28 sps:$4 sm:$0xff]   ;;  %v1906_v20 = vld [vmem:[%s2480_s0 + $0x160] ss:$28 sps:$4 sm:$0xff]   ;;  %v1914_v24 = vld [vmem:[%s2480_s0 + $0x48] ss:$28 sps:$4 sm:$0xff]  }
  0x1e   :  { %1647 = vmatprep.subr.bf16.mxu1 %v1836_v29  ;;  %v1912_v22 = vld [vmem:[%s2480_s0 + $0x19c] ss:$28 sps:$4 sm:$0xff]   ;;  %v1916_v23 = vld [vmem:[%s2479_s1 + $0x188] sm:$0xff]   ;;  %v1917_v26 = vld [vmem:[%s2480_s0 + $0x84] ss:$28 sps:$4 sm:$0xff]  }
  0x1f   :  { %v1915_v25 = vld [vmem:[%s2480_s0 + $0x198] ss:$28 sps:$4 sm:$0xff]   ;;  %v1920_v28 = vld [vmem:[%s2480_s0 + $0x80] ss:$28 sps:$4 sm:$0xff]   ;;  %v1921_v29 = vld [vmem:[%s2480_s0 + $0x50] ss:$28 sps:$4 sm:$0xff]  }
  0x20   :  { %1584 = vmatpush3.bf16.msra.mxu0 %v1837_v30  ;;  %v1919_v27 = vld [vmem:[%s2480_s0 + $0x18] ss:$28 sps:$4 sm:$0xff]   ;;  %v1926_v33 = vld [vmem:[%s2480_s0 + $0xc0] ss:$28 sps:$4 sm:$0xff]  }
  0x21   :  { %1648 = vmatpush3.bf16.msra.mxu1 %v1838_v31  ;;  %1697 = vmatprep.subr.bf16.mxu0 %v1845_v36  ;;  %v1922_v30 = vld [vmem:[%s2480_s0 + $0xbc] ss:$28 sps:$4 sm:$0xff]   ;;  %v1924_v31 = vld [vmem:[%s2480_s0 + $0x88] ss:$28 sps:$4 sm:$0xff]  }
  0x22   :  { %1791 = vmatprep.subr.bf16.mxu1 %v1845_v36  ;;  %v1929_v35 = vld [vmem:[%s2480_s0 + $0xf8] ss:$28 sps:$4 sm:$0xff]   ;;  %v1930_v36 = vld [vmem:[%s2480_s0 + $0xf0] ss:$28 sps:$4 sm:$0xff]  }
  0x23   :  { %824 = vmatmul.mubr.bf16.vlgmr.msra.gmra.mrb[0].mxu0 %v1839_v32  ;;  %v1925_v32 = vld [vmem:[%s2480_s0 + $0xb8] ss:$28 sps:$4 sm:$0xff]  }
  0x24   :  { %921 = vmatmul.mubr.bf16.vlgmr.msra.gmra.mrb[0].mxu1 %v1842_v34  ;;  %1698 = vmatpush3.bf16.msra.mxu0 %v1846_v37  ;;  %v1927_v34 = vld [vmem:[%s2480_s0 + $0xf4] ss:$28 sps:$4 sm:$0xff]  }
  0x25   :  { %1799 = vmatpush3.bf16.msra.mxu1 %v1846_v37  ;;  %831 = vmatprep.mubr.bf16.mxu0 %v1847_v38  ;;  %v1931_v37 = vld [vmem:[%s2480_s0 + $0x130] ss:$28 sps:$4 sm:$0xff]  }
  0x26   :  { %928 = vmatprep.mubr.bf16.mxu1 %v1849_v39  ;;  %1699 = vmatprep.subr.bf16.mxu0 %v1853_v42  ;;  %v1932_v38 = vld [vmem:[%s2480_s0 + $0x12c] ss:$28 sps:$4 sm:$0xff]  }
  0x27   :  { %1792 = vmatprep.subr.bf16.mxu1 %v1853_v42  ;;  %v1934_v39 = vld [vmem:[%s2480_s0 + $0x168] ss:$28 sps:$4 sm:$0xff]  }
  0x28   :  { %1700 = vmatpush3.bf16.msra.mxu0 %v1854_v43 }
  0x29   :  { %1800 = vmatpush3.bf16.msra.mxu1 %v1854_v43  ;;  %1701 = vmatprep.subr.bf16.mxu0 %v1861_v46  ;;  %v2318_v43 = vld [vmem:[%s2481_s2] ss:$0 sm:$0xff] }
  0x2a   :  { %1793 = vmatprep.subr.bf16.mxu1 %v1861_v46 }
  0x2b   :  { %832 = vmatmul.mubr.bf16.gmra.mrb[4].mxu0 %v1851_v40  ;;  %v1935_v40 = vld [vmem:[%s2480_s0 + $0x128] ss:$28 sps:$4 sm:$0xff]  }
  0x2c   :  { %929 = vmatmul.mubr.bf16.gmra.mrb[4].mxu1 %v1852_v41  ;;  %839 = vmatprep.mubr.bf16.mxu0 %v1855_v44  ;;  %v1936_v41 = vld [vmem:[%s2480_s0 + $0x1a0] ss:$28 sps:$4 sm:$0xff]  }
  0x2d   :  { %936 = vmatprep.mubr.bf16.mxu1 %v1857_v45  ;;  %1702 = vmatpush3.bf16.msra.mxu0 %v1862_v47 }
  0x2e   :  { %1801 = vmatpush3.bf16.msra.mxu1 %v1862_v47  ;;  %1703 = vmatprep.subr.bf16.mxu0 %v1869_v52 }
  0x2f   :  { %1794 = vmatprep.subr.bf16.mxu1 %v1869_v52 }
  0x31   :  { %1704 = vmatpush3.bf16.msra.mxu0 %v1870_v53 }
  0x32   :  { %1802 = vmatpush3.bf16.msra.mxu1 %v1870_v53  ;;  %1705 = vmatprep.subr.bf16.mxu0 %v1877_v54 }
  0x33   :  { %840 = vmatmul.mubr.bf16.gmra.mrb[8].mxu0 %v1859_v48  ;;  %1795 = vmatprep.subr.bf16.mxu1 %v1877_v54 }
  0x34   :  { %937 = vmatmul.mubr.bf16.gmra.mrb[8].mxu1 %v1860_v49  ;;  %847 = vmatprep.mubr.bf16.mxu0 %v1863_v50 }
  0x35   :  { %944 = vmatprep.mubr.bf16.mxu1 %v1865_v51  ;;  %1706 = vmatpush3.bf16.msra.mxu0 %v1878_v55 }
  0x36   :  { %1803 = vmatpush3.bf16.msra.mxu1 %v1878_v55  ;;  %1707 = vmatprep.subr.bf16.mxu0 %v1885_v60 }
  0x37   :  { %1796 = vmatprep.subr.bf16.mxu1 %v1885_v60 }
  0x39   :  { %1708 = vmatpush3.bf16.msra.mxu0 %v1886_v61 }
  0x3a   :  { %1804 = vmatpush3.bf16.msra.mxu1 %v1886_v61  ;;  %1709 = vmatprep.subr.bf16.mxu0 %v1893_v0 }
  0x3b   :  { %848 = vmatmul.mubr.bf16.gmra.mrb[12].mxu0 %v1867_v56  ;;  %1797 = vmatprep.subr.bf16.mxu1 %v1893_v0 }
  0x3c   :  { %945 = vmatmul.mubr.bf16.gmra.mrb[12].mxu1 %v1868_v57  ;;  %855 = vmatprep.mubr.bf16.mxu0 %v1871_v58 }
  0x3d   :  { %952 = vmatprep.mubr.bf16.mxu1 %v1873_v59  ;;  %1710 = vmatpush3.bf16.msra.mxu0 %v1894_v1 }
  0x3e   :  { %1805 = vmatpush3.bf16.msra.mxu1 %v1894_v1  ;;  %1711 = vmatprep.subr.bf16.mxu0 %v1901_v4 }
  0x3f   :  { %1798 = vmatprep.subr.bf16.mxu1 %v1901_v4 }
  0x41   :  { %1712 = vmatpush3.bf16.msra.mxu0 %v1902_v5 }
  0x42   :  { %1806 = vmatpush3.bf16.msra.mxu1 %v1902_v5 }
  0x43   :  { %856 = vmatmul.mubr.bf16.gmra.mrb[16].mxu0 %v1875_v62  ;;  %1771 = vmatprep.subr.bf16.mxu1 %v1909_v8 }
  0x44   :  { %953 = vmatmul.mubr.bf16.gmra.mrb[16].mxu1 %v1876_v63  ;;  %863 = vmatprep.mubr.bf16.mxu0 %v1879_v2 }
  0x45   :  { %960 = vmatprep.mubr.bf16.mxu1 %v1881_v3 }
  0x4b   :  { %864 = vmatmul.mubr.bf16.gmra.mrb[20].mxu0 %v1883_v6 }
  0x4c   :  { %961 = vmatmul.mubr.bf16.gmra.mrb[20].mxu1 %v1884_v7  ;;  %871 = vmatprep.mubr.bf16.mxu0 %v1887_v9 }
  0x4d   :  { %968 = vmatprep.mubr.bf16.mxu1 %v1889_v10 }
  0x53   :  { %872 = vmatmul.mubr.bf16.gmra.mrb[24].mxu0 %v1891_v11 }
  0x54   :  { %969 = vmatmul.mubr.bf16.gmra.mrb[24].mxu1 %v1892_v12  ;;  %879 = vmatprep.mubr.bf16.mxu0 %v1895_v13 }
  0x55   :  { %976 = vmatprep.mubr.bf16.mxu1 %v1897_v14 }
  0x5b   :  { %880 = vmatmul.mubr.bf16.gmra.mrb[28].mxu0 %v1899_v15 }
  0x5c   :  { %977 = vmatmul.mubr.bf16.gmra.mrb[28].mxu1 %v1900_v16  ;;  %1017 = vmatprep.mubr.bf16.mxu0 %v1905_v17 }
  0x5d   :  { %1065 = vmatprep.mubr.bf16.mxu1 %v1908_v18 }
  0x63   :  { %1018 = vmatmul.mubr.bf16.vlgmr.msra.gmra.mrb[32].mxu0 %v1903_v19 }
  0x64   :  { %1066 = vmatmul.mubr.bf16.vlgmr.msra.gmra.mrb[32].mxu1 %v1906_v20  ;;  %1025 = vmatprep.mubr.bf16.mxu0 %v1910_v21 }
  0x65   :  { %1772 = vmatpush3.bf16.msra.mxu1 %v1909_v8  ;;  %1073 = vmatprep.mubr.bf16.mxu1 %v1912_v22 }
  0x66   :  { %1773 = vmatprep.subr.bf16.mxu1 %v1916_v23 }
  0x69   :  { %1774 = vmatpush3.bf16.msra.mxu1 %v1916_v23 }
  0x6b   :  { %1026 = vmatmul.mubr.bf16.gmra.mrb[36].mxu0 %v1914_v24 }
  0x6c   :  { %1074 = vmatmul.mubr.bf16.gmra.mrb[36].mxu1 %v1915_v25  ;;  %1033 = vmatprep.mubr.bf16.mxu0 %v1917_v26 }
  0x6d   :  { %1775 = vmatprep.mubr.msk.bf16.mxu1 %vm766_vm0, %v1919_v27 }
  0x73   :  { %1034 = vmatmul.mubr.bf16.gmra.mrb[40].mxu0 %v1920_v28 }
  0x74   :  { %1776 = vmatmul.mubr.msk.bf16.vlgmr.msra.gmra.mrb[40].mxu1 %vm766_vm0, %v1921_v29  ;;  %1041 = vmatprep.mubr.bf16.mxu0 %v1922_v30 }
  0x75   :  { %1779 = vmatprep.mubr.msk.bf16.mxu1 %vm766_vm0, %v1924_v31 }
  0x7b   :  { %1042 = vmatmul.mubr.bf16.gmra.mrb[44].mxu0 %v1925_v32 }
  0x7c   :  { %1780 = vmatmul.mubr.msk.bf16.gmra.mrb[44].mxu1 %vm766_vm0, %v1926_v33  ;;  %1049 = vmatprep.mubr.bf16.mxu0 %v1927_v34 }
  0x7d   :  { %1783 = vmatprep.mubr.msk.bf16.mxu1 %vm766_vm0, %v1929_v35 }
  0x83   :  { %1050 = vmatmul.mubr.bf16.gmra.mrb[48].mxu0 %v1930_v36 }
  0x84   :  { %1784 = vmatmul.mubr.msk.bf16.gmra.mrb[48].mxu1 %vm766_vm0, %v1931_v37  ;;  %1057 = vmatprep.mubr.bf16.mxu0 %v1932_v38 }
  0x85   :  { %1787 = vmatprep.mubr.msk.bf16.mxu1 %vm766_vm0, %v1934_v39 }
  0x8b   :  { %1058 = vmatmul.mubr.bf16.gmra.mrb[52].mxu0 %v1935_v40 }
  0x8c   :  { %1788 = vmatmul.mubr.msk.bf16.gmra.mrb[52].mxu1 %vm766_vm0, %v1936_v41 }
  0xf6   :  { %v1585_v42 = vpop.f32.mrb[0].mxu0 }
  0xf7   :  { %v1586_v44 = vpop.f32.mrb[1].mxu0  ;;  %v1649_v45 = vpop.f32.mrb[0].mxu1 }
  0xf8   :  { %v1587_v46 = vadd.f32 %v1586_v44, %v1585_v42  ;;  %v1588_v47 = vpop.f32.mrb[2].mxu0  ;;  %v1650_v48 = vpop.f32.mrb[1].mxu1 }
  0xf9   :  { %v1589_v49 = vpop.f32.mrb[3].mxu0  ;;  %v1651_v50 = vadd.f32 %v1650_v48, %v1649_v45  ;;  %v1652_v51 = vpop.f32.mrb[2].mxu1 }
  0xfa   :  { %v826_v52 = vadd.f32 %v1587_v46, %v2318_v43  ;;  %v1590_v53 = vadd.f32 %v1589_v49, %v1588_v47  ;;  %v1653_v54 = vpop.f32.mrb[3].mxu1 }
  0xfb   :  { %v1654_v55 = vadd.f32 %v1653_v54, %v1652_v51 }
  0xfc   :  { %v829_v56 = vadd.f32 %v1590_v53, %v2318_v43  ;;  %v2322_v57 = vadd.f32 %v1651_v50, %v826_v52 }
  0xfe   :  { %v2324_v58 = vadd.f32 %v1654_v55, %v829_v56  ;;  %v1591_v59 = vpop.f32.mrb[4].mxu0 }
  0xff   :  { %v1592_v60 = vpop.f32.mrb[5].mxu0  ;;  %v1655_v61 = vpop.f32.mrb[4].mxu1 }
 0x100   :  { %v1593_v62 = vadd.f32 %v1592_v60, %v1591_v59  ;;  %v1594_v63 = vpop.f32.mrb[6].mxu0  ;;  %v1656_v0 = vpop.f32.mrb[5].mxu1 }
 0x101   :  { %v1595_v1 = vpop.f32.mrb[7].mxu0  ;;  %v1657_v2 = vadd.f32 %v1656_v0, %v1655_v61  ;;  %v1658_v3 = vpop.f32.mrb[6].mxu1 }
 0x102   :  { %v834_v4 = vadd.f32 %v1593_v62, %v2318_v43  ;;  %v1596_v5 = vadd.f32 %v1595_v1, %v1594_v63  ;;  %v1659_v6 = vpop.f32.mrb[7].mxu1 }
 0x103   :  { %v1660_v7 = vadd.f32 %v1659_v6, %v1658_v3 }
 0x104   :  { %v837_v8 = vadd.f32 %v1596_v5, %v2318_v43  ;;  %v2328_v9 = vadd.f32 %v1657_v2, %v834_v4 }
 0x106   :  { %v2330_v10 = vadd.f32 %v1660_v7, %v837_v8  ;;  %v1597_v11 = vpop.f32.mrb[8].mxu0 }
 0x107   :  { %v1598_v12 = vpop.f32.mrb[9].mxu0  ;;  %v1661_v13 = vpop.f32.mrb[8].mxu1 }
 0x108   :  { %v1599_v14 = vadd.f32 %v1598_v12, %v1597_v11  ;;  %v1600_v15 = vpop.f32.mrb[10].mxu0  ;;  %v1662_v16 = vpop.f32.mrb[9].mxu1 }
 0x109   :  { %v1601_v17 = vpop.f32.mrb[11].mxu0  ;;  %v1663_v18 = vadd.f32 %v1662_v16, %v1661_v13  ;;  %v1664_v19 = vpop.f32.mrb[10].mxu1 }
 0x10a   :  { %v842_v20 = vadd.f32 %v1599_v14, %v2318_v43  ;;  %v1602_v21 = vadd.f32 %v1601_v17, %v1600_v15  ;;  %v1665_v22 = vpop.f32.mrb[11].mxu1 }
 0x10b   :  { %v1666_v23 = vadd.f32 %v1665_v22, %v1664_v19 }
 0x10c   :  { %v845_v24 = vadd.f32 %v1602_v21, %v2318_v43  ;;  %v2334_v25 = vadd.f32 %v1663_v18, %v842_v20 }
 0x10e   :  { %v2336_v26 = vadd.f32 %v1666_v23, %v845_v24  ;;  %v1603_v27 = vpop.f32.mrb[12].mxu0 }
 0x10f   :  { %v1604_v28 = vpop.f32.mrb[13].mxu0  ;;  %v1667_v29 = vpop.f32.mrb[12].mxu1 }
 0x110   :  { %v1605_v30 = vadd.f32 %v1604_v28, %v1603_v27  ;;  %v1606_v31 = vpop.f32.mrb[14].mxu0  ;;  %v1668_v32 = vpop.f32.mrb[13].mxu1 }
 0x111   :  { %v1607_v33 = vpop.f32.mrb[15].mxu0  ;;  %v1669_v34 = vadd.f32 %v1668_v32, %v1667_v29  ;;  %v1670_v35 = vpop.f32.mrb[14].mxu1 }
 0x112   :  { %v850_v36 = vadd.f32 %v1605_v30, %v2318_v43  ;;  %v1608_v37 = vadd.f32 %v1607_v33, %v1606_v31  ;;  %v1671_v38 = vpop.f32.mrb[15].mxu1 }
 0x113   :  { %v1672_v39 = vadd.f32 %v1671_v38, %v1670_v35 }
 0x114   :  { %v853_v40 = vadd.f32 %v1608_v37, %v2318_v43  ;;  %v2340_v41 = vadd.f32 %v1669_v34, %v850_v36 }
 0x116   :  { %v2342_v42 = vadd.f32 %v1672_v39, %v853_v40  ;;  %v1609_v44 = vpop.f32.mrb[16].mxu0 }
 0x117   :  { %v1610_v45 = vpop.f32.mrb[17].mxu0  ;;  %v1673_v46 = vpop.f32.mrb[16].mxu1 }
 0x118   :  { %v1611_v47 = vadd.f32 %v1610_v45, %v1609_v44  ;;  %v1612_v48 = vpop.f32.mrb[18].mxu0  ;;  %v1674_v49 = vpop.f32.mrb[17].mxu1 }
 0x119   :  { %v1613_v50 = vpop.f32.mrb[19].mxu0  ;;  %v1675_v51 = vadd.f32 %v1674_v49, %v1673_v46  ;;  %v1676_v52 = vpop.f32.mrb[18].mxu1 }
 0x11a   :  { %v858_v53 = vadd.f32 %v1611_v47, %v2318_v43  ;;  %v1614_v54 = vadd.f32 %v1613_v50, %v1612_v48  ;;  %v1677_v55 = vpop.f32.mrb[19].mxu1 }
 0x11b   :  { %v1678_v56 = vadd.f32 %v1677_v55, %v1676_v52 }
 0x11c   :  { %v861_v59 = vadd.f32 %v1614_v54, %v2318_v43  ;;  %v2346_v60 = vadd.f32 %v1675_v51, %v858_v53 }
 0x11e   :  { %v2348_v61 = vadd.f32 %v1678_v56, %v861_v59  ;;  %v1615_v62 = vpop.f32.mrb[20].mxu0 }
 0x11f   :  { %v1616_v63 = vpop.f32.mrb[21].mxu0  ;;  %v1679_v0 = vpop.f32.mrb[20].mxu1 }
 0x120   :  { %v1617_v1 = vadd.f32 %v1616_v63, %v1615_v62  ;;  %v1618_v2 = vpop.f32.mrb[22].mxu0  ;;  %v1680_v3 = vpop.f32.mrb[21].mxu1 }
 0x121   :  { %v1619_v4 = vpop.f32.mrb[23].mxu0  ;;  %v1681_v5 = vadd.f32 %v1680_v3, %v1679_v0  ;;  %v1682_v6 = vpop.f32.mrb[22].mxu1 }
 0x122   :  { %v866_v7 = vadd.f32 %v1617_v1, %v2318_v43  ;;  %v1620_v8 = vadd.f32 %v1619_v4, %v1618_v2  ;;  %v1683_v11 = vpop.f32.mrb[23].mxu1 }
 0x123   :  { %v1684_v12 = vadd.f32 %v1683_v11, %v1682_v6 }
 0x124   :  { %v869_v13 = vadd.f32 %v1620_v8, %v2318_v43  ;;  %v2352_v14 = vadd.f32 %v1681_v5, %v866_v7 }
 0x126   :  { %v2354_v15 = vadd.f32 %v1684_v12, %v869_v13  ;;  %v1621_v16 = vpop.f32.mrb[24].mxu0 }
 0x127   :  { %v1622_v17 = vpop.f32.mrb[25].mxu0  ;;  %v1685_v18 = vpop.f32.mrb[24].mxu1 }
 0x128   :  { %v1623_v19 = vadd.f32 %v1622_v17, %v1621_v16  ;;  %v1624_v20 = vpop.f32.mrb[26].mxu0  ;;  %v1686_v21 = vpop.f32.mrb[25].mxu1 }
 0x129   :  { %v1625_v22 = vpop.f32.mrb[27].mxu0  ;;  %v1687_v23 = vadd.f32 %v1686_v21, %v1685_v18  ;;  %v1688_v24 = vpop.f32.mrb[26].mxu1 }
 0x12a   :  { %v874_v27 = vadd.f32 %v1623_v19, %v2318_v43  ;;  %v1626_v28 = vadd.f32 %v1625_v22, %v1624_v20  ;;  %v1689_v29 = vpop.f32.mrb[27].mxu1 }
 0x12b   :  { %v1690_v30 = vadd.f32 %v1689_v29, %v1688_v24 }
 0x12c   :  { %v877_v31 = vadd.f32 %v1626_v28, %v2318_v43  ;;  %v971_v32 = vadd.f32 %v1687_v23, %v874_v27 }
 0x12e   :  { %v974_v33 = vadd.f32 %v1690_v30, %v877_v31  ;;  %v1627_v34 = vpop.f32.mrb[28].mxu0 }
 0x12f   :  { %v1628_v35 = vpop.f32.mrb[29].mxu0  ;;  %v1691_v36 = vpop.f32.mrb[28].mxu1 }
 0x130   :  { %v1629_v37 = vadd.f32 %v1628_v35, %v1627_v34  ;;  %v1630_v38 = vpop.f32.mrb[30].mxu0  ;;  %v1692_v39 = vpop.f32.mrb[29].mxu1 }
 0x131   :  { %v1631_v40 = vpop.f32.mrb[31].mxu0  ;;  %v1693_v44 = vadd.f32 %v1692_v39, %v1691_v36  ;;  %v1694_v45 = vpop.f32.mrb[30].mxu1 }
 0x132   :  { %v882_v46 = vadd.f32 %v1629_v37, %v2318_v43  ;;  %v1632_v47 = vadd.f32 %v1631_v40, %v1630_v38  ;;  %v1695_v48 = vpop.f32.mrb[31].mxu1 }
 0x133   :  { %v1696_v49 = vadd.f32 %v1695_v48, %v1694_v45 }
 0x134   :  { %v885_v50 = vadd.f32 %v1632_v47, %v2318_v43  ;;  %v979_v51 = vadd.f32 %v1693_v44, %v882_v46 }
 0x136   :  { %v982_v52 = vadd.f32 %v1696_v49, %v885_v50  ;;  %v1713_v53 = vpop.f32.mrb[32].mxu0 }
 0x137   :  { %v1749_v54 = vpop.f32.mrb[32].mxu1  ;;  %v1714_v55 = vpop.f32.mrb[33].mxu0 }
 0x138   :  { %v1715_v56 = vadd.f32 %v1714_v55, %v1713_v53  ;;  %v1750_v59 = vpop.f32.mrb[33].mxu1  ;;  %v1716_v62 = vpop.f32.mrb[34].mxu0 }
 0x139   :  { %v1751_v63 = vadd.f32 %v1750_v59, %v1749_v54  ;;  %v1752_v0 = vpop.f32.mrb[34].mxu1  ;;  %v1717_v1 = vpop.f32.mrb[35].mxu0 }
 0x13a   :  { %v1718_v2 = vadd.f32 %v1717_v1, %v1716_v62  ;;  %v1753_v3 = vpop.f32.mrb[35].mxu1  ;;  %v1020_v4 = vadd.f32 %v1715_v56, %v2322_v57 }
 0x13b   :  { %v1754_v5 = vadd.f32 %v1753_v3, %v1752_v0  ;;  %v2361_v6 = vadd.f32 %v1751_v63, %v971_v32 }
 0x13c   :  { %v1023_v43 = vadd.f32 %v1718_v2, %v2324_v58 }
 0x13d   :  { %v2364_v7 = vadd.f32 %v1754_v5, %v974_v33 }
 0x13e   :  { %v1719_v8 = vpop.f32.mrb[36].mxu0 }
 0x13f   :  { %v1755_v11 = vpop.f32.mrb[36].mxu1  ;;  %v1720_v12 = vpop.f32.mrb[37].mxu0 }
 0x140   :  { %v1721_v13 = vadd.f32 %v1720_v12, %v1719_v8  ;;  %v1756_v16 = vpop.f32.mrb[37].mxu1  ;;  %v1722_v17 = vpop.f32.mrb[38].mxu0 }
 0x141   :  { %v1757_v18 = vadd.f32 %v1756_v16, %v1755_v11  ;;  %v1758_v19 = vpop.f32.mrb[38].mxu1  ;;  %v1723_v20 = vpop.f32.mrb[39].mxu0 }
 0x142   :  { %v1724_v21 = vadd.f32 %v1723_v20, %v1722_v17  ;;  %v1759_v22 = vpop.f32.mrb[39].mxu1  ;;  %v1028_v57 = vadd.f32 %v1721_v13, %v2328_v9 }
 0x143   :  { %v1760_v23 = vadd.f32 %v1759_v22, %v1758_v19  ;;  %v2367_v24 = vadd.f32 %v1757_v18, %v979_v51 }
 0x144   :  { %v1031_v58 = vadd.f32 %v1724_v21, %v2330_v10 }
 0x145   :  { %v2370_v27 = vadd.f32 %v1760_v23, %v982_v52 }
 0x146   :  { %v1725_v28 = vpop.f32.mrb[40].mxu0 }
 0x147   :  { %v1777_v29 = vpop.f32.mrb[40].mxu1  ;;  %v1726_v30 = vpop.f32.mrb[41].mxu0 }
 0x148   :  { %v2372_v31 = vadd.f32 %v1777_v29, %v1028_v57  ;;  %v1727_v32 = vadd.f32 %v1726_v30, %v1725_v28  ;;  %v1116_v33 = vpop.f32.mrb[41].mxu1  ;;  %v1728_v34 = vpop.f32.mrb[42].mxu0 }
 0x149   :  { %v2374_v35 = vadd.f32 %v1116_v33, %v1020_v4  ;;  %v1778_v36 = vpop.f32.mrb[42].mxu1  ;;  %v1729_v37 = vpop.f32.mrb[43].mxu0 }
 0x14a   :  { %v1197_v9 = vmin.f32 %v2372_v31, 0.0  ;;  %v2377_v38 = vadd.f32 %v1778_v36, %v1031_v58  ;;  %v1730_v39 = vadd.f32 %v1729_v37, %v1728_v34  ;;  %v1119_v10 = vpop.f32.mrb[43].mxu1  ;;  %v1036_v45 = vadd.f32 %v1727_v32, %v2334_v25 }
 0x14b   :  { %v1195_v40 = vmin.f32 %v2374_v35, 0.0  ;;  %v2380_v44 = vadd.f32 %v1119_v10, %v1023_v43  ;;  %vm1181_vm1 = vcmp.gt.f32.partialorder %v2372_v31, 0.0  ;;  %vm1179_vm2 = vcmp.gt.f32.partialorder %v2374_v35, 0.0 }
 0x14c   :  { %v1215_v46 = vmul.f32 1.442695, %v1197_v9  ;;  %v1198_v47 = vmin.f32 %v2377_v38, 0.0  ;;  %v1039_v48 = vadd.f32 %v1730_v39, %v2336_v26  ;;  %vm1182_vm3 = vcmp.gt.f32.partialorder %v2377_v38, 0.0 }
 0x14d   :  { %v1211_v49 = vmul.f32 1.442695, %v1195_v40  ;;  %v1196_v50 = vmin.f32 %v2380_v44, 0.0  ;;  %vm1180_vm4 = vcmp.gt.f32.partialorder %v2380_v44, 0.0 }
 0x14e   :  { %1937 = vpow2.f32 %v1215_v46  ;;  %v1217_v51 = vmul.f32 1.442695, %v1198_v47  ;;  %v1731_v52 = vpop.f32.mrb[44].mxu0 }
 0x14f   :  { %1939 = vpow2.f32 %v1211_v49  ;;  %v1213_v53 = vmul.f32 1.442695, %v1196_v50  ;;  %v1781_v54 = vpop.f32.mrb[44].mxu1  ;;  %v1732_v55 = vpop.f32.mrb[45].mxu0 }
 0x150   :  { %1941 = vpow2.f32 %v1217_v51  ;;  %v1733_v56 = vadd.f32 %v1732_v55, %v1731_v52  ;;  %v1132_v59 = vpop.f32.mrb[45].mxu1  ;;  %v1734_v62 = vpop.f32.mrb[46].mxu0 }
 0x151   :  { %1943 = vpow2.f32 %v1213_v53  ;;  %v2386_v25 = vadd.f32 %v1132_v59, %v1036_v45  ;;  %v1782_v63 = vpop.f32.mrb[46].mxu1  ;;  %v1735_v0 = vpop.f32.mrb[47].mxu0 }
 0x152   :  { %v1044_v26 = vadd.f32 %v1733_v56, %v2340_v41  ;;  %v1736_v1 = vadd.f32 %v1735_v0, %v1734_v62  ;;  %v1135_v2 = vpop.f32.mrb[47].mxu1 }
 0x153   :  { %v1199_v3 = vmin.f32 %v2386_v25, 0.0  ;;  %v2390_v4 = vadd.f32 %v1135_v2, %v1039_v48  ;;  %vm1183_vm5 = vcmp.gt.f32.partialorder %v2386_v25, 0.0 }
 0x154   :  { %v2392_v5 = vadd.f32 %v1781_v54, %v1044_v26  ;;  %v1047_v43 = vadd.f32 %v1736_v1, %v2342_v42 }
 0x155   :  { %v1219_v8 = vmul.f32 1.442695, %v1199_v3  ;;  %v1200_v11 = vmin.f32 %v2390_v4, 0.0  ;;  %vm1184_vm6 = vcmp.gt.f32.partialorder %v2390_v4, 0.0 }
 0x156   :  { %v1201_v12 = vmin.f32 %v2392_v5, 0.0  ;;  %v2397_v13 = vadd.f32 %v1782_v63, %v1047_v43  ;;  %v1737_v16 = vpop.f32.mrb[48].mxu0  ;;  %vm1185_vm7 = vcmp.gt.f32.partialorder %v2392_v5, 0.0 }
 0x157   :  { %1945 = vpow2.f32 %v1219_v8  ;;  %v1221_v41 = vmul.f32 1.442695, %v1200_v11  ;;  %v1738_v17 = vpop.f32.mrb[49].mxu0  ;;  %v2399_v18 = vpop.f32.mrb[48].mxu1 }
 0x158   :  { %v1938_v19 = vpop.eup %1937  ;;  %v1223_v20 = vmul.f32 1.442695, %v1201_v12  ;;  %v1202_v21 = vmin.f32 %v2397_v13, 0.0  ;;  %v1739_v22 = vadd.f32 %v1738_v17, %v1737_v16  ;;  %v1740_v57 = vpop.f32.mrb[50].mxu0  ;;  %vm1186_vm8 = vcmp.gt.f32.partialorder %v2397_v13, 0.0 }
 0x159   :  { %v1148_v42 = vpop.f32.mrb[49].mxu1  ;;  %v1940_v23 = vpop.eup %1939  ;;  %v1476_v58 = vadd.f32 -1.0, %v1938_v19  ;;  %1947 = vpow2.f32 %v1221_v41 }
 0x15a   :  { %v1741_v28 = vpop.f32.mrb[51].mxu0  ;;  %v2402_v29 = vpop.f32.mrb[50].mxu1  ;;  %v1474_v32 = vadd.f32 -1.0, %v1940_v23  ;;  %1949 = vpow2.f32 %v1223_v20  ;;  %v1225_v33 = vmul.f32 1.442695, %v1202_v21  ;;  %v1052_v39 = vadd.f32 %v1739_v22, %v2346_v60 }
 0x15b   :  { %v1942_v30 = vpop.eup %1941  ;;  %v1742_v34 = vadd.f32 %v1741_v28, %v1740_v57  ;;  %v1151_v36 = vpop.f32.mrb[51].mxu1  ;;  %v1261_v45 = vsel %vm1181_vm1, %v2372_v31, %v1476_v58 }
 0x15c   :  { %v1944_v37 = vpop.eup %1943  ;;  %v1477_v9 = vadd.f32 -1.0, %v1942_v30  ;;  %1951 = vpow2.f32 %v1225_v33  ;;  %v2412_v47 = vadd.f32 %v1148_v42, %v1052_v39  ;;  %v1259_v48 = vsel %vm1179_vm2, %v2374_v35, %v1474_v32 }
 0x15d   :  { %v1475_v10 = vadd.f32 -1.0, %v1944_v37  ;;  %v1055_v40 = vadd.f32 %v1742_v34, %v2348_v61 }
 0x15e   :  { %v1262_v46 = vsel %vm1182_vm3, %v2377_v38, %v1477_v9  ;;  %v1743_v51 = vpop.f32.mrb[52].mxu0  ;;  %v1203_v53 = vmin.f32 %v2412_v47, 0.0  ;;  %vm1187_vm9 = vcmp.gt.f32.partialorder %v2412_v47, 0.0 }
 0x15f   :  { %v1530_v49 = vpack.c.bf16 %v1262_v46, %v1261_v45  ;;  %v1260_v50 = vsel %vm1180_vm4, %v2380_v44, %v1475_v10  ;;  %v2416_v60 = vadd.f32 %v1151_v36, %v1055_v40  ;;  %v1789_v61 = vpop.f32.mrb[52].mxu1  ;;  %v1744_v54 = vpop.f32.mrb[53].mxu0 }
 0x160   :  { %v1525_v52 = vpack.c.bf16 %v1260_v50, %v1259_v48  ;;  %v2424_v38 = vadd.f32 %v1789_v61, %v2367_v24  ;;  %v1745_v35 = vadd.f32 %v1744_v54, %v1743_v51  ;;  %v1164_v55 = vpop.f32.mrb[53].mxu1  ;;  %v1746_v44 = vpop.f32.mrb[54].mxu0  ;;  %v1227_v59 = vmul.f32 1.442695, %v1203_v53 }
 0x161   :  { %1562 = vst [vmem:[%s2482_s3 + $0x8] sm:$0xff] %v1530_v49   ;;  %v1204_v31 = vmin.f32 %v2416_v60, 0.0  ;;  %v1946_v56 = vpop.eup %1945  ;;  %v2430_v62 = vadd.f32 %v1164_v55, %v2361_v6  ;;  %v1790_v63 = vpop.f32.mrb[54].mxu1  ;;  %vm1188_vm10 = vcmp.gt.f32.partialorder %v2416_v60, 0.0 }
 0x162   :  { %1526 = vst [vmem:[%s2482_s3] sm:$0xff] %v1525_v52   ;;  %v1747_v0 = vpop.f32.mrb[55].mxu0  ;;  %v1478_v26 = vadd.f32 -1.0, %v1946_v56  ;;  %v1209_v2 = vmin.f32 %v2424_v38, 0.0  ;;  %v1167_v24 = vpop.f32.mrb[55].mxu1  ;;  %1953 = vpow2.f32 %v1227_v59  ;;  %v1060_v43 = vadd.f32 %v1745_v35, %v2352_v14 }
 0x163   :  { %v1229_v1 = vmul.f32 1.442695, %v1204_v31  ;;  %v1948_v3 = vpop.eup %1947  ;;  %v1207_v8 = vmin.f32 %v2430_v62, 0.0  ;;  %v1176_v19 = vadd.f32 %v1790_v63, %v2370_v27  ;;  %v1748_v22 = vadd.f32 %v1747_v0, %v1746_v44 }
 0x164   :  { %v1950_v11 = vpop.eup %1949  ;;  %v1479_v6 = vadd.f32 -1.0, %v1948_v3  ;;  %v1239_v12 = vmul.f32 1.442695, %v1209_v2  ;;  %v1263_v41 = vsel %vm1183_vm5, %v2386_v25, %v1478_v26  ;;  %v2439_v17 = vadd.f32 %v2399_v18, %v1060_v43 }
 0x165   :  { %1955 = vpow2.f32 %v1229_v1  ;;  %v1480_v16 = vadd.f32 -1.0, %v1950_v11  ;;  %v1235_v14 = vmul.f32 1.442695, %v1207_v8  ;;  %v1168_v57 = vadd.f32 %v1167_v24, %v2364_v7 }
 0x166   :  { %v1952_v20 = vpop.eup %1951  ;;  %v1264_v21 = vsel %vm1184_vm6, %v2390_v4, %v1479_v6  ;;  %1957 = vpow2.f32 %v1239_v12  ;;  %v1205_v25 = vmin.f32 %v2439_v17, 0.0  ;;  %v1210_v18 = vmin.f32 %v1176_v19, 0.0 }
 0x167   :  { %v1481_v42 = vadd.f32 -1.0, %v1952_v20  ;;  %v1535_v23 = vpack.c.bf16 %v1264_v21, %v1263_v41  ;;  %v1265_v58 = vsel %vm1185_vm7, %v2392_v5, %v1480_v16  ;;  %v1063_v7 = vadd.f32 %v1748_v22, %v2354_v15 }
 0x168   :  { %v1208_v4 = vmin.f32 %v1168_v57, 0.0  ;;  %v1231_v30 = vmul.f32 1.442695, %v1205_v25  ;;  %1959 = vpow2.f32 %v1235_v14  ;;  %v1241_v32 = vmul.f32 1.442695, %v1210_v18 }
 0x169   :  { %v1266_v27 = vsel %vm1186_vm8, %v2397_v13, %v1481_v42  ;;  %1563 = vst [vmem:[%s2482_s3 + $0x10] sm:$0xff] %v1535_v23   ;;  %v1160_v33 = vadd.f32 %v2402_v29, %v1063_v7  ;;  %vm1193_vm11 = vcmp.gt.f32.partialorder %v2424_v38, 0.0  ;;  %vm1191_vm12 = vcmp.gt.f32.partialorder %v2430_v62, 0.0 }
 0x16a   :  { %v1540_v28 = vpack.c.bf16 %v1266_v27, %v1265_v58  ;;  %v1237_v34 = vmul.f32 1.442695, %v1208_v4  ;;  %1961 = vpow2.f32 %v1231_v30  ;;  %vm1194_vm13 = vcmp.gt.f32.partialorder %v1176_v19, 0.0 }
 0x16b   :  { %1963 = vpow2.f32 %v1241_v32  ;;  %v1206_v13 = vmin.f32 %v1160_v33, 0.0  ;;  %vm1192_vm14 = vcmp.gt.f32.partialorder %v1168_v57, 0.0  ;;  %vm1189_vm15 = vcmp.gt.f32.partialorder %v2439_v17, 0.0 }
 0x16c   :  { %1564 = vst [vmem:[%s2482_s3 + $0x18] sm:$0xff] %v1540_v28   ;;  %v1954_v5 = vpop.eup %1953  ;;  %1965 = vpow2.f32 %v1237_v34  ;;  %vm1190_vm0 = vcmp.gt.f32.partialorder %v1160_v33, 0.0 }
 0x16d   :  { %v1482_v37 = vadd.f32 -1.0, %v1954_v5  ;;  %v1233_v9 = vmul.f32 1.442695, %v1206_v13 }
 0x16f   :  { %v1956_v36 = vpop.eup %1955  ;;  %v1267_v29 = vsel %vm1187_vm9, %v2412_v47, %v1482_v37  ;;  %1967 = vpow2.f32 %v1233_v9 }
 0x170   :  { %v1483_v15 = vadd.f32 -1.0, %v1956_v36  ;;  %v1958_v10 = vpop.eup %1957 }
 0x171   :  { %v1488_v48 = vadd.f32 -1.0, %v1958_v10 }
 0x172   :  { %v1268_v39 = vsel %vm1188_vm10, %v2416_v60, %v1483_v15  ;;  %v1960_v45 = vpop.eup %1959 }
 0x173   :  { %v1545_v40 = vpack.c.bf16 %v1268_v39, %v1267_v29  ;;  %v1486_v50 = vadd.f32 -1.0, %v1960_v45  ;;  %v1273_v60 = vsel %vm1193_vm11, %v2424_v38, %v1488_v48 }
 0x174   :  { %v1962_v46 = vpop.eup %1961 }
 0x175   :  { %1565 = vst [vmem:[%s2482_s3 + $0x20] sm:$0xff] %v1545_v40   ;;  %v1964_v49 = vpop.eup %1963  ;;  %v1484_v53 = vadd.f32 -1.0, %v1962_v46  ;;  %v1271_v31 = vsel %vm1191_vm12, %v2430_v62, %v1486_v50 }
 0x176   :  { %v1966_v51 = vpop.eup %1965  ;;  %v1489_v52 = vadd.f32 -1.0, %v1964_v49 }
 0x177   :  { %v1487_v47 = vadd.f32 -1.0, %v1966_v51  ;;  %v1269_v59 = vsel %vm1189_vm15, %v2439_v17, %v1484_v53 }
 0x178   :  { %v1274_v61 = vsel %vm1194_vm13, %v1176_v19, %v1489_v52 }
 0x179   :  { %v1968_v54 = vpop.eup %1967  ;;  %v1560_v35 = vpack.c.bf16 %v1274_v61, %v1273_v60  ;;  %v1272_v55 = vsel %vm1192_vm14, %v1168_v57, %v1487_v47 }
 0x17a   :  { %v1485_v44 = vadd.f32 -1.0, %v1968_v54  ;;  %v1555_v56 = vpack.c.bf16 %v1272_v55, %v1271_v31 }
 0x17b   :  { %1568 = vst [vmem:[%s2482_s3 + $0x38] sm:$0xff] %v1560_v35  }
 0x17c   :  { %v1270_v38 = vsel %vm1190_vm0, %v1160_v33, %v1485_v44  ;;  %1567 = vst [vmem:[%s2482_s3 + $0x30] sm:$0xff] %v1555_v56  }
 0x17d   :  { %v1550_v63 = vpack.c.bf16 %v1270_v38, %v1269_v59 }
 0x17f   :  { %1566 = vst [vmem:[%s2482_s3 + $0x28] sm:$0xff] %v1550_v63  }

// kernel: vae2d_forward.18
= control target key start
LH: loop header
LB: loop body
LE: loop exit
PB: predicated region body
PF: predicated region fallthrough
CT: control target
= control target key end

     0   :  { %s2177_s12 = smov 0   ;;  %s2549_s0 = inlined_call_operand.vmem [shape: bf16[512,400], index: 0, kind: input, shape index: {}]   ;;  %s2550_s1 = inlined_call_operand.vmem [shape: bf16[400,128], index: 1, kind: input, shape index: {}]   ;;  %s2551_s2 = inlined_call_operand.vmem [shape: f32[1,128], index: 2, kind: input, shape index: {}]   ;;  %s2552_s3 = inlined_call_operand.vmem [shape: bf16[512,128], index: 3, kind: output, shape index: {}]  }
   0x1 LB: > { %s1532_s13 = sadd.s32 4294967295, %s2154_s12   ;;  %p1536_p0 = scmp.ge.s32.totalorder %s2154_s12, 1  ;;  %s2154_s12 = sphi %s2177_s12, %s13_s12  }
   0x2   : > { %p139_p1 = scmp.lt.s32.totalorder %s2154_s12, 3 }
   0x4   : > { %p140_p2 = pnand %p1536_p0, %p139_p1 }
   0x5   : > { %v1963_v0 = vld [vmem:[%s2550_s1 + $0x40] sm:$0xff] (!%p140_p2)   ;;  %v2156_v1 = vmov (!%p140_p2), 0   ;;  %v1966_v4 = vld [vmem:[%s2550_s1 + $0x48] sm:$0xff] (!%p140_p2)   ;;  %v1969_v7 = vld [vmem:[%s2550_s1 + $0x50] sm:$0xff] (!%p140_p2)   ;;  %s1537_s5 = sshll.u32 (!%p140_p2), %s1532_s13, 5  ;;  %vm753_vm0 = vcmask (!%p140_p2), 130048  }
   0x6   : > { %143 = sbr.rel (%p140_p2) target bundleno = 401 (0x191), region = 32  ;;  %963 = vmatprep.subr.bf16.mxu1 (!%p140_p2), %v2156_v1  ;;  %v1964_v2 = vld [vmem:[%s2550_s1 + $0x80] sm:$0xff] (!%p140_p2)   ;;  %1842 = vmatprep.subr.bf16.mxu0 (!%p140_p2), %v1963_v0  ;;  %v1967_v5 = vld [vmem:[%s2550_s1 + $0x88] sm:$0xff] (!%p140_p2)   ;;  %v1970_v8 = vld [vmem:[%s2550_s1 + $0x90] sm:$0xff] (!%p140_p2)   ;;  %p165_p3 = scmp.lt.s32.totalorder (!%p140_p2), %s1537_s5, 63 }
   0x7   : > { %v1965_v3 = vld [vmem:[%s2550_s1] sm:$0xff] (!%p140_p2)   ;;  %964 = vmatpush1.bf16.msra.mxu1 (!%p140_p2), %v1964_v2  ;;  %v1968_v6 = vld [vmem:[%s2550_s1 + $0x8] sm:$0xff] (!%p140_p2)   ;;  %v1971_v9 = vld [vmem:[%s2550_s1 + $0x10] sm:$0xff] (!%p140_p2)  }
   0x8   : > { %1843 = vmatpush3.bf16.msra.mxu0 (!%p140_p2), %v1965_v3  ;;  %965 = vmatprep.subr.bf16.mxu1 (!%p140_p2), %v2156_v1  ;;  %v1972_v10 = vld [vmem:[%s2550_s1 + $0x58] sm:$0xff] (!%p140_p2)   ;;  %v1975_v13 = vld [vmem:[%s2550_s1 + $0x60] sm:$0xff] (!%p140_p2)   ;;  %v1978_v16 = vld [vmem:[%s2550_s1 + $0x68] sm:$0xff] (!%p140_p2)  }
   0x9   : > { %1844 = vmatprep.subr.bf16.mxu0 (!%p140_p2), %v1966_v4  ;;  %v1973_v11 = vld [vmem:[%s2550_s1 + $0x98] sm:$0xff] (!%p140_p2)   ;;  %v1976_v14 = vld [vmem:[%s2550_s1 + $0xa0] sm:$0xff] (!%p140_p2)   ;;  %v1979_v17 = vld [vmem:[%s2550_s1 + $0xa8] sm:$0xff] (!%p140_p2)  }
   0xa   : > { %v1974_v12 = vld [vmem:[%s2550_s1 + $0x18] sm:$0xff] (!%p140_p2)   ;;  %v1977_v15 = vld [vmem:[%s2550_s1 + $0x20] sm:$0xff] (!%p140_p2)   ;;  %v1980_v18 = vld [vmem:[%s2550_s1 + $0x28] sm:$0xff] (!%p140_p2)  }
   0xb   : > { %966 = vmatpush1.bf16.msra.mxu1 (!%p140_p2), %v1967_v5  ;;  %v1981_v19 = vld [vmem:[%s2550_s1 + $0x70] sm:$0xff] (!%p140_p2)   ;;  %v1984_v22 = vld [vmem:[%s2550_s1 + $0x78] sm:$0xff] (!%p140_p2)   ;;  %v1990_v28 = vld [vmem:[%s2550_s1 + $0xc0] sm:$0xff] (!%p140_p2)  }
   0xc   : > { %1845 = vmatpush3.bf16.msra.mxu0 (!%p140_p2), %v1968_v6  ;;  %967 = vmatprep.subr.bf16.mxu1 (!%p140_p2), %v2156_v1  ;;  %v1982_v20 = vld [vmem:[%s2550_s1 + $0xb0] sm:$0xff] (!%p140_p2)   ;;  %v1985_v24 = vld [vmem:[%s2550_s1 + $0xb8] sm:$0xff] (!%p140_p2)  }
   0xd   : > { %1846 = vmatprep.subr.bf16.mxu0 %v1969_v7  ;;  %s2554_s5 = smov (!%p165_p3, %s1537_s5), 63  ;;  %v1983_v21 = vld [vmem:[%s2550_s1 + $0x30] sm:$0xff]   ;;  %v1986_v26 = vld [vmem:[%s2550_s1 + $0x38] sm:$0xff]  }
   0xe   : > { %s1714_s23 = sshll.u32 %s2554_s5, 4  ;;  %s1541_s20 = sshll.u32 %s2554_s5, 2 }
   0xf   : > { %968 = vmatpush1.bf16.msra.mxu1 %v1970_v8  ;;  %s2257_s6 = scalar_lea.vmem %s2549_s0, %s1714_s23  ;;  %s2384_s23 = scalar_lea.vmem %s2552_s3, %s1541_s20 }
  0x10   : > { %1847 = vmatpush3.bf16.msra.mxu0 %v1971_v9  ;;  %969 = vmatprep.subr.bf16.mxu1 %v2156_v1  ;;  %v1989_v23 = vld [vmem:[%s2257_s6 + $0x4] ss:$16 sps:$4 sm:$0xff]   ;;  %v1993_v25 = vld [vmem:[%s2257_s6 + $0xc] ss:$16 sps:$4 sm:$0xff]   ;;  %v1987_v27 = vld [vmem:[%s2257_s6] ss:$16 sps:$4 sm:$0xff]  }
  0x11   : > { %1848 = vmatprep.subr.bf16.mxu0 %v1972_v10  ;;  %834 = vmatprep.mubr.bf16.mxu0 %v1989_v23  ;;  %v1994_v29 = vld [vmem:[%s2257_s6 + $0x24] ss:$16 sps:$4 sm:$0xff]   ;;  %v1991_v30 = vld [vmem:[%s2257_s6 + $0x8] ss:$16 sps:$4 sm:$0xff]   ;;  %v1997_v31 = vld [vmem:[%s2257_s6 + $0x2c] ss:$16 sps:$4 sm:$0xff]  }
  0x12   : > { %1632 = vmatprep.mubr.msk.bf16.mxu1 %vm753_vm0, %v1993_v25  ;;  %v1996_v32 = vld [vmem:[%s2257_s6 + $0x20] ss:$16 sps:$4 sm:$0xff]   ;;  %v2000_v33 = vld [vmem:[%s2257_s6 + $0x44] ss:$16 sps:$4 sm:$0xff]   ;;  %v1999_v34 = vld [vmem:[%s2257_s6 + $0x28] ss:$16 sps:$4 sm:$0xff]  }
  0x13   : > { %970 = vmatpush1.bf16.msra.mxu1 %v1973_v11  ;;  %v2003_v35 = vld [vmem:[%s2257_s6 + $0x4c] ss:$16 sps:$4 sm:$0xff]   ;;  %v2002_v36 = vld [vmem:[%s2257_s6 + $0x40] ss:$16 sps:$4 sm:$0xff]   ;;  %v2006_v37 = vld [vmem:[%s2257_s6 + $0x64] ss:$16 sps:$4 sm:$0xff]  }
  0x14   : > { %1849 = vmatpush3.bf16.msra.mxu0 %v1974_v12  ;;  %971 = vmatprep.subr.bf16.mxu1 %v2156_v1  ;;  %v2005_v38 = vld [vmem:[%s2257_s6 + $0x48] ss:$16 sps:$4 sm:$0xff]   ;;  %v2009_v39 = vld [vmem:[%s2257_s6 + $0x6c] ss:$16 sps:$4 sm:$0xff]   ;;  %v2008_v40 = vld [vmem:[%s2257_s6 + $0x60] ss:$16 sps:$4 sm:$0xff]  }
  0x15   : > { %1850 = vmatprep.subr.bf16.mxu0 %v1975_v13  ;;  %v2012_v41 = vld [vmem:[%s2257_s6 + $0x84] ss:$16 sps:$4 sm:$0xff]   ;;  %v2011_v42 = vld [vmem:[%s2257_s6 + $0x68] ss:$16 sps:$4 sm:$0xff]   ;;  %v2015_v43 = vld [vmem:[%s2257_s6 + $0x8c] ss:$16 sps:$4 sm:$0xff]  }
  0x16   : > { %v2014_v44 = vld [vmem:[%s2257_s6 + $0x80] ss:$16 sps:$4 sm:$0xff]   ;;  %v2018_v45 = vld [vmem:[%s2257_s6 + $0xa4] ss:$16 sps:$4 sm:$0xff]   ;;  %v2017_v46 = vld [vmem:[%s2257_s6 + $0x88] ss:$16 sps:$4 sm:$0xff]  }
  0x17   : > { %972 = vmatpush1.bf16.msra.mxu1 %v1976_v14  ;;  %v2021_v47 = vld [vmem:[%s2257_s6 + $0xac] ss:$16 sps:$4 sm:$0xff]   ;;  %v2020_v48 = vld [vmem:[%s2257_s6 + $0xa0] ss:$16 sps:$4 sm:$0xff]   ;;  %v2024_v49 = vld [vmem:[%s2257_s6 + $0xc4] ss:$16 sps:$4 sm:$0xff]  }
  0x18   : > { %1851 = vmatpush3.bf16.msra.mxu0 %v1977_v15  ;;  %973 = vmatprep.subr.bf16.mxu1 %v2156_v1  ;;  %v2023_v50 = vld [vmem:[%s2257_s6 + $0xa8] ss:$16 sps:$4 sm:$0xff]   ;;  %v2027_v51 = vld [vmem:[%s2257_s6 + $0xcc] ss:$16 sps:$4 sm:$0xff]   ;;  %v2026_v52 = vld [vmem:[%s2257_s6 + $0xc0] ss:$16 sps:$4 sm:$0xff]  }
  0x19   : > { %1852 = vmatprep.subr.bf16.mxu0 %v1978_v16  ;;  %v2030_v53 = vld [vmem:[%s2257_s6 + $0xe4] ss:$16 sps:$4 sm:$0xff]   ;;  %v2029_v54 = vld [vmem:[%s2257_s6 + $0xc8] ss:$16 sps:$4 sm:$0xff]   ;;  %v2033_v55 = vld [vmem:[%s2257_s6 + $0xec] ss:$16 sps:$4 sm:$0xff]  }
  0x1a   : > { %v2032_v56 = vld [vmem:[%s2257_s6 + $0xe0] ss:$16 sps:$4 sm:$0xff]   ;;  %v2036_v57 = vld [vmem:[%s2257_s6 + $0x104] ss:$16 sps:$4 sm:$0xff]   ;;  %v2035_v58 = vld [vmem:[%s2257_s6 + $0xe8] ss:$16 sps:$4 sm:$0xff]  }
  0x1b   : > { %974 = vmatpush1.bf16.msra.mxu1 %v1979_v17  ;;  %v2039_v59 = vld [vmem:[%s2257_s6 + $0x10c] ss:$16 sps:$4 sm:$0xff]   ;;  %v2038_v60 = vld [vmem:[%s2257_s6 + $0x100] ss:$16 sps:$4 sm:$0xff]   ;;  %v2042_v61 = vld [vmem:[%s2257_s6 + $0x124] ss:$16 sps:$4 sm:$0xff]  }
  0x1c   : > { %1853 = vmatpush3.bf16.msra.mxu0 %v1980_v18  ;;  %975 = vmatprep.subr.bf16.mxu1 %v2156_v1  ;;  %v2041_v62 = vld [vmem:[%s2257_s6 + $0x108] ss:$16 sps:$4 sm:$0xff]   ;;  %v2045_v63 = vld [vmem:[%s2257_s6 + $0x12c] ss:$16 sps:$4 sm:$0xff]   ;;  %v2044_v0 = vld [vmem:[%s2257_s6 + $0x120] ss:$16 sps:$4 sm:$0xff]  }
  0x1d   : > { %1854 = vmatprep.subr.bf16.mxu0 %v1981_v19  ;;  %v2047_v2 = vld [vmem:[%s2257_s6 + $0x128] ss:$16 sps:$4 sm:$0xff]   ;;  %v2051_v3 = vld [vmem:[%s2257_s6 + $0x14c] ss:$16 sps:$4 sm:$0xff]   ;;  %v2050_v4 = vld [vmem:[%s2257_s6 + $0x140] ss:$16 sps:$4 sm:$0xff]  }
  0x1e   : > { %v2054_v5 = vld [vmem:[%s2257_s6 + $0x164] ss:$16 sps:$4 sm:$0xff]   ;;  %v2053_v6 = vld [vmem:[%s2257_s6 + $0x148] ss:$16 sps:$4 sm:$0xff]   ;;  %v2057_v7 = vld [vmem:[%s2257_s6 + $0x16c] ss:$16 sps:$4 sm:$0xff]  }
  0x1f   : > { %976 = vmatpush1.bf16.msra.mxu1 %v1982_v20  ;;  %v2056_v8 = vld [vmem:[%s2257_s6 + $0x160] ss:$16 sps:$4 sm:$0xff]   ;;  %v2060_v9 = vld [vmem:[%s2257_s6 + $0x184] ss:$16 sps:$4 sm:$0xff]   ;;  %v2059_v10 = vld [vmem:[%s2257_s6 + $0x168] ss:$16 sps:$4 sm:$0xff]  }
  0x20   : > { %1855 = vmatpush3.bf16.msra.mxu0 %v1983_v21  ;;  %977 = vmatprep.subr.bf16.mxu1 %v2156_v1  ;;  %v2063_v11 = vld [vmem:[%s2257_s6 + $0x18c] ss:$16 sps:$4 sm:$0xff]   ;;  %v2062_v12 = vld [vmem:[%s2257_s6 + $0x180] ss:$16 sps:$4 sm:$0xff]   ;;  %v2066_v13 = vld [vmem:[%s2257_s6 + $0x1a4] ss:$16 sps:$4 sm:$0xff]  }
  0x21   : > { %1856 = vmatprep.subr.bf16.mxu0 %v1984_v22  ;;  %v2065_v14 = vld [vmem:[%s2257_s6 + $0x188] ss:$16 sps:$4 sm:$0xff]   ;;  %v2069_v15 = vld [vmem:[%s2257_s6 + $0x1ac] ss:$16 sps:$4 sm:$0xff]   ;;  %v2068_v16 = vld [vmem:[%s2257_s6 + $0x1a0] ss:$16 sps:$4 sm:$0xff]  }
  0x22   : > { %v2072_v17 = vld [vmem:[%s2257_s6 + $0x1c4] ss:$16 sps:$4 sm:$0xff]   ;;  %v2071_v18 = vld [vmem:[%s2257_s6 + $0x1a8] ss:$16 sps:$4 sm:$0xff]   ;;  %v2075_v19 = vld [vmem:[%s2257_s6 + $0x1cc] ss:$16 sps:$4 sm:$0xff]  }
  0x23   : > { %978 = vmatpush1.bf16.msra.mxu1 %v1985_v24  ;;  %v2074_v20 = vld [vmem:[%s2257_s6 + $0x1c0] ss:$16 sps:$4 sm:$0xff]   ;;  %v2078_v21 = vld [vmem:[%s2257_s6 + $0x1e4] ss:$16 sps:$4 sm:$0xff]   ;;  %v2077_v22 = vld [vmem:[%s2257_s6 + $0x1c8] ss:$16 sps:$4 sm:$0xff]  }
  0x24   : > { %1857 = vmatpush3.bf16.msra.mxu0 %v1986_v26  ;;  %979 = vmatprep.subr.bf16.mxu1 %v2156_v1  ;;  %v2048_v1 = vld [vmem:[%s2257_s6 + $0x144] ss:$16 sps:$4 sm:$0xff]   ;;  %v2081_v23 = vld [vmem:[%s2257_s6 + $0x1ec] ss:$16 sps:$4 sm:$0xff]   ;;  %v2080_v24 = vld [vmem:[%s2257_s6 + $0x1e0] ss:$16 sps:$4 sm:$0xff]  }
  0x25   : > { %v2083_v25 = vld [vmem:[%s2257_s6 + $0x1e8] ss:$16 sps:$4 sm:$0xff]  }
  0x27   : > { %835 = vmatmul.mubr.bf16.vlgmr.msra.gmra.mrb[0].mxu0 %v1987_v27  ;;  %980 = vmatpush1.bf16.msra.mxu1 %v1990_v28  ;;  %v2360_v28 = vld [vmem:[%s2551_s2] ss:$0 sm:$0xff] }
  0x28   : > { %842 = vmatprep.mubr.bf16.mxu0 %v1994_v29 }
  0x2a   : > { %996 = vmatmul.mubr.bf16.vlgmr.msra.gmra.mrb[0].mxu1 %v1991_v30 }
  0x2b   : > { %1633 = vmatprep.mubr.msk.bf16.mxu1 %vm753_vm0, %v1997_v31 }
  0x2f   : > { %843 = vmatmul.mubr.bf16.gmra.mrb[4].mxu0 %v1996_v32 }
  0x30   : > { %850 = vmatprep.mubr.bf16.mxu0 %v2000_v33 }
  0x32   : > { %1004 = vmatmul.mubr.bf16.gmra.mrb[4].mxu1 %v1999_v34 }
  0x33   : > { %1634 = vmatprep.mubr.msk.bf16.mxu1 %vm753_vm0, %v2003_v35 }
  0x37   : > { %851 = vmatmul.mubr.bf16.gmra.mrb[8].mxu0 %v2002_v36 }
  0x38   : > { %858 = vmatprep.mubr.bf16.mxu0 %v2006_v37 }
  0x3a   : > { %1012 = vmatmul.mubr.bf16.gmra.mrb[8].mxu1 %v2005_v38 }
  0x3b   : > { %1635 = vmatprep.mubr.msk.bf16.mxu1 %vm753_vm0, %v2009_v39 }
  0x3f   : > { %859 = vmatmul.mubr.bf16.gmra.mrb[12].mxu0 %v2008_v40 }
  0x40   : > { %866 = vmatprep.mubr.bf16.mxu0 %v2012_v41 }
  0x42   : > { %1020 = vmatmul.mubr.bf16.gmra.mrb[12].mxu1 %v2011_v42 }
  0x43   : > { %1636 = vmatprep.mubr.msk.bf16.mxu1 %vm753_vm0, %v2015_v43 }
  0x47   : > { %867 = vmatmul.mubr.bf16.gmra.mrb[16].mxu0 %v2014_v44 }
  0x48   : > { %874 = vmatprep.mubr.bf16.mxu0 %v2018_v45 }
  0x4a   : > { %1028 = vmatmul.mubr.bf16.gmra.mrb[16].mxu1 %v2017_v46 }
  0x4b   : > { %1637 = vmatprep.mubr.msk.bf16.mxu1 %vm753_vm0, %v2021_v47 }
  0x4f   : > { %875 = vmatmul.mubr.bf16.gmra.mrb[20].mxu0 %v2020_v48 }
  0x50   : > { %882 = vmatprep.mubr.bf16.mxu0 %v2024_v49 }
  0x52   : > { %1036 = vmatmul.mubr.bf16.gmra.mrb[20].mxu1 %v2023_v50 }
  0x53   : > { %1638 = vmatprep.mubr.msk.bf16.mxu1 %vm753_vm0, %v2027_v51 }
  0x57   : > { %883 = vmatmul.mubr.bf16.gmra.mrb[24].mxu0 %v2026_v52 }
  0x58   : > { %890 = vmatprep.mubr.bf16.mxu0 %v2030_v53 }
  0x5a   : > { %1044 = vmatmul.mubr.bf16.gmra.mrb[24].mxu1 %v2029_v54 }
  0x5b   : > { %1639 = vmatprep.mubr.msk.bf16.mxu1 %vm753_vm0, %v2033_v55 }
  0x5f   : > { %891 = vmatmul.mubr.bf16.gmra.mrb[28].mxu0 %v2032_v56 }
  0x60   : > { %898 = vmatprep.mubr.bf16.mxu0 %v2036_v57 }
  0x62   : > { %1052 = vmatmul.mubr.bf16.gmra.mrb[28].mxu1 %v2035_v58 }
  0x63   : > { %1640 = vmatprep.mubr.msk.bf16.mxu1 %vm753_vm0, %v2039_v59 }
  0x67   : > { %899 = vmatmul.mubr.bf16.gmra.mrb[32].mxu0 %v2038_v60 }
  0x68   : > { %906 = vmatprep.mubr.bf16.mxu0 %v2042_v61 }
  0x6a   : > { %1060 = vmatmul.mubr.bf16.gmra.mrb[32].mxu1 %v2041_v62 }
  0x6b   : > { %1641 = vmatprep.mubr.msk.bf16.mxu1 %vm753_vm0, %v2045_v63 }
  0x6f   : > { %907 = vmatmul.mubr.bf16.gmra.mrb[36].mxu0 %v2044_v0 }
  0x70   : > { %914 = vmatprep.mubr.bf16.mxu0 %v2048_v1 }
  0x72   : > { %1068 = vmatmul.mubr.bf16.gmra.mrb[36].mxu1 %v2047_v2 }
  0x73   : > { %1642 = vmatprep.mubr.msk.bf16.mxu1 %vm753_vm0, %v2051_v3 }
  0x77   : > { %915 = vmatmul.mubr.bf16.gmra.mrb[40].mxu0 %v2050_v4 }
  0x78   : > { %922 = vmatprep.mubr.bf16.mxu0 %v2054_v5 }
  0x7a   : > { %1076 = vmatmul.mubr.bf16.gmra.mrb[40].mxu1 %v2053_v6 }
  0x7b   : > { %1643 = vmatprep.mubr.msk.bf16.mxu1 %vm753_vm0, %v2057_v7 }
  0x7f   : > { %923 = vmatmul.mubr.bf16.gmra.mrb[44].mxu0 %v2056_v8 }
  0x80   : > { %930 = vmatprep.mubr.bf16.mxu0 %v2060_v9 }
  0x82   : > { %1084 = vmatmul.mubr.bf16.gmra.mrb[44].mxu1 %v2059_v10 }
  0x83   : > { %1644 = vmatprep.mubr.msk.bf16.mxu1 %vm753_vm0, %v2063_v11 }
  0x87   : > { %931 = vmatmul.mubr.bf16.gmra.mrb[48].mxu0 %v2062_v12 }
  0x88   : > { %938 = vmatprep.mubr.bf16.mxu0 %v2066_v13 }
  0x8a   : > { %1092 = vmatmul.mubr.bf16.gmra.mrb[48].mxu1 %v2065_v14 }
  0x8b   : > { %1645 = vmatprep.mubr.msk.bf16.mxu1 %vm753_vm0, %v2069_v15 }
  0x8f   : > { %939 = vmatmul.mubr.bf16.gmra.mrb[52].mxu0 %v2068_v16 }
  0x90   : > { %946 = vmatprep.mubr.bf16.mxu0 %v2072_v17 }
  0x92   : > { %1100 = vmatmul.mubr.bf16.gmra.mrb[52].mxu1 %v2071_v18 }
  0x93   : > { %1646 = vmatprep.mubr.msk.bf16.mxu1 %vm753_vm0, %v2075_v19 }
  0x97   : > { %947 = vmatmul.mubr.bf16.gmra.mrb[56].mxu0 %v2074_v20 }
  0x98   : > { %954 = vmatprep.mubr.bf16.mxu0 %v2078_v21 }
  0x9a   : > { %1108 = vmatmul.mubr.bf16.gmra.mrb[56].mxu1 %v2077_v22 }
  0x9b   : > { %1647 = vmatprep.mubr.msk.bf16.mxu1 %vm753_vm0, %v2081_v23 }
  0x9f   : > { %955 = vmatmul.mubr.bf16.gmra.mrb[60].mxu0 %v2080_v24 }
  0xa2   : > { %1116 = vmatmul.mubr.bf16.gmra.mrb[60].mxu1 %v2083_v25 }
  0xfa   : > { %v1858_v26 = vpop.f32.mrb[0].mxu0 }
  0xfb   : > { %v1859_v27 = vpop.f32.mrb[1].mxu0 }
  0xfc   : > { %v1860_v29 = vadd.f32 %v1859_v27, %v1858_v26  ;;  %v1861_v30 = vpop.f32.mrb[2].mxu0 }
  0xfd   : > { %v1862_v31 = vpop.f32.mrb[3].mxu0  ;;  %v997_v32 = vpop.f32.mrb[0].mxu1 }
  0xfe   : > { %v1863_v33 = vadd.f32 %v1862_v31, %v1861_v30  ;;  %v837_v34 = vadd.f32 %v1860_v29, %v2360_v28  ;;  %v999_v35 = vpop.f32.mrb[1].mxu1 }
  0xff   : > { %v1000_v36 = vpop.f32.mrb[2].mxu1 }
 0x100   : > { %v998_v37 = vadd.f32 %v997_v32, %v837_v34  ;;  %v840_v38 = vadd.f32 %v1863_v33, %v2360_v28  ;;  %v1002_v39 = vpop.f32.mrb[3].mxu1 }
 0x102   : > { %v1156_v40 = vmin.f32 %v998_v37, 0.0  ;;  %v1001_v41 = vadd.f32 %v1000_v36, %v840_v38  ;;  %v1864_v42 = vpop.f32.mrb[4].mxu0  ;;  %vm1124_vm1 = vcmp.gt.f32.partialorder %v998_v37, 0.0 }
 0x103   : > { %v1865_v43 = vpop.f32.mrb[5].mxu0 }
 0x104   : > { %v1188_v44 = vmul.f32 1.442695, %v1156_v40  ;;  %v1157_v45 = vmin.f32 %v1001_v41, 0.0  ;;  %v1866_v46 = vadd.f32 %v1865_v43, %v1864_v42  ;;  %v1867_v47 = vpop.f32.mrb[6].mxu0  ;;  %vm1125_vm2 = vcmp.gt.f32.partialorder %v1001_v41, 0.0 }
 0x105   : > { %v1868_v48 = vpop.f32.mrb[7].mxu0  ;;  %v1005_v49 = vpop.f32.mrb[4].mxu1 }
 0x106   : > { %2084 = vpow2.f32 %v1188_v44  ;;  %v1190_v50 = vmul.f32 1.442695, %v1157_v45  ;;  %v1869_v51 = vadd.f32 %v1868_v48, %v1867_v47  ;;  %v845_v52 = vadd.f32 %v1866_v46, %v2360_v28  ;;  %v1007_v53 = vpop.f32.mrb[5].mxu1 }
 0x107   : > { %v1008_v54 = vpop.f32.mrb[6].mxu1 }
 0x108   : > { %2086 = vpow2.f32 %v1190_v50  ;;  %v2365_v55 = vadd.f32 %v1005_v49, %v845_v52  ;;  %v848_v56 = vadd.f32 %v1869_v51, %v2360_v28  ;;  %v1010_v57 = vpop.f32.mrb[7].mxu1 }
 0x10a   : > { %v1158_v58 = vmin.f32 %v2365_v55, 0.0  ;;  %v2369_v59 = vadd.f32 %v1008_v54, %v848_v56  ;;  %v1870_v60 = vpop.f32.mrb[8].mxu0  ;;  %vm1126_vm3 = vcmp.gt.f32.partialorder %v2365_v55, 0.0 }
 0x10b   : > { %v1871_v61 = vpop.f32.mrb[9].mxu0 }
 0x10c   : > { %v1192_v62 = vmul.f32 1.442695, %v1158_v58  ;;  %v1159_v63 = vmin.f32 %v2369_v59, 0.0  ;;  %v1872_v0 = vadd.f32 %v1871_v61, %v1870_v60  ;;  %v1873_v1 = vpop.f32.mrb[10].mxu0  ;;  %vm1127_vm4 = vcmp.gt.f32.partialorder %v2369_v59, 0.0 }
 0x10d   : > { %v1874_v2 = vpop.f32.mrb[11].mxu0  ;;  %v1013_v3 = vpop.f32.mrb[8].mxu1 }
 0x10e   : > { %2088 = vpow2.f32 %v1192_v62  ;;  %v1194_v4 = vmul.f32 1.442695, %v1159_v63  ;;  %v1875_v5 = vadd.f32 %v1874_v2, %v1873_v1  ;;  %v853_v6 = vadd.f32 %v1872_v0, %v2360_v28  ;;  %v1015_v7 = vpop.f32.mrb[9].mxu1 }
 0x10f   : > { %v1016_v8 = vpop.f32.mrb[10].mxu1 }
 0x110   : > { %v2085_v9 = vpop.eup %2084  ;;  %2090 = vpow2.f32 %v1194_v4  ;;  %v2373_v10 = vadd.f32 %v1013_v3, %v853_v6  ;;  %v856_v11 = vadd.f32 %v1875_v5, %v2360_v28  ;;  %v1018_v12 = vpop.f32.mrb[11].mxu1 }
 0x111   : > { %v1648_v13 = vadd.f32 -1.0, %v2085_v9 }
 0x112   : > { %v2087_v14 = vpop.eup %2086  ;;  %v1160_v15 = vmin.f32 %v2373_v10, 0.0  ;;  %v2378_v16 = vadd.f32 %v1016_v8, %v856_v11  ;;  %v1876_v17 = vpop.f32.mrb[12].mxu0  ;;  %vm1128_vm5 = vcmp.gt.f32.partialorder %v2373_v10, 0.0 }
 0x113   : > { %v1649_v18 = vadd.f32 -1.0, %v2087_v14  ;;  %v1877_v19 = vpop.f32.mrb[13].mxu0  ;;  %v1284_v24 = vsel %vm1124_vm1, %v998_v37, %v1648_v13 }
 0x114   : > { %v1196_v20 = vmul.f32 1.442695, %v1160_v15  ;;  %v1161_v21 = vmin.f32 %v2378_v16, 0.0  ;;  %v1878_v22 = vadd.f32 %v1877_v19, %v1876_v17  ;;  %v1879_v23 = vpop.f32.mrb[14].mxu0  ;;  %vm1129_vm6 = vcmp.gt.f32.partialorder %v2378_v16, 0.0 }
 0x115   : > { %v1285_v25 = vsel %vm1125_vm2, %v1001_v41, %v1649_v18  ;;  %v1880_v26 = vpop.f32.mrb[15].mxu0  ;;  %v1021_v27 = vpop.f32.mrb[12].mxu1 }
 0x116   : > { %v1750_v29 = vpack.c.bf16 %v1285_v25, %v1284_v24  ;;  %2092 = vpow2.f32 %v1196_v20  ;;  %v1198_v30 = vmul.f32 1.442695, %v1161_v21  ;;  %v1881_v31 = vadd.f32 %v1880_v26, %v1879_v23  ;;  %v1023_v32 = vpop.f32.mrb[13].mxu1 }
 0x117   : > { %v861_v33 = vadd.f32 %v1878_v22, %v2360_v28  ;;  %v1024_v34 = vpop.f32.mrb[14].mxu1 }
 0x118   : > { %v2089_v35 = vpop.eup %2088  ;;  %1751 = vst [vmem:[%s2384_s23] sm:$0xff] %v1750_v29   ;;  %2094 = vpow2.f32 %v1198_v30  ;;  %v864_v36 = vadd.f32 %v1881_v31, %v2360_v28  ;;  %v1026_v37 = vpop.f32.mrb[15].mxu1 }
 0x119   : > { %v1650_v38 = vadd.f32 -1.0, %v2089_v35  ;;  %v2389_v39 = vadd.f32 %v1021_v27, %v861_v33 }
 0x11a   : > { %v2091_v40 = vpop.eup %2090  ;;  %v2391_v41 = vadd.f32 %v1024_v34, %v864_v36  ;;  %v1882_v42 = vpop.f32.mrb[16].mxu0 }
 0x11b   : > { %v1651_v43 = vadd.f32 -1.0, %v2091_v40  ;;  %v1162_v44 = vmin.f32 %v2389_v39, 0.0  ;;  %v1883_v45 = vpop.f32.mrb[17].mxu0  ;;  %v1286_v49 = vsel %vm1126_vm3, %v2365_v55, %v1650_v38  ;;  %vm1130_vm7 = vcmp.gt.f32.partialorder %v2389_v39, 0.0 }
 0x11c   : > { %v1163_v46 = vmin.f32 %v2391_v41, 0.0  ;;  %v1884_v47 = vadd.f32 %v1883_v45, %v1882_v42  ;;  %v1885_v48 = vpop.f32.mrb[18].mxu0  ;;  %vm1131_vm8 = vcmp.gt.f32.partialorder %v2391_v41, 0.0 }
 0x11d   : > { %v1287_v50 = vsel %vm1127_vm4, %v2369_v59, %v1651_v43  ;;  %v1200_v51 = vmul.f32 1.442695, %v1162_v44  ;;  %v1886_v52 = vpop.f32.mrb[19].mxu0  ;;  %v1029_v53 = vpop.f32.mrb[16].mxu1 }
 0x11e   : > { %v1755_v54 = vpack.c.bf16 %v1287_v50, %v1286_v49  ;;  %v1202_v56 = vmul.f32 1.442695, %v1163_v46  ;;  %v1887_v57 = vadd.f32 %v1886_v52, %v1885_v48  ;;  %v869_v58 = vadd.f32 %v1884_v47, %v2360_v28  ;;  %v1031_v60 = vpop.f32.mrb[17].mxu1 }
 0x11f   : > { %2096 = vpow2.f32 %v1200_v51  ;;  %v1032_v61 = vpop.f32.mrb[18].mxu1 }
 0x120   : > { %v2093_v62 = vpop.eup %2092  ;;  %1827 = vst [vmem:[%s2384_s23 + $0x8] sm:$0xff] %v1755_v54   ;;  %2098 = vpow2.f32 %v1202_v56  ;;  %v2401_v63 = vadd.f32 %v1029_v53, %v869_v58  ;;  %v872_v55 = vadd.f32 %v1887_v57, %v2360_v28  ;;  %v1034_v0 = vpop.f32.mrb[19].mxu1 }
 0x121   : > { %v1652_v59 = vadd.f32 -1.0, %v2093_v62 }
 0x122   : > { %v2095_v1 = vpop.eup %2094  ;;  %v1164_v2 = vmin.f32 %v2401_v63, 0.0  ;;  %v2405_v3 = vadd.f32 %v1032_v61, %v872_v55  ;;  %v1888_v4 = vpop.f32.mrb[20].mxu0  ;;  %vm1132_vm9 = vcmp.gt.f32.partialorder %v2401_v63, 0.0 }
 0x123   : > { %v1653_v5 = vadd.f32 -1.0, %v2095_v1  ;;  %v1889_v6 = vpop.f32.mrb[21].mxu0  ;;  %v1288_v12 = vsel %vm1128_vm5, %v2373_v10, %v1652_v59 }
 0x124   : > { %v1204_v7 = vmul.f32 1.442695, %v1164_v2  ;;  %v1165_v8 = vmin.f32 %v2405_v3, 0.0  ;;  %v1890_v9 = vadd.f32 %v1889_v6, %v1888_v4  ;;  %v1891_v11 = vpop.f32.mrb[22].mxu0  ;;  %vm1133_vm10 = vcmp.gt.f32.partialorder %v2405_v3, 0.0 }
 0x125   : > { %v1289_v13 = vsel %vm1129_vm6, %v2378_v16, %v1653_v5  ;;  %v1892_v14 = vpop.f32.mrb[23].mxu0  ;;  %v1037_v15 = vpop.f32.mrb[20].mxu1 }
 0x126   : > { %v1760_v17 = vpack.c.bf16 %v1289_v13, %v1288_v12  ;;  %2100 = vpow2.f32 %v1204_v7  ;;  %v1206_v18 = vmul.f32 1.442695, %v1165_v8  ;;  %v1893_v19 = vadd.f32 %v1892_v14, %v1891_v11  ;;  %v1039_v20 = vpop.f32.mrb[21].mxu1 }
 0x127   : > { %v877_v21 = vadd.f32 %v1890_v9, %v2360_v28  ;;  %v1040_v22 = vpop.f32.mrb[22].mxu1 }
 0x128   : > { %1828 = vst [vmem:[%s2384_s23 + $0x10] sm:$0xff] %v1760_v17   ;;  %2102 = vpow2.f32 %v1206_v18  ;;  %v880_v23 = vadd.f32 %v1893_v19, %v2360_v28  ;;  %v1042_v24 = vpop.f32.mrb[23].mxu1 }
 0x129   : > { %v2097_v25 = vpop.eup %2096  ;;  %v2415_v26 = vadd.f32 %v1037_v15, %v877_v21 }
 0x12a   : > { %v2099_v10 = vpop.eup %2098  ;;  %v1654_v16 = vadd.f32 -1.0, %v2097_v25  ;;  %v2417_v27 = vadd.f32 %v1040_v22, %v880_v23  ;;  %v1894_v29 = vpop.f32.mrb[24].mxu0 }
 0x12b   : > { %v1655_v30 = vadd.f32 -1.0, %v2099_v10  ;;  %v1166_v31 = vmin.f32 %v2415_v26, 0.0  ;;  %v1895_v32 = vpop.f32.mrb[25].mxu0  ;;  %vm1134_vm11 = vcmp.gt.f32.partialorder %v2415_v26, 0.0 }
 0x12c   : > { %v1167_v33 = vmin.f32 %v2417_v27, 0.0  ;;  %v1896_v34 = vadd.f32 %v1895_v32, %v1894_v29  ;;  %v1897_v35 = vpop.f32.mrb[26].mxu0  ;;  %v1290_v36 = vsel %vm1130_vm7, %v2389_v39, %v1654_v16  ;;  %vm1135_vm12 = vcmp.gt.f32.partialorder %v2417_v27, 0.0 }
 0x12d   : > { %v1291_v37 = vsel %vm1131_vm8, %v2391_v41, %v1655_v30  ;;  %v1208_v38 = vmul.f32 1.442695, %v1166_v31  ;;  %v1898_v40 = vpop.f32.mrb[27].mxu0  ;;  %v1045_v42 = vpop.f32.mrb[24].mxu1 }
 0x12e   : > { %v1765_v43 = vpack.c.bf16 %v1291_v37, %v1290_v36  ;;  %v1210_v44 = vmul.f32 1.442695, %v1167_v33  ;;  %v1899_v45 = vadd.f32 %v1898_v40, %v1897_v35  ;;  %v885_v46 = vadd.f32 %v1896_v34, %v2360_v28  ;;  %v1047_v47 = vpop.f32.mrb[25].mxu1 }
 0x12f   : > { %2104 = vpow2.f32 %v1208_v38  ;;  %v1048_v48 = vpop.f32.mrb[26].mxu1 }
 0x130   : > { %v2101_v49 = vpop.eup %2100  ;;  %1829 = vst [vmem:[%s2384_s23 + $0x18] sm:$0xff] %v1765_v43   ;;  %2106 = vpow2.f32 %v1210_v44  ;;  %v2427_v50 = vadd.f32 %v1045_v42, %v885_v46  ;;  %v888_v39 = vadd.f32 %v1899_v45, %v2360_v28  ;;  %v1050_v51 = vpop.f32.mrb[27].mxu1 }
 0x131   : > { %v1656_v41 = vadd.f32 -1.0, %v2101_v49 }
 0x132   : > { %v2103_v52 = vpop.eup %2102  ;;  %v1168_v53 = vmin.f32 %v2427_v50, 0.0  ;;  %v2431_v54 = vadd.f32 %v1048_v48, %v888_v39  ;;  %v1900_v56 = vpop.f32.mrb[28].mxu0  ;;  %vm1136_vm13 = vcmp.gt.f32.partialorder %v2427_v50, 0.0 }
 0x133   : > { %v1657_v57 = vadd.f32 -1.0, %v2103_v52  ;;  %v1901_v58 = vpop.f32.mrb[29].mxu0  ;;  %v1292_v0 = vsel %vm1132_vm9, %v2401_v63, %v1656_v41 }
 0x134   : > { %v1212_v60 = vmul.f32 1.442695, %v1168_v53  ;;  %v1169_v61 = vmin.f32 %v2431_v54, 0.0  ;;  %v1902_v62 = vadd.f32 %v1901_v58, %v1900_v56  ;;  %v1903_v55 = vpop.f32.mrb[30].mxu0  ;;  %vm1137_vm14 = vcmp.gt.f32.partialorder %v2431_v54, 0.0 }
 0x135   : > { %v1293_v59 = vsel %vm1133_vm10, %v2405_v3, %v1657_v57  ;;  %v1904_v1 = vpop.f32.mrb[31].mxu0  ;;  %v1053_v2 = vpop.f32.mrb[28].mxu1 }
 0x136   : > { %v1770_v4 = vpack.c.bf16 %v1293_v59, %v1292_v0  ;;  %2108 = vpow2.f32 %v1212_v60  ;;  %v1214_v5 = vmul.f32 1.442695, %v1169_v61  ;;  %v1905_v6 = vadd.f32 %v1904_v1, %v1903_v55  ;;  %v1055_v7 = vpop.f32.mrb[29].mxu1 }
 0x137   : > { %v893_v8 = vadd.f32 %v1902_v62, %v2360_v28  ;;  %v1056_v9 = vpop.f32.mrb[30].mxu1 }
 0x138   : > { %1830 = vst [vmem:[%s2384_s23 + $0x20] sm:$0xff] %v1770_v4   ;;  %2110 = vpow2.f32 %v1214_v5  ;;  %v896_v11 = vadd.f32 %v1905_v6, %v2360_v28  ;;  %v1058_v12 = vpop.f32.mrb[31].mxu1 }
 0x139   : > { %v2105_v13 = vpop.eup %2104  ;;  %v2441_v14 = vadd.f32 %v1053_v2, %v893_v8 }
 0x13a   : > { %v2107_v63 = vpop.eup %2106  ;;  %v1658_v3 = vadd.f32 -1.0, %v2105_v13  ;;  %v2443_v15 = vadd.f32 %v1056_v9, %v896_v11  ;;  %v1906_v17 = vpop.f32.mrb[32].mxu0 }
 0x13b   : > { %v1659_v18 = vadd.f32 -1.0, %v2107_v63  ;;  %v1170_v19 = vmin.f32 %v2441_v14, 0.0  ;;  %v1907_v20 = vpop.f32.mrb[33].mxu0  ;;  %vm1138_vm15 = vcmp.gt.f32.partialorder %v2441_v14, 0.0 }
 0x13c   : > { %v1171_v21 = vmin.f32 %v2443_v15, 0.0  ;;  %v1908_v22 = vadd.f32 %v1907_v20, %v1906_v17  ;;  %v1909_v23 = vpop.f32.mrb[34].mxu0  ;;  %v1294_v24 = vsel %vm1134_vm11, %v2415_v26, %v1658_v3  ;;  %vm1139_vm0 = vcmp.gt.f32.partialorder %v2443_v15, 0.0 }
 0x13d   : > { %v1295_v25 = vsel %vm1135_vm12, %v2417_v27, %v1659_v18  ;;  %v1216_v10 = vmul.f32 1.442695, %v1170_v19  ;;  %v1910_v16 = vpop.f32.mrb[35].mxu0  ;;  %v1061_v29 = vpop.f32.mrb[32].mxu1 }
 0x13e   : > { %v1775_v30 = vpack.c.bf16 %v1295_v25, %v1294_v24  ;;  %v1218_v31 = vmul.f32 1.442695, %v1171_v21  ;;  %v1911_v32 = vadd.f32 %v1910_v16, %v1909_v23  ;;  %v901_v33 = vadd.f32 %v1908_v22, %v2360_v28  ;;  %v1063_v34 = vpop.f32.mrb[33].mxu1 }
 0x13f   : > { %2112 = vpow2.f32 %v1216_v10  ;;  %v1064_v35 = vpop.f32.mrb[34].mxu1 }
 0x140   : > { %v2109_v36 = vpop.eup %2108  ;;  %1831 = vst [vmem:[%s2384_s23 + $0x28] sm:$0xff] %v1775_v30   ;;  %2114 = vpow2.f32 %v1218_v31  ;;  %v2453_v37 = vadd.f32 %v1061_v29, %v901_v33  ;;  %v904_v26 = vadd.f32 %v1911_v32, %v2360_v28  ;;  %v1066_v38 = vpop.f32.mrb[35].mxu1 }
 0x141   : > { %v1660_v27 = vadd.f32 -1.0, %v2109_v36 }
 0x142   : > { %v2111_v40 = vpop.eup %2110  ;;  %v1172_v42 = vmin.f32 %v2453_v37, 0.0  ;;  %v2457_v43 = vadd.f32 %v1064_v35, %v904_v26  ;;  %v1912_v44 = vpop.f32.mrb[36].mxu0  ;;  %vm1140_vm1 = vcmp.gt.f32.partialorder %v2453_v37, 0.0 }
 0x143   : > { %v1661_v45 = vadd.f32 -1.0, %v2111_v40  ;;  %v1913_v46 = vpop.f32.mrb[37].mxu0  ;;  %v1296_v51 = vsel %vm1136_vm13, %v2427_v50, %v1660_v27 }
 0x144   : > { %v1220_v47 = vmul.f32 1.442695, %v1172_v42  ;;  %v1173_v48 = vmin.f32 %v2457_v43, 0.0  ;;  %v1914_v49 = vadd.f32 %v1913_v46, %v1912_v44  ;;  %v1915_v39 = vpop.f32.mrb[38].mxu0  ;;  %vm1141_vm2 = vcmp.gt.f32.partialorder %v2457_v43, 0.0 }
 0x145   : > { %v1297_v41 = vsel %vm1137_vm14, %v2431_v54, %v1661_v45  ;;  %v1916_v52 = vpop.f32.mrb[39].mxu0  ;;  %v1069_v53 = vpop.f32.mrb[36].mxu1 }
 0x146   : > { %v1780_v56 = vpack.c.bf16 %v1297_v41, %v1296_v51  ;;  %2116 = vpow2.f32 %v1220_v47  ;;  %v1222_v57 = vmul.f32 1.442695, %v1173_v48  ;;  %v1917_v58 = vadd.f32 %v1916_v52, %v1915_v39  ;;  %v1071_v60 = vpop.f32.mrb[37].mxu1 }
 0x147   : > { %v909_v61 = vadd.f32 %v1914_v49, %v2360_v28  ;;  %v1072_v62 = vpop.f32.mrb[38].mxu1 }
 0x148   : > { %1832 = vst [vmem:[%s2384_s23 + $0x30] sm:$0xff] %v1780_v56   ;;  %2118 = vpow2.f32 %v1222_v57  ;;  %v912_v55 = vadd.f32 %v1917_v58, %v2360_v28  ;;  %v1074_v0 = vpop.f32.mrb[39].mxu1 }
 0x149   : > { %v2113_v59 = vpop.eup %2112  ;;  %v2467_v1 = vadd.f32 %v1069_v53, %v909_v61 }
 0x14a   : > { %v2115_v50 = vpop.eup %2114  ;;  %v1662_v54 = vadd.f32 -1.0, %v2113_v59  ;;  %v2469_v2 = vadd.f32 %v1072_v62, %v912_v55  ;;  %v1918_v4 = vpop.f32.mrb[40].mxu0 }
 0x14b   : > { %v1663_v5 = vadd.f32 -1.0, %v2115_v50  ;;  %v1174_v6 = vmin.f32 %v2467_v1, 0.0  ;;  %v1919_v7 = vpop.f32.mrb[41].mxu0  ;;  %vm1142_vm3 = vcmp.gt.f32.partialorder %v2467_v1, 0.0 }
 0x14c   : > { %v1175_v8 = vmin.f32 %v2469_v2, 0.0  ;;  %v1920_v9 = vadd.f32 %v1919_v7, %v1918_v4  ;;  %v1921_v11 = vpop.f32.mrb[42].mxu0  ;;  %v1298_v12 = vsel %vm1138_vm15, %v2441_v14, %v1662_v54  ;;  %vm1143_vm4 = vcmp.gt.f32.partialorder %v2469_v2, 0.0 }
 0x14d   : > { %v1299_v13 = vsel %vm1139_vm0, %v2443_v15, %v1663_v5  ;;  %v1224_v63 = vmul.f32 1.442695, %v1174_v6  ;;  %v1922_v3 = vpop.f32.mrb[43].mxu0  ;;  %v1077_v17 = vpop.f32.mrb[40].mxu1 }
 0x14e   : > { %v1785_v18 = vpack.c.bf16 %v1299_v13, %v1298_v12  ;;  %v1226_v19 = vmul.f32 1.442695, %v1175_v8  ;;  %v1923_v20 = vadd.f32 %v1922_v3, %v1921_v11  ;;  %v917_v21 = vadd.f32 %v1920_v9, %v2360_v28  ;;  %v1079_v22 = vpop.f32.mrb[41].mxu1 }
 0x14f   : > { %2120 = vpow2.f32 %v1224_v63  ;;  %v1080_v23 = vpop.f32.mrb[42].mxu1 }
 0x150   : > { %v2117_v24 = vpop.eup %2116  ;;  %1833 = vst [vmem:[%s2384_s23 + $0x38] sm:$0xff] %v1785_v18   ;;  %2122 = vpow2.f32 %v1226_v19  ;;  %v2479_v25 = vadd.f32 %v1077_v17, %v917_v21  ;;  %v920_v14 = vadd.f32 %v1923_v20, %v2360_v28  ;;  %v1082_v10 = vpop.f32.mrb[43].mxu1 }
 0x151   : > { %v1664_v15 = vadd.f32 -1.0, %v2117_v24 }
 0x152   : > { %v2119_v16 = vpop.eup %2118  ;;  %v1176_v29 = vmin.f32 %v2479_v25, 0.0  ;;  %v2483_v30 = vadd.f32 %v1080_v23, %v920_v14  ;;  %v1924_v31 = vpop.f32.mrb[44].mxu0  ;;  %vm1144_vm5 = vcmp.gt.f32.partialorder %v2479_v25, 0.0 }
 0x153   : > { %v1665_v32 = vadd.f32 -1.0, %v2119_v16  ;;  %v1925_v33 = vpop.f32.mrb[45].mxu0  ;;  %v1300_v38 = vsel %vm1140_vm1, %v2453_v37, %v1664_v15 }
 0x154   : > { %v1228_v34 = vmul.f32 1.442695, %v1176_v29  ;;  %v1177_v35 = vmin.f32 %v2483_v30, 0.0  ;;  %v1926_v36 = vadd.f32 %v1925_v33, %v1924_v31  ;;  %v1927_v26 = vpop.f32.mrb[46].mxu0  ;;  %vm1145_vm6 = vcmp.gt.f32.partialorder %v2483_v30, 0.0 }
 0x155   : > { %v1301_v27 = vsel %vm1141_vm2, %v2457_v43, %v1665_v32  ;;  %v1928_v40 = vpop.f32.mrb[47].mxu0  ;;  %v1085_v42 = vpop.f32.mrb[44].mxu1 }
 0x156   : > { %v1790_v44 = vpack.c.bf16 %v1301_v27, %v1300_v38  ;;  %2124 = vpow2.f32 %v1228_v34  ;;  %v1230_v45 = vmul.f32 1.442695, %v1177_v35  ;;  %v1929_v46 = vadd.f32 %v1928_v40, %v1927_v26  ;;  %v1087_v47 = vpop.f32.mrb[45].mxu1 }
 0x157   : > { %v925_v48 = vadd.f32 %v1926_v36, %v2360_v28  ;;  %v1088_v49 = vpop.f32.mrb[46].mxu1 }
 0x158   : > { %1834 = vst [vmem:[%s2384_s23 + $0x40] sm:$0xff] %v1790_v44   ;;  %2126 = vpow2.f32 %v1230_v45  ;;  %v928_v39 = vadd.f32 %v1929_v46, %v2360_v28  ;;  %v1090_v51 = vpop.f32.mrb[47].mxu1 }
 0x159   : > { %v2121_v41 = vpop.eup %2120  ;;  %v2493_v52 = vadd.f32 %v1085_v42, %v925_v48 }
 0x15a   : > { %v2123_v37 = vpop.eup %2122  ;;  %v1666_v43 = vadd.f32 -1.0, %v2121_v41  ;;  %v2495_v53 = vadd.f32 %v1088_v49, %v928_v39  ;;  %v1930_v56 = vpop.f32.mrb[48].mxu0 }
 0x15b   : > { %v1667_v57 = vadd.f32 -1.0, %v2123_v37  ;;  %v1178_v58 = vmin.f32 %v2493_v52, 0.0  ;;  %v1931_v60 = vpop.f32.mrb[49].mxu0  ;;  %vm1146_vm7 = vcmp.gt.f32.partialorder %v2493_v52, 0.0 }
 0x15c   : > { %v1179_v61 = vmin.f32 %v2495_v53, 0.0  ;;  %v1932_v62 = vadd.f32 %v1931_v60, %v1930_v56  ;;  %v1933_v55 = vpop.f32.mrb[50].mxu0  ;;  %v1302_v0 = vsel %vm1142_vm3, %v2467_v1, %v1666_v43  ;;  %vm1147_vm8 = vcmp.gt.f32.partialorder %v2495_v53, 0.0 }
 0x15d   : > { %v1303_v59 = vsel %vm1143_vm4, %v2469_v2, %v1667_v57  ;;  %v1232_v50 = vmul.f32 1.442695, %v1178_v58  ;;  %v1934_v54 = vpop.f32.mrb[51].mxu0  ;;  %v1093_v4 = vpop.f32.mrb[48].mxu1 }
 0x15e   : > { %v1795_v5 = vpack.c.bf16 %v1303_v59, %v1302_v0  ;;  %v1234_v6 = vmul.f32 1.442695, %v1179_v61  ;;  %v1935_v7 = vadd.f32 %v1934_v54, %v1933_v55  ;;  %v933_v8 = vadd.f32 %v1932_v62, %v2360_v28  ;;  %v1095_v9 = vpop.f32.mrb[49].mxu1 }
 0x15f   : > { %2128 = vpow2.f32 %v1232_v50  ;;  %v1096_v11 = vpop.f32.mrb[50].mxu1 }
 0x160   : > { %v2125_v12 = vpop.eup %2124  ;;  %1835 = vst [vmem:[%s2384_s23 + $0x48] sm:$0xff] %v1795_v5   ;;  %2130 = vpow2.f32 %v1234_v6  ;;  %v2505_v13 = vadd.f32 %v1093_v4, %v933_v8  ;;  %v936_v1 = vadd.f32 %v1935_v7, %v2360_v28  ;;  %v1098_v63 = vpop.f32.mrb[51].mxu1 }
 0x161   : > { %v1668_v2 = vadd.f32 -1.0, %v2125_v12 }
 0x162   : > { %v2127_v3 = vpop.eup %2126  ;;  %v1180_v17 = vmin.f32 %v2505_v13, 0.0  ;;  %v2509_v18 = vadd.f32 %v1096_v11, %v936_v1  ;;  %v1936_v19 = vpop.f32.mrb[52].mxu0  ;;  %vm1148_vm9 = vcmp.gt.f32.partialorder %v2505_v13, 0.0 }
 0x163   : > { %v1669_v20 = vadd.f32 -1.0, %v2127_v3  ;;  %v1937_v21 = vpop.f32.mrb[53].mxu0  ;;  %v1304_v10 = vsel %vm1144_vm5, %v2479_v25, %v1668_v2 }
 0x164   : > { %v1236_v22 = vmul.f32 1.442695, %v1180_v17  ;;  %v1181_v23 = vmin.f32 %v2509_v18, 0.0  ;;  %v1938_v24 = vadd.f32 %v1937_v21, %v1936_v19  ;;  %v1939_v14 = vpop.f32.mrb[54].mxu0  ;;  %vm1149_vm10 = vcmp.gt.f32.partialorder %v2509_v18, 0.0 }
 0x165   : > { %v1305_v15 = vsel %vm1145_vm6, %v2483_v30, %v1669_v20  ;;  %v1940_v16 = vpop.f32.mrb[55].mxu0  ;;  %v1101_v29 = vpop.f32.mrb[52].mxu1 }
 0x166   : > { %v1800_v31 = vpack.c.bf16 %v1305_v15, %v1304_v10  ;;  %2132 = vpow2.f32 %v1236_v22  ;;  %v1238_v32 = vmul.f32 1.442695, %v1181_v23  ;;  %v1941_v33 = vadd.f32 %v1940_v16, %v1939_v14  ;;  %v1103_v34 = vpop.f32.mrb[53].mxu1 }
 0x167   : > { %v941_v35 = vadd.f32 %v1938_v24, %v2360_v28  ;;  %v1104_v36 = vpop.f32.mrb[54].mxu1 }
 0x168   : > { %1836 = vst [vmem:[%s2384_s23 + $0x50] sm:$0xff] %v1800_v31   ;;  %2134 = vpow2.f32 %v1238_v32  ;;  %v944_v26 = vadd.f32 %v1941_v33, %v2360_v28  ;;  %v1106_v38 = vpop.f32.mrb[55].mxu1 }
 0x169   : > { %v2129_v27 = vpop.eup %2128  ;;  %v2519_v40 = vadd.f32 %v1101_v29, %v941_v35 }
 0x16a   : > { %v2131_v25 = vpop.eup %2130  ;;  %v1670_v30 = vadd.f32 -1.0, %v2129_v27  ;;  %v2521_v42 = vadd.f32 %v1104_v36, %v944_v26  ;;  %v1942_v44 = vpop.f32.mrb[56].mxu0 }
 0x16b   : > { %v1671_v45 = vadd.f32 -1.0, %v2131_v25  ;;  %v1182_v46 = vmin.f32 %v2519_v40, 0.0  ;;  %v1943_v47 = vpop.f32.mrb[57].mxu0  ;;  %vm1150_vm11 = vcmp.gt.f32.partialorder %v2519_v40, 0.0 }
 0x16c   : > { %v1183_v48 = vmin.f32 %v2521_v42, 0.0  ;;  %v1944_v49 = vadd.f32 %v1943_v47, %v1942_v44  ;;  %v1945_v39 = vpop.f32.mrb[58].mxu0  ;;  %v1306_v51 = vsel %vm1146_vm7, %v2493_v52, %v1670_v30  ;;  %vm1151_vm12 = vcmp.gt.f32.partialorder %v2521_v42, 0.0 }
 0x16d   : > { %v1307_v41 = vsel %vm1147_vm8, %v2495_v53, %v1671_v45  ;;  %v1240_v37 = vmul.f32 1.442695, %v1182_v46  ;;  %v1946_v43 = vpop.f32.mrb[59].mxu0  ;;  %v1109_v56 = vpop.f32.mrb[56].mxu1 }
 0x16e   : > { %v1805_v57 = vpack.c.bf16 %v1307_v41, %v1306_v51  ;;  %v1242_v58 = vmul.f32 1.442695, %v1183_v48  ;;  %v1947_v60 = vadd.f32 %v1946_v43, %v1945_v39  ;;  %v949_v61 = vadd.f32 %v1944_v49, %v2360_v28  ;;  %v1111_v62 = vpop.f32.mrb[57].mxu1 }
 0x16f   : > { %2136 = vpow2.f32 %v1240_v37  ;;  %v1112_v55 = vpop.f32.mrb[58].mxu1 }
 0x170   : > { %v2133_v0 = vpop.eup %2132  ;;  %1837 = vst [vmem:[%s2384_s23 + $0x58] sm:$0xff] %v1805_v57   ;;  %2138 = vpow2.f32 %v1242_v58  ;;  %v1110_v59 = vadd.f32 %v1109_v56, %v949_v61  ;;  %v952_v50 = vadd.f32 %v1947_v60, %v2360_v28  ;;  %v1114_v52 = vpop.f32.mrb[59].mxu1 }
 0x171   : > { %v1672_v54 = vadd.f32 -1.0, %v2133_v0 }
 0x172   : > { %v2135_v53 = vpop.eup %2134  ;;  %v1184_v4 = vmin.f32 %v1110_v59, 0.0  ;;  %v1113_v5 = vadd.f32 %v1112_v55, %v952_v50  ;;  %v1948_v6 = vpop.f32.mrb[60].mxu0  ;;  %vm1152_vm13 = vcmp.gt.f32.partialorder %v1110_v59, 0.0 }
 0x173   : > { %v1673_v7 = vadd.f32 -1.0, %v2135_v53  ;;  %v1949_v8 = vpop.f32.mrb[61].mxu0  ;;  %v1308_v63 = vsel %vm1148_vm9, %v2505_v13, %v1672_v54 }
 0x174   : > { %v1244_v9 = vmul.f32 1.442695, %v1184_v4  ;;  %v1185_v11 = vmin.f32 %v1113_v5, 0.0  ;;  %v1950_v12 = vadd.f32 %v1949_v8, %v1948_v6  ;;  %v1951_v1 = vpop.f32.mrb[62].mxu0  ;;  %vm1153_vm14 = vcmp.gt.f32.partialorder %v1113_v5, 0.0 }
 0x175   : > { %v1309_v2 = vsel %vm1149_vm10, %v2509_v18, %v1673_v7  ;;  %v1952_v3 = vpop.f32.mrb[63].mxu0  ;;  %v1117_v17 = vpop.f32.mrb[60].mxu1 }
 0x176   : > { %v1810_v19 = vpack.c.bf16 %v1309_v2, %v1308_v63  ;;  %2140 = vpow2.f32 %v1244_v9  ;;  %v1246_v20 = vmul.f32 1.442695, %v1185_v11  ;;  %v1953_v21 = vadd.f32 %v1952_v3, %v1951_v1  ;;  %v1119_v22 = vpop.f32.mrb[61].mxu1 }
 0x177   : > { %v957_v23 = vadd.f32 %v1950_v12, %v2360_v28  ;;  %v1120_v24 = vpop.f32.mrb[62].mxu1 }
 0x178   : > { %1838 = vst [vmem:[%s2384_s23 + $0x60] sm:$0xff] %v1810_v19   ;;  %2142 = vpow2.f32 %v1246_v20  ;;  %v960_v14 = vadd.f32 %v1953_v21, %v2360_v28  ;;  %v1122_v10 = vpop.f32.mrb[63].mxu1 }
 0x179   : > { %v2137_v15 = vpop.eup %2136  ;;  %v1118_v16 = vadd.f32 %v1117_v17, %v957_v23 }
 0x17a   : > { %v2139_v13 = vpop.eup %2138  ;;  %v1674_v18 = vadd.f32 -1.0, %v2137_v15  ;;  %v1121_v29 = vadd.f32 %v1120_v24, %v960_v14 }
 0x17b   : > { %v1675_v31 = vadd.f32 -1.0, %v2139_v13  ;;  %v1186_v32 = vmin.f32 %v1118_v16, 0.0  ;;  %vm1154_vm15 = vcmp.gt.f32.partialorder %v1118_v16, 0.0 }
 0x17c   : > { %v1187_v33 = vmin.f32 %v1121_v29, 0.0  ;;  %v1310_v34 = vsel %vm1150_vm11, %v2519_v40, %v1674_v18  ;;  %vm1155_vm0 = vcmp.gt.f32.partialorder %v1121_v29, 0.0 }
 0x17d   : > { %v1311_v35 = vsel %vm1151_vm12, %v2521_v42, %v1675_v31  ;;  %v1248_v28 = vmul.f32 1.442695, %v1186_v32 }
 0x17e   : > { %v1815_v36 = vpack.c.bf16 %v1311_v35, %v1310_v34  ;;  %v1250_v26 = vmul.f32 1.442695, %v1187_v33 }
 0x17f   : > { %2144 = vpow2.f32 %v1248_v28 }
 0x180   : > { %v2141_v38 = vpop.eup %2140  ;;  %1839 = vst [vmem:[%s2384_s23 + $0x68] sm:$0xff] %v1815_v36   ;;  %2146 = vpow2.f32 %v1250_v26 }
 0x181   : > { %v1676_v27 = vadd.f32 -1.0, %v2141_v38 }
 0x182   : > { %v2143_v25 = vpop.eup %2142 }
 0x183   : > { %v1677_v30 = vadd.f32 -1.0, %v2143_v25  ;;  %v1312_v44 = vsel %vm1152_vm13, %v1110_v59, %v1676_v27 }
 0x185   : > { %v1313_v45 = vsel %vm1153_vm14, %v1113_v5, %v1677_v30 }
 0x186   : > { %v1820_v46 = vpack.c.bf16 %v1313_v45, %v1312_v44 }
 0x188   : > { %1840 = vst [vmem:[%s2384_s23 + $0x70] sm:$0xff] %v1820_v46  }
 0x189   : > { %v2145_v40 = vpop.eup %2144 }
 0x18a   : > { %v2147_v42 = vpop.eup %2146  ;;  %v1678_v47 = vadd.f32 -1.0, %v2145_v40 }
 0x18b   : > { %v1679_v48 = vadd.f32 -1.0, %v2147_v42 }
 0x18c   : > { %v1314_v49 = vsel %vm1154_vm15, %v1118_v16, %v1678_v47 }
 0x18d   : > { %v1315_v39 = vsel %vm1155_vm0, %v1121_v29, %v1679_v48 }
 0x18e   : > { %v1825_v51 = vpack.c.bf16 %v1315_v39, %v1314_v49 }
 0x190   : > { %1841 = vst [vmem:[%s2384_s23 + $0x78] sm:$0xff] %v1825_v51  }
 0x191 PF: > { %s13_s12 = sadd.s32 1, %s2154_s12  }
 0x192   : > { %p10_p4 = scmp.ge.s32.totalorder %s13_s12, 4  }
 0x194   :  { %12 = sbr.rel (!%p10_p4) target bundleno = 1 (0x1), region = 62 }

// kernel: vae2d_forward.19
= control target key start
LH: loop header
LB: loop body
LE: loop exit
PB: predicated region body
PF: predicated region fallthrough
CT: control target
= control target key end

     0   :  { %s1235_s12 = smov 0   ;;  %s1407_s0 = inlined_call_operand.vmem [shape: bf16[512,144], index: 0, kind: input, shape index: {}]   ;;  %s1408_s1 = inlined_call_operand.vmem [shape: bf16[144,128], index: 1, kind: input, shape index: {}]   ;;  %s1409_s2 = inlined_call_operand.vmem [shape: f32[1,128], index: 2, kind: input, shape index: {}]   ;;  %s1410_s3 = inlined_call_operand.vmem [shape: f32[512,128], index: 3, kind: output, shape index: {}]  }
   0x1 LB: > { %s923_s13 = sadd.s32 4294967295, %s1212_s12   ;;  %p927_p0 = scmp.ge.s32.totalorder %s1212_s12, 1  ;;  %s1212_s12 = sphi %s1235_s12, %s13_s12  }
   0x2   : > { %p139_p1 = scmp.lt.s32.totalorder %s1212_s12, 3 }
   0x4   : > { %p140_p2 = pnand %p927_p0, %p139_p1 }
   0x5   : > { %v1021_v0 = vld [vmem:[%s1408_s1] sm:$0xff] (!%p140_p2)   ;;  %v1214_v1 = vmov (!%p140_p2), 0   ;;  %s928_s16 = sshll.u32 (!%p140_p2), %s923_s13, 5  ;;  %v1022_v2 = vld [vmem:[%s1408_s1 + $0x8] sm:$0xff] (!%p140_p2)   ;;  %v1023_v3 = vld [vmem:[%s1408_s1 + $0x10] sm:$0xff] (!%p140_p2)   ;;  %vm433_vm0 = vcmask (!%p140_p2), 130048  }
   0x6   : > { %143 = sbr.rel (%p140_p2) target bundleno = 350 (0x15e), region = 32  ;;  %482 = vmatprep.subr.bf16.mxu0 (!%p140_p2), %v1214_v1  ;;  %994 = vmatprep.subr.bf16.mxu1 (!%p140_p2), %v1214_v1  ;;  %p165_p3 = scmp.lt.s32.totalorder (!%p140_p2), %s928_s16, 63  ;;  %v1024_v4 = vld [vmem:[%s1408_s1 + $0x18] sm:$0xff] (!%p140_p2)   ;;  %v1025_v7 = vld [vmem:[%s1408_s1 + $0x20] sm:$0xff] (!%p140_p2)   ;;  %v1026_v8 = vld [vmem:[%s1408_s1 + $0x28] sm:$0xff] (!%p140_p2)  }
   0x7   : > { %483 = vmatpush1.bf16.msra.mxu0 (!%p140_p2), %v1021_v0  ;;  %1003 = vmatpush1.bf16.msra.mxu1 (!%p140_p2), %v1021_v0  ;;  %v1027_v9 = vld [vmem:[%s1408_s1 + $0x30] sm:$0xff] (!%p140_p2)   ;;  %v1028_v10 = vld [vmem:[%s1408_s1 + $0x38] sm:$0xff] (!%p140_p2)   ;;  %v1029_v11 = vld [vmem:[%s1408_s1 + $0x40] sm:$0xff] (!%p140_p2)  }
   0x8   : > { %484 = vmatprep.subr.bf16.mxu0 (!%p140_p2), %v1214_v1  ;;  %995 = vmatprep.subr.bf16.mxu1 (!%p140_p2), %v1214_v1  ;;  %v1331_v42 = vld [vmem:[%s1409_s2] ss:$0 sm:$0xff] (!%p140_p2) }
   0xb   : > { %485 = vmatpush1.bf16.msra.mxu0 (!%p140_p2), %v1022_v2  ;;  %1004 = vmatpush1.bf16.msra.mxu1 (!%p140_p2), %v1022_v2 }
   0xc   : > { %486 = vmatprep.subr.bf16.mxu0 (!%p140_p2), %v1214_v1  ;;  %996 = vmatprep.subr.bf16.mxu1 (!%p140_p2), %v1214_v1 }
   0xd   : > { %s1412_s16 = smov (!%p165_p3, %s928_s16), 63 }
   0xe   : > { %s993_s21 = sshll.u32 %s1412_s16, 3 }
   0xf   : > { %s1260_s24 = scalar_lea.vmem %s1407_s0, %s993_s21  ;;  %487 = vmatpush1.bf16.msra.mxu0 %v1023_v3  ;;  %1005 = vmatpush1.bf16.msra.mxu1 %v1023_v3  ;;  %s1352_s15 = scalar_lea.vmem %s1410_s3, %s993_s21 }
  0x10   : > { %v1032_v5 = vld [vmem:[%s1260_s24 + $0x4] ss:$8 sps:$4 sm:$0xff]   ;;  %488 = vmatprep.subr.bf16.mxu0 %v1214_v1  ;;  %997 = vmatprep.subr.bf16.mxu1 %v1214_v1  ;;  %v1030_v12 = vld [vmem:[%s1260_s24] ss:$8 sps:$4 sm:$0xff]   ;;  %v1036_v14 = vld [vmem:[%s1260_s24 + $0x14] ss:$8 sps:$4 sm:$0xff]  }
  0x11   : > { %v1035_v6 = vld [vmem:[%s1260_s24 + $0x84] ss:$8 sps:$4 sm:$0xff]   ;;  %975 = vmatprep.mubr.msk.bf16.mxu0 %vm433_vm0, %v1032_v5  ;;  %v1033_v13 = vld [vmem:[%s1260_s24 + $0x80] ss:$8 sps:$4 sm:$0xff]   ;;  %v1038_v15 = vld [vmem:[%s1260_s24 + $0x94] ss:$8 sps:$4 sm:$0xff]  }
  0x12   : > { %983 = vmatprep.mubr.msk.bf16.mxu1 %vm433_vm0, %v1035_v6  ;;  %v1040_v16 = vld [vmem:[%s1260_s24 + $0x10] ss:$8 sps:$4 sm:$0xff]   ;;  %v1042_v18 = vld [vmem:[%s1260_s24 + $0x24] ss:$8 sps:$4 sm:$0xff]   ;;  %v1046_v20 = vld [vmem:[%s1260_s24 + $0x20] ss:$8 sps:$4 sm:$0xff]  }
  0x13   : > { %489 = vmatpush1.bf16.msra.mxu0 %v1024_v4  ;;  %1006 = vmatpush1.bf16.msra.mxu1 %v1024_v4  ;;  %v1041_v17 = vld [vmem:[%s1260_s24 + $0x90] ss:$8 sps:$4 sm:$0xff]   ;;  %v1044_v19 = vld [vmem:[%s1260_s24 + $0xa4] ss:$8 sps:$4 sm:$0xff]   ;;  %v1047_v21 = vld [vmem:[%s1260_s24 + $0xa0] ss:$8 sps:$4 sm:$0xff]  }
  0x14   : > { %490 = vmatprep.subr.bf16.mxu0 %v1214_v1  ;;  %998 = vmatprep.subr.bf16.mxu1 %v1214_v1  ;;  %v1048_v22 = vld [vmem:[%s1260_s24 + $0x34] ss:$8 sps:$4 sm:$0xff]   ;;  %v1052_v24 = vld [vmem:[%s1260_s24 + $0x30] ss:$8 sps:$4 sm:$0xff]   ;;  %v1054_v26 = vld [vmem:[%s1260_s24 + $0x44] ss:$8 sps:$4 sm:$0xff]  }
  0x15   : > { %v1050_v23 = vld [vmem:[%s1260_s24 + $0xb4] ss:$8 sps:$4 sm:$0xff]   ;;  %v1053_v25 = vld [vmem:[%s1260_s24 + $0xb0] ss:$8 sps:$4 sm:$0xff]   ;;  %v1056_v27 = vld [vmem:[%s1260_s24 + $0xc4] ss:$8 sps:$4 sm:$0xff]  }
  0x16   : > { %v1058_v28 = vld [vmem:[%s1260_s24 + $0x40] ss:$8 sps:$4 sm:$0xff]   ;;  %v1060_v30 = vld [vmem:[%s1260_s24 + $0x54] ss:$8 sps:$4 sm:$0xff]   ;;  %v1064_v32 = vld [vmem:[%s1260_s24 + $0x50] ss:$8 sps:$4 sm:$0xff]  }
  0x17   : > { %491 = vmatpush1.bf16.msra.mxu0 %v1025_v7  ;;  %1007 = vmatpush1.bf16.msra.mxu1 %v1025_v7  ;;  %v1059_v29 = vld [vmem:[%s1260_s24 + $0xc0] ss:$8 sps:$4 sm:$0xff]   ;;  %v1062_v31 = vld [vmem:[%s1260_s24 + $0xd4] ss:$8 sps:$4 sm:$0xff]   ;;  %v1065_v33 = vld [vmem:[%s1260_s24 + $0xd0] ss:$8 sps:$4 sm:$0xff]  }
  0x18   : > { %492 = vmatprep.subr.bf16.mxu0 %v1214_v1  ;;  %999 = vmatprep.subr.bf16.mxu1 %v1214_v1  ;;  %v1066_v34 = vld [vmem:[%s1260_s24 + $0x64] ss:$8 sps:$4 sm:$0xff]   ;;  %v1070_v36 = vld [vmem:[%s1260_s24 + $0x60] ss:$8 sps:$4 sm:$0xff]   ;;  %v1072_v38 = vld [vmem:[%s1260_s24 + $0x74] ss:$8 sps:$4 sm:$0xff]  }
  0x19   : > { %v1068_v35 = vld [vmem:[%s1260_s24 + $0xe4] ss:$8 sps:$4 sm:$0xff]   ;;  %v1071_v37 = vld [vmem:[%s1260_s24 + $0xe0] ss:$8 sps:$4 sm:$0xff]   ;;  %v1074_v39 = vld [vmem:[%s1260_s24 + $0xf4] ss:$8 sps:$4 sm:$0xff]  }
  0x1a   : > { %v1076_v40 = vld [vmem:[%s1260_s24 + $0x70] ss:$8 sps:$4 sm:$0xff]  }
  0x1b   : > { %493 = vmatpush1.bf16.msra.mxu0 %v1026_v8  ;;  %1008 = vmatpush1.bf16.msra.mxu1 %v1026_v8  ;;  %v1077_v41 = vld [vmem:[%s1260_s24 + $0xf0] ss:$8 sps:$4 sm:$0xff]  }
  0x1c   : > { %494 = vmatprep.subr.bf16.mxu0 %v1214_v1  ;;  %1000 = vmatprep.subr.bf16.mxu1 %v1214_v1 }
  0x1f   : > { %495 = vmatpush1.bf16.msra.mxu0 %v1027_v9  ;;  %1009 = vmatpush1.bf16.msra.mxu1 %v1027_v9 }
  0x20   : > { %496 = vmatprep.subr.bf16.mxu0 %v1214_v1  ;;  %1001 = vmatprep.subr.bf16.mxu1 %v1214_v1 }
  0x23   : > { %497 = vmatpush1.bf16.msra.mxu0 %v1028_v10  ;;  %1010 = vmatpush1.bf16.msra.mxu1 %v1028_v10 }
  0x24   : > { %498 = vmatprep.subr.bf16.mxu0 %v1214_v1  ;;  %1002 = vmatprep.subr.bf16.mxu1 %v1214_v1 }
  0x27   : > { %499 = vmatpush1.bf16.msra.mxu0 %v1029_v11  ;;  %1011 = vmatpush1.bf16.msra.mxu1 %v1029_v11 }
  0x2a   : > { %515 = vmatmul.mubr.bf16.vlgmr.msra.gmra.mrb[0].mxu0 %v1030_v12  ;;  %579 = vmatmul.mubr.bf16.vlgmr.msra.gmra.mrb[0].mxu1 %v1033_v13 }
  0x2b   : > { %976 = vmatprep.mubr.msk.bf16.mxu0 %vm433_vm0, %v1036_v14  ;;  %984 = vmatprep.mubr.msk.bf16.mxu1 %vm433_vm0, %v1038_v15 }
  0x32   : > { %523 = vmatmul.mubr.bf16.gmra.mrb[4].mxu0 %v1040_v16  ;;  %587 = vmatmul.mubr.bf16.gmra.mrb[4].mxu1 %v1041_v17 }
  0x33   : > { %977 = vmatprep.mubr.msk.bf16.mxu0 %vm433_vm0, %v1042_v18  ;;  %985 = vmatprep.mubr.msk.bf16.mxu1 %vm433_vm0, %v1044_v19 }
  0x3a   : > { %531 = vmatmul.mubr.bf16.gmra.mrb[8].mxu0 %v1046_v20  ;;  %595 = vmatmul.mubr.bf16.gmra.mrb[8].mxu1 %v1047_v21 }
  0x3b   : > { %978 = vmatprep.mubr.msk.bf16.mxu0 %vm433_vm0, %v1048_v22  ;;  %986 = vmatprep.mubr.msk.bf16.mxu1 %vm433_vm0, %v1050_v23 }
  0x42   : > { %539 = vmatmul.mubr.bf16.gmra.mrb[12].mxu0 %v1052_v24  ;;  %603 = vmatmul.mubr.bf16.gmra.mrb[12].mxu1 %v1053_v25 }
  0x43   : > { %979 = vmatprep.mubr.msk.bf16.mxu0 %vm433_vm0, %v1054_v26  ;;  %987 = vmatprep.mubr.msk.bf16.mxu1 %vm433_vm0, %v1056_v27 }
  0x4a   : > { %547 = vmatmul.mubr.bf16.gmra.mrb[16].mxu0 %v1058_v28  ;;  %611 = vmatmul.mubr.bf16.gmra.mrb[16].mxu1 %v1059_v29 }
  0x4b   : > { %980 = vmatprep.mubr.msk.bf16.mxu0 %vm433_vm0, %v1060_v30  ;;  %988 = vmatprep.mubr.msk.bf16.mxu1 %vm433_vm0, %v1062_v31 }
  0x52   : > { %555 = vmatmul.mubr.bf16.gmra.mrb[20].mxu0 %v1064_v32  ;;  %619 = vmatmul.mubr.bf16.gmra.mrb[20].mxu1 %v1065_v33 }
  0x53   : > { %981 = vmatprep.mubr.msk.bf16.mxu0 %vm433_vm0, %v1066_v34  ;;  %989 = vmatprep.mubr.msk.bf16.mxu1 %vm433_vm0, %v1068_v35 }
  0x5a   : > { %563 = vmatmul.mubr.bf16.gmra.mrb[24].mxu0 %v1070_v36  ;;  %627 = vmatmul.mubr.bf16.gmra.mrb[24].mxu1 %v1071_v37 }
  0x5b   : > { %982 = vmatprep.mubr.msk.bf16.mxu0 %vm433_vm0, %v1072_v38  ;;  %990 = vmatprep.mubr.msk.bf16.mxu1 %vm433_vm0, %v1074_v39 }
  0x62   : > { %571 = vmatmul.mubr.bf16.gmra.mrb[28].mxu0 %v1076_v40  ;;  %635 = vmatmul.mubr.bf16.gmra.mrb[28].mxu1 %v1077_v41 }
  0xfd   : > { %v516_v43 = vpop.f32.mrb[0].mxu0  ;;  %v580_v44 = vpop.f32.mrb[0].mxu1 }
  0xfe   : > { %v517_v45 = vadd.f32 %v1331_v42, %v516_v43  ;;  %v581_v46 = vadd.f32 %v1331_v42, %v580_v44  ;;  %v518_v47 = vpop.f32.mrb[1].mxu0  ;;  %v582_v48 = vpop.f32.mrb[1].mxu1 }
  0xff   : > { %v519_v49 = vpop.f32.mrb[2].mxu0  ;;  %v583_v50 = vpop.f32.mrb[2].mxu1 }
 0x100   : > { %v643_v51 = vsub.f32 0.0, %v517_v45  ;;  %v659_v52 = vsub.f32 0.0, %v581_v46  ;;  %v520_v53 = vadd.f32 %v1331_v42, %v519_v49  ;;  %v584_v54 = vadd.f32 %v1331_v42, %v583_v50  ;;  %v521_v55 = vpop.f32.mrb[3].mxu0  ;;  %v585_v56 = vpop.f32.mrb[3].mxu1 }
 0x102   : > { %v675_v57 = vmul.f32 1.442695, %v643_v51  ;;  %v707_v58 = vmul.f32 1.442695, %v659_v52  ;;  %v644_v59 = vsub.f32 0.0, %v520_v53  ;;  %v660_v60 = vsub.f32 0.0, %v584_v54 }
 0x104   : > { %1078 = vpow2.f32 %v675_v57  ;;  %v677_v61 = vmul.f32 1.442695, %v644_v59  ;;  %v709_v62 = vmul.f32 1.442695, %v660_v60 }
 0x105   : > { %1080 = vpow2.f32 %v707_v58  ;;  %v524_v63 = vpop.f32.mrb[4].mxu0  ;;  %v588_v0 = vpop.f32.mrb[4].mxu1 }
 0x106   : > { %1082 = vpow2.f32 %v677_v61  ;;  %v525_v1 = vadd.f32 %v1331_v42, %v524_v63  ;;  %v589_v2 = vadd.f32 %v1331_v42, %v588_v0  ;;  %v526_v3 = vpop.f32.mrb[5].mxu0  ;;  %v590_v4 = vpop.f32.mrb[5].mxu1 }
 0x107   : > { %1084 = vpow2.f32 %v709_v62  ;;  %v527_v5 = vpop.f32.mrb[6].mxu0  ;;  %v591_v6 = vpop.f32.mrb[6].mxu1 }
 0x108   : > { %v645_v7 = vsub.f32 0.0, %v525_v1  ;;  %v661_v8 = vsub.f32 0.0, %v589_v2  ;;  %v528_v9 = vadd.f32 %v1331_v42, %v527_v5  ;;  %v592_v10 = vadd.f32 %v1331_v42, %v591_v6  ;;  %v529_v11 = vpop.f32.mrb[7].mxu0  ;;  %v593_v12 = vpop.f32.mrb[7].mxu1 }
 0x10a   : > { %v679_v13 = vmul.f32 1.442695, %v645_v7  ;;  %v711_v14 = vmul.f32 1.442695, %v661_v8  ;;  %v646_v15 = vsub.f32 0.0, %v528_v9  ;;  %v662_v16 = vsub.f32 0.0, %v592_v10 }
 0x10c   : > { %1086 = vpow2.f32 %v679_v13  ;;  %v681_v17 = vmul.f32 1.442695, %v646_v15  ;;  %v713_v18 = vmul.f32 1.442695, %v662_v16 }
 0x10d   : > { %1088 = vpow2.f32 %v711_v14  ;;  %v532_v19 = vpop.f32.mrb[8].mxu0  ;;  %v596_v20 = vpop.f32.mrb[8].mxu1 }
 0x10e   : > { %v1079_v21 = vpop.eup %1078  ;;  %1090 = vpow2.f32 %v681_v17  ;;  %v533_v22 = vadd.f32 %v1331_v42, %v532_v19  ;;  %v597_v23 = vadd.f32 %v1331_v42, %v596_v20  ;;  %v534_v24 = vpop.f32.mrb[9].mxu0 }
 0x10f   : > { %v598_v25 = vpop.f32.mrb[9].mxu1  ;;  %v1081_v26 = vpop.eup %1080  ;;  %v739_v27 = vadd.f32 1.0, %v1079_v21  ;;  %1092 = vpow2.f32 %v713_v18 }
 0x110   : > { %v535_v28 = vpop.f32.mrb[10].mxu0  ;;  %v599_v29 = vpop.f32.mrb[10].mxu1  ;;  %v755_v31 = vadd.f32 1.0, %v1081_v26  ;;  %v647_v32 = vsub.f32 0.0, %v533_v22  ;;  %v663_v33 = vsub.f32 0.0, %v597_v23 }
 0x111   : > { %v1083_v30 = vpop.eup %1082  ;;  %v536_v34 = vadd.f32 %v1331_v42, %v535_v28  ;;  %v537_v35 = vpop.f32.mrb[11].mxu0  ;;  %1094 = vrcp.f32 %v739_v27  ;;  %v600_v39 = vadd.f32 %v1331_v42, %v599_v29 }
 0x112   : > { %v601_v36 = vpop.f32.mrb[11].mxu1  ;;  %v1085_v37 = vpop.eup %1084  ;;  %v740_v38 = vadd.f32 1.0, %v1083_v30  ;;  %1096 = vrcp.f32 %v755_v31  ;;  %v683_v41 = vmul.f32 1.442695, %v647_v32  ;;  %v715_v43 = vmul.f32 1.442695, %v663_v33 }
 0x113   : > { %v756_v40 = vadd.f32 1.0, %v1085_v37  ;;  %v648_v44 = vsub.f32 0.0, %v536_v34  ;;  %v664_v45 = vsub.f32 0.0, %v600_v39 }
 0x114   : > { %1098 = vrcp.f32 %v740_v38 }
 0x115   : > { %1100 = vrcp.f32 %v756_v40  ;;  %v685_v46 = vmul.f32 1.442695, %v648_v44  ;;  %v717_v47 = vmul.f32 1.442695, %v664_v45  ;;  %v540_v48 = vpop.f32.mrb[12].mxu0  ;;  %v604_v49 = vpop.f32.mrb[12].mxu1 }
 0x116   : > { %1102 = vpow2.f32 %v683_v41  ;;  %v1087_v50 = vpop.eup %1086  ;;  %v541_v51 = vadd.f32 %v1331_v42, %v540_v48  ;;  %v605_v52 = vadd.f32 %v1331_v42, %v604_v49  ;;  %v542_v53 = vpop.f32.mrb[13].mxu0 }
 0x117   : > { %1104 = vpow2.f32 %v715_v43  ;;  %v606_v54 = vpop.f32.mrb[13].mxu1  ;;  %v1089_v55 = vpop.eup %1088  ;;  %v741_v56 = vadd.f32 1.0, %v1087_v50 }
 0x118   : > { %1106 = vpow2.f32 %v685_v46  ;;  %v543_v57 = vpop.f32.mrb[14].mxu0  ;;  %v607_v58 = vpop.f32.mrb[14].mxu1  ;;  %v757_v60 = vadd.f32 1.0, %v1089_v55  ;;  %v649_v61 = vsub.f32 0.0, %v541_v51  ;;  %v665_v62 = vsub.f32 0.0, %v605_v52 }
 0x119   : > { %v1091_v59 = vpop.eup %1090  ;;  %1108 = vpow2.f32 %v717_v47  ;;  %v545_v63 = vpop.f32.mrb[15].mxu0  ;;  %v544_v3 = vadd.f32 %v1331_v42, %v543_v57  ;;  %v608_v4 = vadd.f32 %v1331_v42, %v607_v58 }
 0x11a   : > { %v609_v0 = vpop.f32.mrb[15].mxu1  ;;  %v1093_v1 = vpop.eup %1092  ;;  %1110 = vrcp.f32 %v741_v56  ;;  %v742_v2 = vadd.f32 1.0, %v1091_v59  ;;  %v687_v6 = vmul.f32 1.442695, %v649_v61  ;;  %v719_v7 = vmul.f32 1.442695, %v665_v62 }
 0x11b   : > { %1112 = vrcp.f32 %v757_v60  ;;  %v758_v5 = vadd.f32 1.0, %v1093_v1  ;;  %v1095_v8 = vpop.eup %1094  ;;  %v650_v9 = vsub.f32 0.0, %v544_v3  ;;  %v666_v10 = vsub.f32 0.0, %v608_v4 }
 0x11c   : > { %1114 = vrcp.f32 %v742_v2  ;;  %v1097_v11 = vpop.eup %1096  ;;  %835 = vst [vmem:[%s1352_s15] sm:$0xff] %v1095_v8 }
 0x11d   : > { %1116 = vrcp.f32 %v758_v5  ;;  %851 = vst [vmem:[%s1352_s15 + $0x80] sm:$0xff] %v1097_v11  ;;  %v689_v13 = vmul.f32 1.442695, %v650_v9  ;;  %v721_v14 = vmul.f32 1.442695, %v666_v10  ;;  %v548_v15 = vpop.f32.mrb[16].mxu0 }
 0x11e   : > { %v1099_v12 = vpop.eup %1098  ;;  %1118 = vpow2.f32 %v687_v6  ;;  %v612_v16 = vpop.f32.mrb[16].mxu1  ;;  %v549_v18 = vadd.f32 %v1331_v42, %v548_v15 }
 0x11f   : > { %v1101_v17 = vpop.eup %1100  ;;  %836 = vst [vmem:[%s1352_s15 + $0x8] sm:$0xff] %v1099_v12  ;;  %1120 = vpow2.f32 %v719_v7  ;;  %v613_v19 = vadd.f32 %v1331_v42, %v612_v16  ;;  %v550_v20 = vpop.f32.mrb[17].mxu0 }
 0x120   : > { %v614_v21 = vpop.f32.mrb[17].mxu1  ;;  %v1103_v22 = vpop.eup %1102  ;;  %852 = vst [vmem:[%s1352_s15 + $0x88] sm:$0xff] %v1101_v17  ;;  %1122 = vpow2.f32 %v689_v13  ;;  %v651_v27 = vsub.f32 0.0, %v549_v18 }
 0x121   : > { %v551_v23 = vpop.f32.mrb[18].mxu0  ;;  %v615_v24 = vpop.f32.mrb[18].mxu1  ;;  %v743_v26 = vadd.f32 1.0, %v1103_v22  ;;  %1124 = vpow2.f32 %v721_v14  ;;  %v667_v28 = vsub.f32 0.0, %v613_v19 }
 0x122   : > { %v1105_v25 = vpop.eup %1104  ;;  %v553_v29 = vpop.f32.mrb[19].mxu0  ;;  %v552_v33 = vadd.f32 %v1331_v42, %v551_v23  ;;  %v616_v34 = vadd.f32 %v1331_v42, %v615_v24  ;;  %v691_v37 = vmul.f32 1.442695, %v651_v27 }
 0x123   : > { %v617_v30 = vpop.f32.mrb[19].mxu1  ;;  %v1107_v31 = vpop.eup %1106  ;;  %v759_v32 = vadd.f32 1.0, %v1105_v25  ;;  %1126 = vrcp.f32 %v743_v26  ;;  %v723_v38 = vmul.f32 1.442695, %v667_v28 }
 0x124   : > { %v1109_v35 = vpop.eup %1108  ;;  %v744_v36 = vadd.f32 1.0, %v1107_v31  ;;  %v652_v41 = vsub.f32 0.0, %v552_v33  ;;  %v668_v43 = vsub.f32 0.0, %v616_v34 }
 0x125   : > { %v1111_v39 = vpop.eup %1110  ;;  %1128 = vrcp.f32 %v759_v32  ;;  %v760_v40 = vadd.f32 1.0, %v1109_v35  ;;  %v556_v48 = vpop.f32.mrb[20].mxu0 }
 0x126   : > { %v1113_v44 = vpop.eup %1112  ;;  %837 = vst [vmem:[%s1352_s15 + $0x10] sm:$0xff] %v1111_v39  ;;  %1130 = vrcp.f32 %v744_v36  ;;  %v693_v46 = vmul.f32 1.442695, %v652_v41  ;;  %v725_v47 = vmul.f32 1.442695, %v668_v43  ;;  %v620_v49 = vpop.f32.mrb[20].mxu1  ;;  %v557_v51 = vadd.f32 %v1331_v42, %v556_v48 }
 0x127   : > { %v1115_v45 = vpop.eup %1114  ;;  %853 = vst [vmem:[%s1352_s15 + $0x90] sm:$0xff] %v1113_v44  ;;  %1132 = vrcp.f32 %v760_v40  ;;  %v621_v52 = vadd.f32 %v1331_v42, %v620_v49  ;;  %v558_v53 = vpop.f32.mrb[21].mxu0 }
 0x128   : > { %v1117_v50 = vpop.eup %1116  ;;  %838 = vst [vmem:[%s1352_s15 + $0x18] sm:$0xff] %v1115_v45  ;;  %1134 = vpow2.f32 %v691_v37  ;;  %v622_v54 = vpop.f32.mrb[21].mxu1  ;;  %v653_v60 = vsub.f32 0.0, %v557_v51 }
 0x129   : > { %v1119_v55 = vpop.eup %1118  ;;  %854 = vst [vmem:[%s1352_s15 + $0x98] sm:$0xff] %v1117_v50  ;;  %1136 = vpow2.f32 %v723_v38  ;;  %v559_v56 = vpop.f32.mrb[22].mxu0  ;;  %v669_v61 = vsub.f32 0.0, %v621_v52 }
 0x12a   : > { %v623_v57 = vpop.f32.mrb[22].mxu1  ;;  %v1121_v58 = vpop.eup %1120  ;;  %v745_v59 = vadd.f32 1.0, %v1119_v55  ;;  %1138 = vpow2.f32 %v693_v46  ;;  %v560_v2 = vadd.f32 %v1331_v42, %v559_v56  ;;  %v695_v6 = vmul.f32 1.442695, %v653_v60 }
 0x12b   : > { %v561_v62 = vpop.f32.mrb[23].mxu0  ;;  %v625_v63 = vpop.f32.mrb[23].mxu1  ;;  %v761_v1 = vadd.f32 1.0, %v1121_v58  ;;  %1140 = vpow2.f32 %v725_v47  ;;  %v624_v3 = vadd.f32 %v1331_v42, %v623_v57  ;;  %v727_v7 = vmul.f32 1.442695, %v669_v61 }
 0x12c   : > { %v1123_v0 = vpop.eup %1122  ;;  %1142 = vrcp.f32 %v745_v59  ;;  %v654_v9 = vsub.f32 0.0, %v560_v2 }
 0x12d   : > { %v1125_v4 = vpop.eup %1124  ;;  %v746_v5 = vadd.f32 1.0, %v1123_v0  ;;  %1144 = vrcp.f32 %v761_v1  ;;  %v670_v10 = vsub.f32 0.0, %v624_v3  ;;  %v564_v15 = vpop.f32.mrb[24].mxu0 }
 0x12e   : > { %v762_v8 = vadd.f32 1.0, %v1125_v4  ;;  %v1127_v11 = vpop.eup %1126  ;;  %v697_v13 = vmul.f32 1.442695, %v654_v9  ;;  %v628_v16 = vpop.f32.mrb[24].mxu1  ;;  %v565_v18 = vadd.f32 %v1331_v42, %v564_v15 }
 0x12f   : > { %1146 = vrcp.f32 %v746_v5  ;;  %v1129_v12 = vpop.eup %1128  ;;  %839 = vst [vmem:[%s1352_s15 + $0x20] sm:$0xff] %v1127_v11  ;;  %v729_v14 = vmul.f32 1.442695, %v670_v10  ;;  %v629_v19 = vadd.f32 %v1331_v42, %v628_v16  ;;  %v566_v20 = vpop.f32.mrb[25].mxu0 }
 0x130   : > { %1148 = vrcp.f32 %v762_v8  ;;  %v1131_v17 = vpop.eup %1130  ;;  %855 = vst [vmem:[%s1352_s15 + $0xa0] sm:$0xff] %v1129_v12  ;;  %v630_v21 = vpop.f32.mrb[25].mxu1  ;;  %v655_v26 = vsub.f32 0.0, %v565_v18 }
 0x131   : > { %1150 = vpow2.f32 %v695_v6  ;;  %v1133_v22 = vpop.eup %1132  ;;  %840 = vst [vmem:[%s1352_s15 + $0x28] sm:$0xff] %v1131_v17  ;;  %v567_v23 = vpop.f32.mrb[26].mxu0  ;;  %v671_v27 = vsub.f32 0.0, %v629_v19 }
 0x132   : > { %1152 = vpow2.f32 %v727_v7  ;;  %v631_v24 = vpop.f32.mrb[26].mxu1  ;;  %v1135_v25 = vpop.eup %1134  ;;  %856 = vst [vmem:[%s1352_s15 + $0xa8] sm:$0xff] %v1133_v22  ;;  %v568_v28 = vadd.f32 %v1331_v42, %v567_v23  ;;  %v699_v39 = vmul.f32 1.442695, %v655_v26 }
 0x133   : > { %1154 = vpow2.f32 %v697_v13  ;;  %v569_v29 = vpop.f32.mrb[27].mxu0  ;;  %v633_v30 = vpop.f32.mrb[27].mxu1  ;;  %v747_v32 = vadd.f32 1.0, %v1135_v25  ;;  %v632_v33 = vadd.f32 %v1331_v42, %v631_v24  ;;  %v731_v44 = vmul.f32 1.442695, %v671_v27 }
 0x134   : > { %v1137_v31 = vpop.eup %1136  ;;  %1156 = vpow2.f32 %v729_v14  ;;  %v656_v36 = vsub.f32 0.0, %v568_v28 }
 0x135   : > { %v1139_v34 = vpop.eup %1138  ;;  %v763_v35 = vadd.f32 1.0, %v1137_v31  ;;  %1158 = vrcp.f32 %v747_v32  ;;  %v672_v40 = vsub.f32 0.0, %v632_v33  ;;  %v572_v47 = vpop.f32.mrb[28].mxu0 }
 0x136   : > { %v1141_v37 = vpop.eup %1140  ;;  %v748_v38 = vadd.f32 1.0, %v1139_v34  ;;  %v701_v46 = vmul.f32 1.442695, %v656_v36  ;;  %v636_v48 = vpop.f32.mrb[28].mxu1  ;;  %v573_v51 = vadd.f32 %v1331_v42, %v572_v47 }
 0x137   : > { %v1143_v41 = vpop.eup %1142  ;;  %1160 = vrcp.f32 %v763_v35  ;;  %v764_v43 = vadd.f32 1.0, %v1141_v37  ;;  %v733_v50 = vmul.f32 1.442695, %v672_v40  ;;  %v637_v52 = vadd.f32 %v1331_v42, %v636_v48  ;;  %v574_v53 = vpop.f32.mrb[29].mxu0 }
 0x138   : > { %v1145_v45 = vpop.eup %1144  ;;  %841 = vst [vmem:[%s1352_s15 + $0x30] sm:$0xff] %v1143_v41  ;;  %1162 = vrcp.f32 %v748_v38  ;;  %v638_v54 = vpop.f32.mrb[29].mxu1  ;;  %v657_v59 = vsub.f32 0.0, %v573_v51 }
 0x139   : > { %v1147_v49 = vpop.eup %1146  ;;  %857 = vst [vmem:[%s1352_s15 + $0xb0] sm:$0xff] %v1145_v45  ;;  %1164 = vrcp.f32 %v764_v43  ;;  %v575_v56 = vpop.f32.mrb[30].mxu0  ;;  %v673_v60 = vsub.f32 0.0, %v637_v52 }
 0x13a   : > { %v1149_v55 = vpop.eup %1148  ;;  %842 = vst [vmem:[%s1352_s15 + $0x38] sm:$0xff] %v1147_v49  ;;  %1166 = vpow2.f32 %v699_v39  ;;  %v639_v57 = vpop.f32.mrb[30].mxu1  ;;  %v576_v61 = vadd.f32 %v1331_v42, %v575_v56  ;;  %v703_v5 = vmul.f32 1.442695, %v657_v59 }
 0x13b   : > { %v1151_v58 = vpop.eup %1150  ;;  %858 = vst [vmem:[%s1352_s15 + $0xb8] sm:$0xff] %v1149_v55  ;;  %1168 = vpow2.f32 %v731_v44  ;;  %v577_v62 = vpop.f32.mrb[31].mxu0  ;;  %v640_v2 = vadd.f32 %v1331_v42, %v639_v57  ;;  %v735_v11 = vmul.f32 1.442695, %v673_v60 }
 0x13c   : > { %v641_v63 = vpop.f32.mrb[31].mxu1  ;;  %v1153_v0 = vpop.eup %1152  ;;  %v749_v1 = vadd.f32 1.0, %v1151_v58  ;;  %1170 = vpow2.f32 %v701_v46  ;;  %v658_v8 = vsub.f32 0.0, %v576_v61 }
 0x13d   : > { %v1155_v3 = vpop.eup %1154  ;;  %v765_v4 = vadd.f32 1.0, %v1153_v0  ;;  %1172 = vpow2.f32 %v733_v50  ;;  %v674_v9 = vsub.f32 0.0, %v640_v2 }
 0x13e   : > { %v1157_v6 = vpop.eup %1156  ;;  %1174 = vrcp.f32 %v749_v1  ;;  %v750_v7 = vadd.f32 1.0, %v1155_v3  ;;  %v705_v13 = vmul.f32 1.442695, %v658_v8 }
 0x13f   : > { %1176 = vrcp.f32 %v765_v4  ;;  %v766_v10 = vadd.f32 1.0, %v1157_v6  ;;  %v1159_v12 = vpop.eup %1158  ;;  %v737_v14 = vmul.f32 1.442695, %v674_v9 }
 0x140   : > { %1178 = vrcp.f32 %v750_v7  ;;  %843 = vst [vmem:[%s1352_s15 + $0x40] sm:$0xff] %v1159_v12 }
 0x141   : > { %v1161_v42 = vpop.eup %1160  ;;  %1180 = vrcp.f32 %v766_v10 }
 0x142   : > { %v1163_v15 = vpop.eup %1162  ;;  %859 = vst [vmem:[%s1352_s15 + $0xc0] sm:$0xff] %v1161_v42  ;;  %1182 = vpow2.f32 %v703_v5 }
 0x143   : > { %v1165_v16 = vpop.eup %1164  ;;  %844 = vst [vmem:[%s1352_s15 + $0x48] sm:$0xff] %v1163_v15  ;;  %1184 = vpow2.f32 %v735_v11 }
 0x144   : > { %v1167_v17 = vpop.eup %1166  ;;  %860 = vst [vmem:[%s1352_s15 + $0xc8] sm:$0xff] %v1165_v16  ;;  %1186 = vpow2.f32 %v705_v13 }
 0x145   : > { %v1169_v18 = vpop.eup %1168  ;;  %v751_v19 = vadd.f32 1.0, %v1167_v17  ;;  %1188 = vpow2.f32 %v737_v14 }
 0x146   : > { %v1171_v20 = vpop.eup %1170  ;;  %v767_v21 = vadd.f32 1.0, %v1169_v18 }
 0x147   : > { %v1173_v22 = vpop.eup %1172  ;;  %1190 = vrcp.f32 %v751_v19  ;;  %v752_v23 = vadd.f32 1.0, %v1171_v20 }
 0x148   : > { %v1175_v24 = vpop.eup %1174  ;;  %1192 = vrcp.f32 %v767_v21  ;;  %v768_v25 = vadd.f32 1.0, %v1173_v22 }
 0x149   : > { %v1177_v26 = vpop.eup %1176  ;;  %845 = vst [vmem:[%s1352_s15 + $0x50] sm:$0xff] %v1175_v24  ;;  %1194 = vrcp.f32 %v752_v23 }
 0x14a   : > { %v1179_v27 = vpop.eup %1178  ;;  %861 = vst [vmem:[%s1352_s15 + $0xd0] sm:$0xff] %v1177_v26  ;;  %1196 = vrcp.f32 %v768_v25 }
 0x14b   : > { %v1181_v28 = vpop.eup %1180  ;;  %846 = vst [vmem:[%s1352_s15 + $0x58] sm:$0xff] %v1179_v27 }
 0x14c   : > { %v1183_v29 = vpop.eup %1182  ;;  %862 = vst [vmem:[%s1352_s15 + $0xd8] sm:$0xff] %v1181_v28 }
 0x14d   : > { %v1185_v30 = vpop.eup %1184  ;;  %v753_v31 = vadd.f32 1.0, %v1183_v29 }
 0x14e   : > { %v1187_v32 = vpop.eup %1186  ;;  %v769_v33 = vadd.f32 1.0, %v1185_v30 }
 0x14f   : > { %v1189_v34 = vpop.eup %1188  ;;  %1198 = vrcp.f32 %v753_v31  ;;  %v754_v35 = vadd.f32 1.0, %v1187_v32 }
 0x150   : > { %1200 = vrcp.f32 %v769_v33  ;;  %v770_v36 = vadd.f32 1.0, %v1189_v34 }
 0x151   : > { %v1191_v37 = vpop.eup %1190  ;;  %1202 = vrcp.f32 %v754_v35 }
 0x152   : > { %v1193_v38 = vpop.eup %1192  ;;  %847 = vst [vmem:[%s1352_s15 + $0x60] sm:$0xff] %v1191_v37  ;;  %1204 = vrcp.f32 %v770_v36 }
 0x153   : > { %v1195_v39 = vpop.eup %1194  ;;  %863 = vst [vmem:[%s1352_s15 + $0xe0] sm:$0xff] %v1193_v38 }
 0x154   : > { %v1197_v40 = vpop.eup %1196  ;;  %848 = vst [vmem:[%s1352_s15 + $0x68] sm:$0xff] %v1195_v39 }
 0x155   : > { %864 = vst [vmem:[%s1352_s15 + $0xe8] sm:$0xff] %v1197_v40 }
 0x159   : > { %v1199_v41 = vpop.eup %1198 }
 0x15a   : > { %v1201_v43 = vpop.eup %1200  ;;  %849 = vst [vmem:[%s1352_s15 + $0x70] sm:$0xff] %v1199_v41 }
 0x15b   : > { %v1203_v44 = vpop.eup %1202  ;;  %865 = vst [vmem:[%s1352_s15 + $0xf0] sm:$0xff] %v1201_v43 }
 0x15c   : > { %v1205_v45 = vpop.eup %1204  ;;  %850 = vst [vmem:[%s1352_s15 + $0x78] sm:$0xff] %v1203_v44 }
 0x15d   : > { %866 = vst [vmem:[%s1352_s15 + $0xf8] sm:$0xff] %v1205_v45 }
 0x15e PF: > { %s13_s12 = sadd.s32 1, %s1212_s12  }
 0x15f   : > { %p10_p4 = scmp.ge.s32.totalorder %s13_s12, 4  }
 0x161   :  { %12 = sbr.rel (!%p10_p4) target bundleno = 1 (0x1), region = 62 }

</bundles_post_ra>
